<compile_context>
chip_gen: v7x
topology: tpu7x:2x2x1
jax: 0.10.0
libtpu: 0.0.40
codegen_flags: <defaults>
</compile_context>

<pallas_src>
import jax
import jax.numpy as jnp
from jax.experimental import pallas as pl
from jax.experimental.pallas import tpu as pltpu

EPS = 1e-5


def _residual_block_kernel(x_ref, w1_ref, w2_ref, g1_ref, b1_ref,
                           g2_ref, b2_ref, out_ref, pad_ref):
    # x_ref:         (1, H, W, C)   unpadded input sample
    # w1_ref/w2_ref: (3, 3*C, C)    conv weights, per-ky stacked over (kx, Cin)
    # g*/b*_ref:     (1, C)         instance-norm affine params
    # out_ref:       (1, H, W, C)
    # pad_ref:       (H+2, W+2, C)  VMEM scratch holding padded activations
    _, H, W, C = x_ref.shape
    HW = H * W
    K = 3 * C

    # ---- zero only the 1-pixel border of the padded scratch ----------------
    # (interior is fully overwritten below; much cheaper than a full-buffer
    #  zero fill, and has no cross-iteration dependence -> megacore-safe.)
    pad_ref[0:1, :, :] = jnp.zeros((1, W + 2, C), jnp.float32)
    pad_ref[H + 1:H + 2, :, :] = jnp.zeros((1, W + 2, C), jnp.float32)
    pad_ref[1:H + 1, 0:1, :] = jnp.zeros((H, 1, C), jnp.float32)
    pad_ref[1:H + 1, W + 1:W + 2, :] = jnp.zeros((H, 1, C), jnp.float32)

    x = x_ref[0]                                   # (H, W, C) tile-aligned
    pad_ref[1:H + 1, 1:W + 1, :] = x               # interior <- x

    def conv3x3(w_ref):
        """3x3 / pad-1 conv of pad_ref's contents: 3 matmuls with K = 3C."""
        padv = pad_ref[...]                        # (H+2, W+2, C)
        acc = None
        for ky in range(3):
            row = padv[ky:ky + H]                  # (H, W+2, C)
            strip = jnp.concatenate(               # fold kx taps into channels
                [row[:, 0:W], row[:, 1:W + 1], row[:, 2:W + 2]], axis=2)
            strip = strip.reshape(HW, K).astype(w_ref.dtype)
            term = jnp.dot(strip, w_ref[ky],       # (HW, 3C) @ (3C, C) on MXU
                           preferred_element_type=jnp.float32)
            acc = term if acc is None else acc + term
        return acc                                 # (HW, C) f32

    def instance_norm(acc, g_ref, b_ref):
        # Single-pass stats: per-channel sum and sum-of-squares (f32),
        # biased variance, eps inside the rsqrt — matches nn.InstanceNorm2d.
        # TODO(synk): track_running_stats buffer updates (training-time side
        # effect) are not modeled; forward uses instance statistics.
        s = jnp.sum(acc, axis=0, keepdims=True)             # (1, C)
        ss = jnp.sum(acc * acc, axis=0, keepdims=True)       # (1, C)
        mean = s * (1.0 / HW)
        var = ss * (1.0 / HW) - mean * mean
        inv = jax.lax.rsqrt(var + EPS)
        return (acc - mean) * (inv * g_ref[...]) + b_ref[...]

    # ---- conv1 -> IN1 -> ReLU ----------------------------------------------
    h = conv3x3(w1_ref)
    h = jnp.maximum(instance_norm(h, g1_ref, b1_ref), 0.0)

    # ---- write intermediate back into the (still zero-bordered) scratch ----
    pad_ref[1:H + 1, 1:W + 1, :] = h.reshape(H, W, C)

    # ---- conv2 -> IN2 -> residual add ---------------------------------------
    h2 = instance_norm(conv3x3(w2_ref), g2_ref, b2_ref)
    out_ref[...] = (x + h2.reshape(H, W, C)).reshape(1, H, W, C)


def residual_block(x_nchw, w1_oihw, w2_oihw, g1, b1, g2, b2,
                   matmul_dtype=jnp.float32):
    """x_nchw: (N, C, H, W) float32. Conv weights in PyTorch OIHW layout.

    matmul_dtype=jnp.bfloat16 runs the MXU contractions in bf16 with f32
    accumulation (halves weight bytes, faster MXU); abs error grows to ~1e-2,
    so keep the default f32 when comparing against an f32 reference at 1e-4.
    """
    N, C, H, W = x_nchw.shape
    x = jnp.transpose(x_nchw, (0, 2, 3, 1)).astype(jnp.float32)      # NHWC

    # OIHW -> (ky, kx, Cin, Cout) -> stack (kx, Cin) into one K=3C axis per ky
    def prep_w(w):
        wt = jnp.transpose(w, (2, 3, 1, 0)).astype(matmul_dtype)     # (3,3,Ci,Co)
        return wt.reshape(3, 3 * C, C)

    w1s, w2s = prep_w(w1_oihw), prep_w(w2_oihw)

    g1r = g1.reshape(1, C).astype(jnp.float32)
    b1r = b1.reshape(1, C).astype(jnp.float32)
    g2r = g2.reshape(1, C).astype(jnp.float32)
    b2r = b2.reshape(1, C).astype(jnp.float32)

    # Explicit scoped-VMEM budget (v5e default is only 16 MiB); headroom for
    # in-kernel temporaries, clamped to v7x's 64 MiB physical VMEM.
    f32 = 4
    wbytes = jnp.dtype(matmul_dtype).itemsize
    block_bytes = (2 * H * W * C * f32             # x block, double-buffered
                   + 2 * H * W * C * f32           # out block, double-buffered
                   + (H + 2) * (W + 2) * C * f32   # padded scratch
                   + 2 * 2 * 9 * C * C * wbytes    # both weight stacks
                   + 3 * H * W * C * f32)          # acc + im2col strip temps
    vmem_limit = int(min(max(4 * block_bytes, 32 * 2 ** 20), 64 * 2 ** 20))

    out_nhwc = pl.pallas_call(
        _residual_block_kernel,
        out_shape=jax.ShapeDtypeStruct((N, H, W, C), jnp.float32),
        grid_spec=pltpu.PrefetchScalarGridSpec(
            num_scalar_prefetch=0,
            grid=(N,),
            in_specs=[
                pl.BlockSpec((1, H, W, C), lambda n: (n, 0, 0, 0)),
                pl.BlockSpec((3, 3 * C, C), lambda n: (0, 0, 0)),
                pl.BlockSpec((3, 3 * C, C), lambda n: (0, 0, 0)),
                pl.BlockSpec((1, C), lambda n: (0, 0)),
                pl.BlockSpec((1, C), lambda n: (0, 0)),
                pl.BlockSpec((1, C), lambda n: (0, 0)),
                pl.BlockSpec((1, C), lambda n: (0, 0)),
            ],
            out_specs=pl.BlockSpec((1, H, W, C), lambda n: (n, 0, 0, 0)),
            scratch_shapes=[pltpu.VMEM((H + 2, W + 2, C), jnp.float32)],
        ),
        compiler_params=pltpu.CompilerParams(
            dimension_semantics=("parallel",),
            vmem_limit_bytes=vmem_limit),
    )(x, w1s, w2s, g1r, b1r, g2r, b2r)

    return jnp.transpose(out_nhwc, (0, 3, 1, 2))                     # NCHW


def _reference(x, w1, w2, g1, b1, g2, b2):
    """Pure-JAX reference mirroring the PyTorch module (NCHW)."""
    def conv(h, w):
        return jax.lax.conv_general_dilated(
            h, w, window_strides=(1, 1), padding=((1, 1), (1, 1)),
            dimension_numbers=("NCHW", "OIHW", "NCHW"))

    def inorm(h, g, b):
        mean = h.mean(axis=(2, 3), keepdims=True)
        var = ((h - mean) ** 2).mean(axis=(2, 3), keepdims=True)
        return ((h - mean) * jax.lax.rsqrt(var + EPS)
                * g.reshape(1, -1, 1, 1) + b.reshape(1, -1, 1, 1))

    h = conv(x, w1)
    h = inorm(h, g1, b1)
    h = jnp.maximum(h, 0.0)
    h = conv(h, w2)
    h = inorm(h, g2, b2)
    return x + h


if __name__ == "__main__":
    N, C, H, W = 2, 4, 16, 16            # dim_in == dim_out == 4
    key = jax.random.PRNGKey(0)
    kx, k1, k2, kg1, kb1, kg2, kb2 = jax.random.split(key, 7)

    x = jax.random.normal(kx, (N, C, H, W), jnp.float32)
    w1 = jax.random.normal(k1, (C, C, 3, 3), jnp.float32) * 0.1   # OIHW
    w2 = jax.random.normal(k2, (C, C, 3, 3), jnp.float32) * 0.1
    g1 = 1.0 + 0.1 * jax.random.normal(kg1, (C,), jnp.float32)
    b1 = 0.1 * jax.random.normal(kb1, (C,), jnp.float32)
    g2 = 1.0 + 0.1 * jax.random.normal(kg2, (C,), jnp.float32)
    b2 = 0.1 * jax.random.normal(kb2, (C,), jnp.float32)

    out = jax.block_until_ready(residual_block(x, w1, w2, g1, b1, g2, b2))
    ref = jax.block_until_ready(_reference(x, w1, w2, g1, b1, g2, b2))

    assert out.shape == (N, C, H, W)
    assert jnp.max(jnp.abs(out - ref)) < 1e-4, "mismatch vs pure-JAX reference"

    print("KERNEL_OK")
</pallas_src>

<mosaic_0001>
module attributes {stable_mosaic.version = 11 : i64} {
  func.func @_residual_block_kernel(%arg0: i32, %arg1: memref<1x16x16x4xf32, #tpu.memory_space<vmem>>, %arg2: memref<3x12x4xf32, #tpu.memory_space<vmem>>, %arg3: memref<3x12x4xf32, #tpu.memory_space<vmem>>, %arg4: memref<1x4xf32, #tpu.memory_space<vmem>>, %arg5: memref<1x4xf32, #tpu.memory_space<vmem>>, %arg6: memref<1x4xf32, #tpu.memory_space<vmem>>, %arg7: memref<1x4xf32, #tpu.memory_space<vmem>>, %arg8: memref<1x16x16x4xf32, #tpu.memory_space<vmem>>, %arg9: memref<18x18x4xf32, #tpu.memory_space<vmem>>) attributes {dimension_semantics = [#tpu.dimension_semantics<parallel>], iteration_bounds = array<i64: 2>, scalar_prefetch = 0 : i64, scratch_operands = 1 : i64, tpu.core_type = #tpu.core_type<tc>, window_params = [{transform_indices = @transform_0, window_bounds = array<i64: 1, 16, 16, 4>}, {pipeline_mode = #tpu.pipeline_mode<synchronous>, transform_indices = @transform_1, window_bounds = array<i64: 3, 12, 4>}, {pipeline_mode = #tpu.pipeline_mode<synchronous>, transform_indices = @transform_2, window_bounds = array<i64: 3, 12, 4>}, {pipeline_mode = #tpu.pipeline_mode<synchronous>, transform_indices = @transform_3, window_bounds = array<i64: 1, 4>}, {pipeline_mode = #tpu.pipeline_mode<synchronous>, transform_indices = @transform_4, window_bounds = array<i64: 1, 4>}, {pipeline_mode = #tpu.pipeline_mode<synchronous>, transform_indices = @transform_5, window_bounds = array<i64: 1, 4>}, {pipeline_mode = #tpu.pipeline_mode<synchronous>, transform_indices = @transform_6, window_bounds = array<i64: 1, 4>}, {transform_indices = @transform_7, window_bounds = array<i64: 1, 16, 16, 4>}]} {
    %cst = arith.constant 0.000000e+00 : f32
    %0 = vector.broadcast %cst : f32 to vector<1x18x4xf32>
    %c0 = arith.constant 0 : index
    %c0_0 = arith.constant 0 : index
    %c0_1 = arith.constant 0 : index
    %1 = vector.load %arg9[%c0, %c0_0, %c0_1] : memref<18x18x4xf32, #tpu.memory_space<vmem>>, vector<1x18x4xf32>
    tpu.vector_store %arg9[%c0, %c0_0, %c0_1], %0 {strides = array<i32>} : memref<18x18x4xf32, #tpu.memory_space<vmem>>, vector<1x18x4xf32>,
    %cst_2 = arith.constant 0.000000e+00 : f32
    %2 = vector.broadcast %cst_2 : f32 to vector<1x18x4xf32>
    %c17 = arith.constant 17 : index
    %c0_3 = arith.constant 0 : index
    %c0_4 = arith.constant 0 : index
    %3 = vector.load %arg9[%c17, %c0_3, %c0_4] : memref<18x18x4xf32, #tpu.memory_space<vmem>>, vector<1x18x4xf32>
    tpu.vector_store %arg9[%c17, %c0_3, %c0_4], %2 {strides = array<i32>} : memref<18x18x4xf32, #tpu.memory_space<vmem>>, vector<1x18x4xf32>,
    %cst_5 = arith.constant 0.000000e+00 : f32
    %4 = vector.broadcast %cst_5 : f32 to vector<16x1x4xf32>
    %c1 = arith.constant 1 : index
    %c0_6 = arith.constant 0 : index
    %c0_7 = arith.constant 0 : index
    %5 = vector.load %arg9[%c1, %c0_6, %c0_7] : memref<18x18x4xf32, #tpu.memory_space<vmem>>, vector<16x1x4xf32>
    tpu.vector_store %arg9[%c1, %c0_6, %c0_7], %4 {strides = array<i32>} : memref<18x18x4xf32, #tpu.memory_space<vmem>>, vector<16x1x4xf32>,
    %cst_8 = arith.constant 0.000000e+00 : f32
    %6 = vector.broadcast %cst_8 : f32 to vector<16x1x4xf32>
    %c1_9 = arith.constant 1 : index
    %c17_10 = arith.constant 17 : index
    %c0_11 = arith.constant 0 : index
    %7 = vector.load %arg9[%c1_9, %c17_10, %c0_11] : memref<18x18x4xf32, #tpu.memory_space<vmem>>, vector<16x1x4xf32>
    tpu.vector_store %arg9[%c1_9, %c17_10, %c0_11], %6 {strides = array<i32>} : memref<18x18x4xf32, #tpu.memory_space<vmem>>, vector<16x1x4xf32>,
    %c0_12 = arith.constant 0 : index
    %c0_13 = arith.constant 0 : index
    %c0_14 = arith.constant 0 : index
    %c0_15 = arith.constant 0 : index
    %8 = vector.load %arg1[%c0_12, %c0_13, %c0_14, %c0_15] : memref<1x16x16x4xf32, #tpu.memory_space<vmem>>, vector<1x16x16x4xf32>
    %9 = vector.shape_cast %8 : vector<1x16x16x4xf32> to vector<16x16x4xf32>
    %c1_16 = arith.constant 1 : index
    %c1_17 = arith.constant 1 : index
    %c0_18 = arith.constant 0 : index
    %10 = vector.load %arg9[%c1_16, %c1_17, %c0_18] : memref<18x18x4xf32, #tpu.memory_space<vmem>>, vector<16x16x4xf32>
    tpu.vector_store %arg9[%c1_16, %c1_17, %c0_18], %9 {strides = array<i32>} : memref<18x18x4xf32, #tpu.memory_space<vmem>>, vector<16x16x4xf32>,
    %c0_19 = arith.constant 0 : index
    %c0_20 = arith.constant 0 : index
    %c0_21 = arith.constant 0 : index
    %11 = vector.load %arg9[%c0_19, %c0_20, %c0_21] : memref<18x18x4xf32, #tpu.memory_space<vmem>>, vector<18x18x4xf32>
    %12 = vector.extract_strided_slice %11 {offsets = [0, 0, 0], sizes = [16, 18, 4], strides = [1, 1, 1]} : vector<18x18x4xf32> to vector<16x18x4xf32>
    %13 = vector.extract_strided_slice %12 {offsets = [0, 0, 0], sizes = [16, 16, 4], strides = [1, 1, 1]} : vector<16x18x4xf32> to vector<16x16x4xf32>
    %14 = vector.extract_strided_slice %12 {offsets = [0, 1, 0], sizes = [16, 16, 4], strides = [1, 1, 1]} : vector<16x18x4xf32> to vector<16x16x4xf32>
    %15 = vector.extract_strided_slice %12 {offsets = [0, 2, 0], sizes = [16, 16, 4], strides = [1, 1, 1]} : vector<16x18x4xf32> to vector<16x16x4xf32>
    %16 = tpu.concatenate %13, %14, %15 in 2 : vector<16x16x4xf32>, vector<16x16x4xf32>, vector<16x16x4xf32> -> vector<16x16x12xf32>
    %17 = vector.shape_cast %16 : vector<16x16x12xf32> to vector<256x12xf32>
    %c0_22 = arith.constant 0 : index
    %c0_23 = arith.constant 0 : index
    %c0_24 = arith.constant 0 : index
    %18 = vector.load %arg2[%c0_22, %c0_23, %c0_24] : memref<3x12x4xf32, #tpu.memory_space<vmem>>, vector<1x12x4xf32>
    %19 = vector.shape_cast %18 : vector<1x12x4xf32> to vector<12x4xf32>
    %cst_25 = arith.constant dense<0.000000e+00> : vector<256x4xf32>
    %20 = tpu.matmul %17, %19, %cst_25 {dimension_numbers = #tpu.dot_dimension_numbers<[1], [0], [0], [1], [0, 0, 1, 1], [], []>} : vector<256x12xf32>, vector<12x4xf32>, vector<256x4xf32> -> vector<256x4xf32>
    %21 = vector.extract_strided_slice %11 {offsets = [1, 0, 0], sizes = [16, 18, 4], strides = [1, 1, 1]} : vector<18x18x4xf32> to vector<16x18x4xf32>
    %22 = vector.extract_strided_slice %21 {offsets = [0, 0, 0], sizes = [16, 16, 4], strides = [1, 1, 1]} : vector<16x18x4xf32> to vector<16x16x4xf32>
    %23 = vector.extract_strided_slice %21 {offsets = [0, 1, 0], sizes = [16, 16, 4], strides = [1, 1, 1]} : vector<16x18x4xf32> to vector<16x16x4xf32>
    %24 = vector.extract_strided_slice %21 {offsets = [0, 2, 0], sizes = [16, 16, 4], strides = [1, 1, 1]} : vector<16x18x4xf32> to vector<16x16x4xf32>
    %25 = tpu.concatenate %22, %23, %24 in 2 : vector<16x16x4xf32>, vector<16x16x4xf32>, vector<16x16x4xf32> -> vector<16x16x12xf32>
    %26 = vector.shape_cast %25 : vector<16x16x12xf32> to vector<256x12xf32>
    %c1_26 = arith.constant 1 : index
    %c0_27 = arith.constant 0 : index
    %c0_28 = arith.constant 0 : index
    %27 = vector.load %arg2[%c1_26, %c0_27, %c0_28] : memref<3x12x4xf32, #tpu.memory_space<vmem>>, vector<1x12x4xf32>
    %28 = vector.shape_cast %27 : vector<1x12x4xf32> to vector<12x4xf32>
    %cst_29 = arith.constant dense<0.000000e+00> : vector<256x4xf32>
    %29 = tpu.matmul %26, %28, %cst_29 {dimension_numbers = #tpu.dot_dimension_numbers<[1], [0], [0], [1], [0, 0, 1, 1], [], []>} : vector<256x12xf32>, vector<12x4xf32>, vector<256x4xf32> -> vector<256x4xf32>
    %30 = arith.addf %20, %29 : vector<256x4xf32>
    %31 = vector.extract_strided_slice %11 {offsets = [2, 0, 0], sizes = [16, 18, 4], strides = [1, 1, 1]} : vector<18x18x4xf32> to vector<16x18x4xf32>
    %32 = vector.extract_strided_slice %31 {offsets = [0, 0, 0], sizes = [16, 16, 4], strides = [1, 1, 1]} : vector<16x18x4xf32> to vector<16x16x4xf32>
    %33 = vector.extract_strided_slice %31 {offsets = [0, 1, 0], sizes = [16, 16, 4], strides = [1, 1, 1]} : vector<16x18x4xf32> to vector<16x16x4xf32>
    %34 = vector.extract_strided_slice %31 {offsets = [0, 2, 0], sizes = [16, 16, 4], strides = [1, 1, 1]} : vector<16x18x4xf32> to vector<16x16x4xf32>
    %35 = tpu.concatenate %32, %33, %34 in 2 : vector<16x16x4xf32>, vector<16x16x4xf32>, vector<16x16x4xf32> -> vector<16x16x12xf32>
    %36 = vector.shape_cast %35 : vector<16x16x12xf32> to vector<256x12xf32>
    %c2 = arith.constant 2 : index
    %c0_30 = arith.constant 0 : index
    %c0_31 = arith.constant 0 : index
    %37 = vector.load %arg2[%c2, %c0_30, %c0_31] : memref<3x12x4xf32, #tpu.memory_space<vmem>>, vector<1x12x4xf32>
    %38 = vector.shape_cast %37 : vector<1x12x4xf32> to vector<12x4xf32>
    %cst_32 = arith.constant dense<0.000000e+00> : vector<256x4xf32>
    %39 = tpu.matmul %36, %38, %cst_32 {dimension_numbers = #tpu.dot_dimension_numbers<[1], [0], [0], [1], [0, 0, 1, 1], [], []>} : vector<256x12xf32>, vector<12x4xf32>, vector<256x4xf32> -> vector<256x4xf32>
    %40 = arith.addf %30, %39 : vector<256x4xf32>
    %cst_33 = arith.constant dense<0.000000e+00> : vector<4xf32>
    %41 = vector.multi_reduction <add>, %40, %cst_33 [0] : vector<256x4xf32> to vector<4xf32>
    %42 = vector.shape_cast %41 : vector<4xf32> to vector<1x4xf32>
    %43 = arith.mulf %40, %40 : vector<256x4xf32>
    %cst_34 = arith.constant dense<0.000000e+00> : vector<4xf32>
    %44 = vector.multi_reduction <add>, %43, %cst_34 [0] : vector<256x4xf32> to vector<4xf32>
    %45 = vector.shape_cast %44 : vector<4xf32> to vector<1x4xf32>
    %cst_35 = arith.constant 3.906250e-03 : f32
    %46 = vector.broadcast %cst_35 : f32 to vector<1x4xf32>
    %47 = arith.mulf %42, %46 : vector<1x4xf32>
    %cst_36 = arith.constant 3.906250e-03 : f32
    %48 = vector.broadcast %cst_36 : f32 to vector<1x4xf32>
    %49 = arith.mulf %45, %48 : vector<1x4xf32>
    %50 = arith.mulf %47, %47 : vector<1x4xf32>
    %51 = arith.subf %49, %50 : vector<1x4xf32>
    %cst_37 = arith.constant 9.99999974E-6 : f32
    %52 = vector.broadcast %cst_37 : f32 to vector<1x4xf32>
    %53 = arith.addf %51, %52 : vector<1x4xf32>
    %54 = math.rsqrt %53 : vector<1x4xf32>
    %55 = vector.broadcast %47 : vector<1x4xf32> to vector<256x4xf32>
    %56 = arith.subf %40, %55 : vector<256x4xf32>
    %c0_38 = arith.constant 0 : index
    %c0_39 = arith.constant 0 : index
    %57 = vector.load %arg4[%c0_38, %c0_39] : memref<1x4xf32, #tpu.memory_space<vmem>>, vector<1x4xf32>
    %58 = arith.mulf %54, %57 : vector<1x4xf32>
    %59 = vector.broadcast %58 : vector<1x4xf32> to vector<256x4xf32>
    %60 = arith.mulf %56, %59 : vector<256x4xf32>
    %c0_40 = arith.constant 0 : index
    %c0_41 = arith.constant 0 : index
    %61 = vector.load %arg5[%c0_40, %c0_41] : memref<1x4xf32, #tpu.memory_space<vmem>>, vector<1x4xf32>
    %62 = vector.broadcast %61 : vector<1x4xf32> to vector<256x4xf32>
    %63 = arith.addf %60, %62 : vector<256x4xf32>
    %cst_42 = arith.constant 0.000000e+00 : f32
    %64 = vector.broadcast %cst_42 : f32 to vector<256x4xf32>
    %65 = arith.maximumf %63, %64 : vector<256x4xf32>
    %66 = vector.shape_cast %65 : vector<256x4xf32> to vector<16x16x4xf32>
    %c1_43 = arith.constant 1 : index
    %c1_44 = arith.constant 1 : index
    %c0_45 = arith.constant 0 : index
    %67 = vector.load %arg9[%c1_43, %c1_44, %c0_45] : memref<18x18x4xf32, #tpu.memory_space<vmem>>, vector<16x16x4xf32>
    tpu.vector_store %arg9[%c1_43, %c1_44, %c0_45], %66 {strides = array<i32>} : memref<18x18x4xf32, #tpu.memory_space<vmem>>, vector<16x16x4xf32>,
    %c0_46 = arith.constant 0 : index
    %c0_47 = arith.constant 0 : index
    %c0_48 = arith.constant 0 : index
    %68 = vector.load %arg9[%c0_46, %c0_47, %c0_48] : memref<18x18x4xf32, #tpu.memory_space<vmem>>, vector<18x18x4xf32>
    %69 = vector.extract_strided_slice %68 {offsets = [0, 0, 0], sizes = [16, 18, 4], strides = [1, 1, 1]} : vector<18x18x4xf32> to vector<16x18x4xf32>
    %70 = vector.extract_strided_slice %69 {offsets = [0, 0, 0], sizes = [16, 16, 4], strides = [1, 1, 1]} : vector<16x18x4xf32> to vector<16x16x4xf32>
    %71 = vector.extract_strided_slice %69 {offsets = [0, 1, 0], sizes = [16, 16, 4], strides = [1, 1, 1]} : vector<16x18x4xf32> to vector<16x16x4xf32>
    %72 = vector.extract_strided_slice %69 {offsets = [0, 2, 0], sizes = [16, 16, 4], strides = [1, 1, 1]} : vector<16x18x4xf32> to vector<16x16x4xf32>
    %73 = tpu.concatenate %70, %71, %72 in 2 : vector<16x16x4xf32>, vector<16x16x4xf32>, vector<16x16x4xf32> -> vector<16x16x12xf32>
    %74 = vector.shape_cast %73 : vector<16x16x12xf32> to vector<256x12xf32>
    %c0_49 = arith.constant 0 : index
    %c0_50 = arith.constant 0 : index
    %c0_51 = arith.constant 0 : index
    %75 = vector.load %arg3[%c0_49, %c0_50, %c0_51] : memref<3x12x4xf32, #tpu.memory_space<vmem>>, vector<1x12x4xf32>
    %76 = vector.shape_cast %75 : vector<1x12x4xf32> to vector<12x4xf32>
    %cst_52 = arith.constant dense<0.000000e+00> : vector<256x4xf32>
    %77 = tpu.matmul %74, %76, %cst_52 {dimension_numbers = #tpu.dot_dimension_numbers<[1], [0], [0], [1], [0, 0, 1, 1], [], []>} : vector<256x12xf32>, vector<12x4xf32>, vector<256x4xf32> -> vector<256x4xf32>
    %78 = vector.extract_strided_slice %68 {offsets = [1, 0, 0], sizes = [16, 18, 4], strides = [1, 1, 1]} : vector<18x18x4xf32> to vector<16x18x4xf32>
    %79 = vector.extract_strided_slice %78 {offsets = [0, 0, 0], sizes = [16, 16, 4], strides = [1, 1, 1]} : vector<16x18x4xf32> to vector<16x16x4xf32>
    %80 = vector.extract_strided_slice %78 {offsets = [0, 1, 0], sizes = [16, 16, 4], strides = [1, 1, 1]} : vector<16x18x4xf32> to vector<16x16x4xf32>
    %81 = vector.extract_strided_slice %78 {offsets = [0, 2, 0], sizes = [16, 16, 4], strides = [1, 1, 1]} : vector<16x18x4xf32> to vector<16x16x4xf32>
    %82 = tpu.concatenate %79, %80, %81 in 2 : vector<16x16x4xf32>, vector<16x16x4xf32>, vector<16x16x4xf32> -> vector<16x16x12xf32>
    %83 = vector.shape_cast %82 : vector<16x16x12xf32> to vector<256x12xf32>
    %c1_53 = arith.constant 1 : index
    %c0_54 = arith.constant 0 : index
    %c0_55 = arith.constant 0 : index
    %84 = vector.load %arg3[%c1_53, %c0_54, %c0_55] : memref<3x12x4xf32, #tpu.memory_space<vmem>>, vector<1x12x4xf32>
    %85 = vector.shape_cast %84 : vector<1x12x4xf32> to vector<12x4xf32>
    %cst_56 = arith.constant dense<0.000000e+00> : vector<256x4xf32>
    %86 = tpu.matmul %83, %85, %cst_56 {dimension_numbers = #tpu.dot_dimension_numbers<[1], [0], [0], [1], [0, 0, 1, 1], [], []>} : vector<256x12xf32>, vector<12x4xf32>, vector<256x4xf32> -> vector<256x4xf32>
    %87 = arith.addf %77, %86 : vector<256x4xf32>
    %88 = vector.extract_strided_slice %68 {offsets = [2, 0, 0], sizes = [16, 18, 4], strides = [1, 1, 1]} : vector<18x18x4xf32> to vector<16x18x4xf32>
    %89 = vector.extract_strided_slice %88 {offsets = [0, 0, 0], sizes = [16, 16, 4], strides = [1, 1, 1]} : vector<16x18x4xf32> to vector<16x16x4xf32>
    %90 = vector.extract_strided_slice %88 {offsets = [0, 1, 0], sizes = [16, 16, 4], strides = [1, 1, 1]} : vector<16x18x4xf32> to vector<16x16x4xf32>
    %91 = vector.extract_strided_slice %88 {offsets = [0, 2, 0], sizes = [16, 16, 4], strides = [1, 1, 1]} : vector<16x18x4xf32> to vector<16x16x4xf32>
    %92 = tpu.concatenate %89, %90, %91 in 2 : vector<16x16x4xf32>, vector<16x16x4xf32>, vector<16x16x4xf32> -> vector<16x16x12xf32>
    %93 = vector.shape_cast %92 : vector<16x16x12xf32> to vector<256x12xf32>
    %c2_57 = arith.constant 2 : index
    %c0_58 = arith.constant 0 : index
    %c0_59 = arith.constant 0 : index
    %94 = vector.load %arg3[%c2_57, %c0_58, %c0_59] : memref<3x12x4xf32, #tpu.memory_space<vmem>>, vector<1x12x4xf32>
    %95 = vector.shape_cast %94 : vector<1x12x4xf32> to vector<12x4xf32>
    %cst_60 = arith.constant dense<0.000000e+00> : vector<256x4xf32>
    %96 = tpu.matmul %93, %95, %cst_60 {dimension_numbers = #tpu.dot_dimension_numbers<[1], [0], [0], [1], [0, 0, 1, 1], [], []>} : vector<256x12xf32>, vector<12x4xf32>, vector<256x4xf32> -> vector<256x4xf32>
    %97 = arith.addf %87, %96 : vector<256x4xf32>
    %cst_61 = arith.constant dense<0.000000e+00> : vector<4xf32>
    %98 = vector.multi_reduction <add>, %97, %cst_61 [0] : vector<256x4xf32> to vector<4xf32>
    %99 = vector.shape_cast %98 : vector<4xf32> to vector<1x4xf32>
    %100 = arith.mulf %97, %97 : vector<256x4xf32>
    %cst_62 = arith.constant dense<0.000000e+00> : vector<4xf32>
    %101 = vector.multi_reduction <add>, %100, %cst_62 [0] : vector<256x4xf32> to vector<4xf32>
    %102 = vector.shape_cast %101 : vector<4xf32> to vector<1x4xf32>
    %cst_63 = arith.constant 3.906250e-03 : f32
    %103 = vector.broadcast %cst_63 : f32 to vector<1x4xf32>
    %104 = arith.mulf %99, %103 : vector<1x4xf32>
    %cst_64 = arith.constant 3.906250e-03 : f32
    %105 = vector.broadcast %cst_64 : f32 to vector<1x4xf32>
    %106 = arith.mulf %102, %105 : vector<1x4xf32>
    %107 = arith.mulf %104, %104 : vector<1x4xf32>
    %108 = arith.subf %106, %107 : vector<1x4xf32>
    %cst_65 = arith.constant 9.99999974E-6 : f32
    %109 = vector.broadcast %cst_65 : f32 to vector<1x4xf32>
    %110 = arith.addf %108, %109 : vector<1x4xf32>
    %111 = math.rsqrt %110 : vector<1x4xf32>
    %112 = vector.broadcast %104 : vector<1x4xf32> to vector<256x4xf32>
    %113 = arith.subf %97, %112 : vector<256x4xf32>
    %c0_66 = arith.constant 0 : index
    %c0_67 = arith.constant 0 : index
    %114 = vector.load %arg6[%c0_66, %c0_67] : memref<1x4xf32, #tpu.memory_space<vmem>>, vector<1x4xf32>
    %115 = arith.mulf %111, %114 : vector<1x4xf32>
    %116 = vector.broadcast %115 : vector<1x4xf32> to vector<256x4xf32>
    %117 = arith.mulf %113, %116 : vector<256x4xf32>
    %c0_68 = arith.constant 0 : index
    %c0_69 = arith.constant 0 : index
    %118 = vector.load %arg7[%c0_68, %c0_69] : memref<1x4xf32, #tpu.memory_space<vmem>>, vector<1x4xf32>
    %119 = vector.broadcast %118 : vector<1x4xf32> to vector<256x4xf32>
    %120 = arith.addf %117, %119 : vector<256x4xf32>
    %121 = vector.shape_cast %120 : vector<256x4xf32> to vector<16x16x4xf32>
    %122 = arith.addf %9, %121 : vector<16x16x4xf32>
    %123 = vector.shape_cast %122 : vector<16x16x4xf32> to vector<1x16x16x4xf32>
    %c0_70 = arith.constant 0 : index
    %c0_71 = arith.constant 0 : index
    %c0_72 = arith.constant 0 : index
    %c0_73 = arith.constant 0 : index
    %124 = vector.load %arg8[%c0_70, %c0_71, %c0_72, %c0_73] : memref<1x16x16x4xf32, #tpu.memory_space<vmem>>, vector<1x16x16x4xf32>
    tpu.vector_store %arg8[%c0_70, %c0_71, %c0_72, %c0_73], %123 {strides = array<i32>} : memref<1x16x16x4xf32, #tpu.memory_space<vmem>>, vector<1x16x16x4xf32>,
    return
  }
  func.func @transform_0(%arg0: i32) -> (i32, i32, i32, i32) {
    %c0_i32 = arith.constant 0 : i32
    %c0_i32_0 = arith.constant 0 : i32
    %c0_i32_1 = arith.constant 0 : i32
    %c0_i32_2 = arith.constant 0 : i32
    return %arg0, %c0_i32, %c0_i32_0, %c0_i32_1 : i32, i32, i32, i32
  }
  func.func @transform_1(%arg0: i32) -> (i32, i32, i32) {
    %c0_i32 = arith.constant 0 : i32
    %c0_i32_0 = arith.constant 0 : i32
    %c0_i32_1 = arith.constant 0 : i32
    %c0_i32_2 = arith.constant 0 : i32
    return %c0_i32, %c0_i32_0, %c0_i32_1 : i32, i32, i32
  }
  func.func @transform_2(%arg0: i32) -> (i32, i32, i32) {
    %c0_i32 = arith.constant 0 : i32
    %c0_i32_0 = arith.constant 0 : i32
    %c0_i32_1 = arith.constant 0 : i32
    %c0_i32_2 = arith.constant 0 : i32
    return %c0_i32, %c0_i32_0, %c0_i32_1 : i32, i32, i32
  }
  func.func @transform_3(%arg0: i32) -> (i32, i32) {
    %c0_i32 = arith.constant 0 : i32
    %c0_i32_0 = arith.constant 0 : i32
    %c0_i32_1 = arith.constant 0 : i32
    return %c0_i32, %c0_i32_0 : i32, i32
  }
  func.func @transform_4(%arg0: i32) -> (i32, i32) {
    %c0_i32 = arith.constant 0 : i32
    %c0_i32_0 = arith.constant 0 : i32
    %c0_i32_1 = arith.constant 0 : i32
    return %c0_i32, %c0_i32_0 : i32, i32
  }
  func.func @transform_5(%arg0: i32) -> (i32, i32) {
    %c0_i32 = arith.constant 0 : i32
    %c0_i32_0 = arith.constant 0 : i32
    %c0_i32_1 = arith.constant 0 : i32
    return %c0_i32, %c0_i32_0 : i32, i32
  }
  func.func @transform_6(%arg0: i32) -> (i32, i32) {
    %c0_i32 = arith.constant 0 : i32
    %c0_i32_0 = arith.constant 0 : i32
    %c0_i32_1 = arith.constant 0 : i32
    return %c0_i32, %c0_i32_0 : i32, i32
  }
  func.func @transform_7(%arg0: i32) -> (i32, i32, i32, i32) {
    %c0_i32 = arith.constant 0 : i32
    %c0_i32_0 = arith.constant 0 : i32
    %c0_i32_1 = arith.constant 0 : i32
    %c0_i32_2 = arith.constant 0 : i32
    return %arg0, %c0_i32, %c0_i32_0, %c0_i32_1 : i32, i32, i32, i32
  }
}

</mosaic_0001>

<bundles_post_ra>
// kernel: tpu_custom_call.1
= control target key start
LH: loop header
LB: loop body
LE: loop exit
PB: predicated region body
PF: predicated region fallthrough
CT: control target
= control target key end

     0   :  { %s4932_s24 = smov 0   ;;  %s7348_s0 = inlined_call_operand.vmem [shape: f32[2,16,16,4], index: 0, kind: input, shape index: {}]   ;;  %s7349_s1 = inlined_call_operand.vmem [shape: f32[3,12,4], index: 1, kind: input, shape index: {}]   ;;  %s7350_s2 = inlined_call_operand.vmem [shape: f32[3,12,4], index: 2, kind: input, shape index: {}]   ;;  %s7351_s3 = inlined_call_operand.vmem [shape: f32[1,4], index: 3, kind: input, shape index: {}]   ;;  %s7352_s4 = inlined_call_operand.vmem [shape: f32[1,4], index: 4, kind: input, shape index: {}]   ;;  %s7353_s5 = inlined_call_operand.vmem [shape: f32[1,4], index: 5, kind: input, shape index: {}]   ;;  %s7354_s6 = inlined_call_operand.vmem [shape: f32[1,4], index: 6, kind: input, shape index: {}]   ;;  %s7355_s7 = inlined_call_operand.vmem [shape: f32[2,16,16,4], index: 7, kind: output, shape index: {}]  }
   0x1 LB: > { %s3960_s25 = sadd.s32 4294967295, %s4886_s24   ;;  %p3964_p0 = scmp.ge.s32.totalorder %s4886_s24, 1  ;;  %s4886_s24 = sphi %s4932_s24, %s17_s24  }
   0x2   : > { %p237_p1 = scmp.lt.s32.totalorder %s4886_s24, 3 }
   0x4   : > { %p238_p2 = pnand %p3964_p0, %p237_p1 }
   0x6   : > { %241 = sbr.rel (%p238_p2) target bundleno = 1357 (0x54d), region = 48 }
   0xd   : > { %p4942_p3 = scmp.lt.s32.totalorder %s3960_s25, 1  ;;  %vm279_vm0 = vcmask 31744   ;;  %vm289_vm1 = vcmask 24576   ;;  %v4888_v0 = vmov 0.0   ;;  %vm282_vm2 = vcmask 25600   ;;  %v3969_v7 = vld [vmem:[%s7349_s1 + $0x10] sm:$0xff] }
   0xe   : > { %290 = vst.msk [vmem:[#allocation2 + $0x18] sm:$0x1] %vm289_vm1, %v4888_v0  ;;  %291 = vst.msk [vmem:[#allocation2 + $0x30] sm:$0x1] %vm289_vm1, %v4888_v0  ;;  %v3970_v8 = vld [vmem:[%s7349_s1 + $0x18] sm:$0xf] }
   0xf   : > { %280 = vst.msk [vmem:[#allocation2] sm:$0xff] %vm279_vm0, %v4888_v0  ;;  %281 = vst.msk [vmem:[#allocation2 + $0x8] sm:$0xff] %vm279_vm0, %v4888_v0  ;;  %s7434_s25 = smov (!%p4942_p3, %s3960_s25), 1  ;;  %vm1038_vm3 = vcmask 1043456   ;;  %v4697_v24 = vpack.c.bf16 %v3970_v8, %v3969_v7  ;;  %vm665_vm4 = vcmask 1045504   ;;  %vm488_vm5 = vcmask 1046528  }
  0x10   : > { %285 = vst.msk [vmem:[#allocation2 + $0x198] sm:$0xff] %vm279_vm0, %v4888_v0  ;;  %286 = vst.msk [vmem:[#allocation2 + $0x1a0] sm:$0xff] %vm279_vm0, %v4888_v0  ;;  %s4179_s27 = sshll.u32 %s7434_s25, 8  ;;  %vm4889_vm6 = vmmov 1   ;;  %s4890_s12 = smov 8   ;;  %vm874_vm8 = vcmask 64512  }
  0x11   : > { %292 = vst.msk [vmem:[#allocation2 + $0x48] sm:$0x1] %vm289_vm1, %v4888_v0  ;;  %293 = vst.msk [vmem:[#allocation2 + $0x60] sm:$0x1] %vm289_vm1, %v4888_v0  ;;  %s4994_s30 = scalar_lea.vmem %s7348_s0, %s4179_s27  ;;  %s4891_s13 = smov 4   ;;  %vm941_vm9 = vcmask 97280  }
  0x12   : > { %294 = vst.msk [vmem:[#allocation2 + $0x78] sm:$0x1] %vm289_vm1, %v4888_v0  ;;  %295 = vst.msk [vmem:[#allocation2 + $0x90] sm:$0x1] %vm289_vm1, %v4888_v0  ;;  %v4997_v1 = vld [vmem:[%s4994_s30] sm:$0xff]  ;;  %v5000_v2 = vld [vmem:[%s4994_s30 + $0x8] sm:$0xff]  ;;  %s7247_s26 = scalar_lea.vmem %s7355_s7, %s4179_s27 }
  0x13   : > { %296 = vst.msk [vmem:[#allocation2 + $0xa8] sm:$0x1] %vm289_vm1, %v4888_v0  ;;  %297 = vst.msk [vmem:[#allocation2 + $0xc0] sm:$0x1] %vm289_vm1, %v4888_v0  ;;  %v5003_v3 = vld [vmem:[%s4994_s30 + $0x10] sm:$0xff]  ;;  %v5010_v4 = vld [vmem:[%s4994_s30 + $0x18] sm:$0xff] }
  0x14   : > { %298 = vst.msk [vmem:[#allocation2 + $0xd8] sm:$0x1] %vm289_vm1, %v4888_v0  ;;  %299 = vst.msk [vmem:[#allocation2 + $0xf0] sm:$0x1] %vm289_vm1, %v4888_v0  ;;  %v5015_v5 = vld [vmem:[%s4994_s30 + $0x20] sm:$0xff]  ;;  %v5018_v6 = vld [vmem:[%s4994_s30 + $0x28] sm:$0xff] }
  0x15   : > { %300 = vst.msk [vmem:[#allocation2 + $0x108] sm:$0x1] %vm289_vm1, %v4888_v0  ;;  %301 = vst.msk [vmem:[#allocation2 + $0x120] sm:$0x1] %vm289_vm1, %v4888_v0  ;;  %v5033_v9 = vld [vmem:[%s4994_s30 + $0x30] sm:$0xff]  ;;  %v5036_v10 = vld [vmem:[%s4994_s30 + $0x38] sm:$0xff] }
  0x16   : > { %302 = vst.msk [vmem:[#allocation2 + $0x138] sm:$0x1] %vm289_vm1, %v4888_v0  ;;  %303 = vst.msk [vmem:[#allocation2 + $0x150] sm:$0x1] %vm289_vm1, %v4888_v0  ;;  %v5039_v11 = vld [vmem:[%s4994_s30 + $0x40] sm:$0xff]  ;;  %v5046_v12 = vld [vmem:[%s4994_s30 + $0x48] sm:$0xff] }
  0x17   : > { %304 = vst.msk [vmem:[#allocation2 + $0x168] sm:$0x1] %vm289_vm1, %v4888_v0  ;;  %305 = vst.msk [vmem:[#allocation2 + $0x180] sm:$0x1] %vm289_vm1, %v4888_v0  ;;  %v5051_v13 = vld [vmem:[%s4994_s30 + $0x50] sm:$0xff]  ;;  %v5054_v14 = vld [vmem:[%s4994_s30 + $0x58] sm:$0xff] }
  0x18   : > { %306 = vst.msk [vmem:[#allocation2 + $0x29] sm:$0x1] %vm289_vm1, %v4888_v0  ;;  %307 = vst.msk [vmem:[#allocation2 + $0x41] sm:$0x1] %vm289_vm1, %v4888_v0  ;;  %v5063_v15 = vld [vmem:[%s4994_s30 + $0x60] sm:$0xff]  ;;  %v5066_v16 = vld [vmem:[%s4994_s30 + $0x68] sm:$0xff] }
  0x19   : > { %308 = vst.msk [vmem:[#allocation2 + $0x59] sm:$0x1] %vm289_vm1, %v4888_v0  ;;  %309 = vst.msk [vmem:[#allocation2 + $0x71] sm:$0x1] %vm289_vm1, %v4888_v0  ;;  %v5069_v17 = vld [vmem:[%s4994_s30 + $0x70] sm:$0xff]  ;;  %v5076_v18 = vld [vmem:[%s4994_s30 + $0x78] sm:$0xff] }
  0x1a   : > { %310 = vst.msk [vmem:[#allocation2 + $0x89] sm:$0x1] %vm289_vm1, %v4888_v0  ;;  %311 = vst.msk [vmem:[#allocation2 + $0xa1] sm:$0x1] %vm289_vm1, %v4888_v0  ;;  %v5081_v19 = vld [vmem:[%s4994_s30 + $0x80] sm:$0xff]  ;;  %v5084_v20 = vld [vmem:[%s4994_s30 + $0x88] sm:$0xff] }
  0x1b   : > { %312 = vst.msk [vmem:[#allocation2 + $0xb9] sm:$0x1] %vm289_vm1, %v4888_v0  ;;  %313 = vst.msk [vmem:[#allocation2 + $0xd1] sm:$0x1] %vm289_vm1, %v4888_v0  ;;  %v5093_v21 = vld [vmem:[%s4994_s30 + $0x90] sm:$0xff]  ;;  %v5096_v22 = vld [vmem:[%s4994_s30 + $0x98] sm:$0xff] }
  0x1c   : > { %314 = vst.msk [vmem:[#allocation2 + $0xe9] sm:$0x1] %vm289_vm1, %v4888_v0  ;;  %315 = vst.msk [vmem:[#allocation2 + $0x101] sm:$0x1] %vm289_vm1, %v4888_v0  ;;  %v5099_v23 = vld [vmem:[%s4994_s30 + $0xa0] sm:$0xff]  ;;  %v5106_v25 = vld [vmem:[%s4994_s30 + $0xa8] sm:$0xff] }
  0x1d   : > { %316 = vst.msk [vmem:[#allocation2 + $0x119] sm:$0x1] %vm289_vm1, %v4888_v0  ;;  %317 = vst.msk [vmem:[#allocation2 + $0x131] sm:$0x1] %vm289_vm1, %v4888_v0  ;;  %v5111_v26 = vld [vmem:[%s4994_s30 + $0xb0] sm:$0xff]  ;;  %v5114_v27 = vld [vmem:[%s4994_s30 + $0xb8] sm:$0xff] }
  0x1e   : > { %318 = vst.msk [vmem:[#allocation2 + $0x149] sm:$0x1] %vm289_vm1, %v4888_v0  ;;  %319 = vst.msk [vmem:[#allocation2 + $0x161] sm:$0x1] %vm289_vm1, %v4888_v0  ;;  %v5168_v61 = vld [vmem:[%s4994_s30 + $0xc0] sm:$0xff]  ;;  %v5171_v62 = vld [vmem:[%s4994_s30 + $0xc8] sm:$0xff] }
  0x1f   : > { %320 = vst.msk [vmem:[#allocation2 + $0x179] sm:$0x1] %vm289_vm1, %v4888_v0  ;;  %321 = vst.msk [vmem:[#allocation2 + $0x191] sm:$0x1] %vm289_vm1, %v4888_v0  ;;  %v5178_v63 = vld [vmem:[%s4994_s30 + $0xd0] sm:$0xff]  ;;  %v5184_v7 = vld [vmem:[%s4994_s30 + $0xe0] sm:$0xff] }
  0x20   : > { %354 = vst.msk [vmem:[#allocation2 + $0x19] sm:$0xff] %vm279_vm0, %v4997_v1  ;;  %355 = vst.msk [vmem:[#allocation2 + $0x21] sm:$0xff] %vm279_vm0, %v5000_v2 }
  0x21   : > { %356 = vst.msk [vmem:[#allocation2 + $0x31] sm:$0xff] %vm279_vm0, %v5003_v3  ;;  %357 = vst.msk [vmem:[#allocation2 + $0x39] sm:$0xff] %vm279_vm0, %v5010_v4 }
  0x22   : > { %283 = vst.msk [vmem:[#allocation2 + $0x10] sm:$0x3] %vm282_vm2, %v4888_v0  ;;  %287 = vst.msk [vmem:[#allocation2 + $0x1a8] sm:$0x3] %vm282_vm2, %v4888_v0  ;;  %v5181_v0 = vld [vmem:[%s4994_s30 + $0xd8] sm:$0xff] }
  0x23   : > { %358 = vst.msk [vmem:[#allocation2 + $0x49] sm:$0xff] %vm279_vm0, %v5015_v5  ;;  %359 = vst.msk [vmem:[#allocation2 + $0x51] sm:$0xff] %vm279_vm0, %v5018_v6 }
  0x24   : > { %7382 = vst [vmem:[#allocation3_spill] sm:$0xff] %v5039_v11  ;;  %360 = vst.msk [vmem:[#allocation2 + $0x61] sm:$0xff] %vm279_vm0, %v5033_v9 }
  0x25   : > { %361 = vst.msk [vmem:[#allocation2 + $0x69] sm:$0xff] %vm279_vm0, %v5036_v10  ;;  %7383 = vst [vmem:[#allocation4_spill] sm:$0xff] %v5046_v12 }
  0x26   : > { %362 = vst.msk [vmem:[#allocation2 + $0x79] sm:$0xff] %vm279_vm0, %v5039_v11  ;;  %7384 = vst [vmem:[#allocation5_spill] sm:$0xff] %v5051_v13 }
  0x27   : > { %7385 = vst [vmem:[#allocation6_spill] sm:$0xff] %v5054_v14  ;;  %363 = vst.msk [vmem:[#allocation2 + $0x81] sm:$0xff] %vm279_vm0, %v5046_v12  ;;  %v5116_v28 = vld [vmem:[#allocation2 + $0x18] sm:$0xff]  ;;  %v5118_v29 = vld [vmem:[#allocation2 + $0x20] sm:$0xff] }
  0x28   : > { %364 = vst.msk [vmem:[#allocation2 + $0x91] sm:$0xff] %vm279_vm0, %v5051_v13  ;;  %365 = vst.msk [vmem:[#allocation2 + $0x99] sm:$0xff] %vm279_vm0, %v5054_v14  ;;  %v391_v30 = vld [vmem:[#allocation2 + $0x28] sm:$0x3]  ;;  %v671_v31 = vrot.slane %v5116_v28, 2  ;;  %v672_v32 = vrot.slane %v5118_v29, 2 }
  0x29   : > { %7386 = vst [vmem:[#allocation7_spill] sm:$0xff] %v5063_v15  ;;  %7387 = vst [vmem:[#allocation8_spill] sm:$0xff] %v5066_v16  ;;  %v494_v33 = vrot.slane %v5116_v28, 1  ;;  %v495_v34 = vrot.slane %v5118_v29, 1  ;;  %v5130_v35 = vld [vmem:[#allocation2 + $0x38] sm:$0xff]  ;;  %v674_v37 = vrot.slane %v391_v30, 2 }
  0x2a   : > { %7388 = vst [vmem:[#allocation9_spill] sm:$0xff] %v5069_v17  ;;  %366 = vst.msk [vmem:[#allocation2 + $0xa9] sm:$0xff] %vm279_vm0, %v5063_v15  ;;  %v497_v38 = vrot.slane %v391_v30, 1  ;;  %v394_v39 = vld [vmem:[#allocation2 + $0x40] sm:$0x3]  ;;  %v5137_v40 = vld [vmem:[#allocation2 + $0x30] sm:$0xff]  ;;  %v673_v41 = vsel %vm665_vm4, %v671_v31, %v672_v32 }
  0x2b   : > { %367 = vst.msk [vmem:[#allocation2 + $0xb1] sm:$0xff] %vm279_vm0, %v5066_v16  ;;  %7389 = vst [vmem:[#allocation10_spill] sm:$0xff] %v5076_v18  ;;  %v496_v42 = vsel %vm488_vm5, %v494_v33, %v495_v34  ;;  %750 = vrot.lane.b32.xlu1 %v673_v41, %s4890_s12  ;;  %v500_v43 = vrot.slane %v5130_v35, 1  ;;  %v675_v44 = vsel %vm665_vm4, %v672_v32, %v674_v37  ;;  %v502_v46 = vrot.slane %v394_v39, 1  ;;  %v5157_v53 = vld [vmem:[#allocation2 + $0x50] sm:$0xff]  ;;  %v5159_v55 = vld [vmem:[#allocation2 + $0x48] sm:$0xff] }
  0x2c   : > { %368 = vst.msk [vmem:[#allocation2 + $0xc1] sm:$0xff] %vm279_vm0, %v5069_v17  ;;  %7390 = vst [vmem:[#allocation11_spill] sm:$0xff] %v5081_v19  ;;  %573 = vrot.lane.b32.xlu0 %v496_v42, %s4891_s13  ;;  %v498_v45 = vsel %vm488_vm5, %v495_v34, %v497_v38  ;;  %v499_v47 = vrot.slane %v5137_v40, 1  ;;  %v677_v48 = vrot.slane %v5130_v35, 2  ;;  %v679_v51 = vrot.slane %v394_v39, 2  ;;  %v5199_v30 = vld [vmem:[%s4994_s30 + $0xf0] sm:$0xff] }
  0x2d   : > { %7391 = vst [vmem:[#allocation12_spill] sm:$0xff] %v5084_v20  ;;  %369 = vst.msk [vmem:[#allocation2 + $0xc9] sm:$0xff] %vm279_vm0, %v5076_v18  ;;  %v503_v49 = vsel %vm488_vm5, %v500_v43, %v502_v46  ;;  %v676_v52 = vrot.slane %v5137_v40, 2  ;;  %v397_v54 = vld [vmem:[#allocation2 + $0x58] sm:$0x3]  ;;  %v505_v56 = vrot.slane %v5157_v53, 1 }
  0x2e   : > { %370 = vst.msk [vmem:[#allocation2 + $0xd9] sm:$0xff] %vm279_vm0, %v5081_v19  ;;  %371 = vst.msk [vmem:[#allocation2 + $0xe1] sm:$0xff] %vm279_vm0, %v5084_v20  ;;  %v501_v50 = vsel %vm488_vm5, %v499_v47, %v500_v43  ;;  %v680_v57 = vsel %vm665_vm4, %v677_v48, %v679_v51  ;;  %v507_v59 = vrot.slane %v397_v54, 1  ;;  %v504_v60 = vrot.slane %v5159_v55, 1  ;;  %v5204_v37 = vld [vmem:[#allocation2 + $0x68] sm:$0xff]  ;;  %v5209_v38 = vld [vmem:[%s4994_s30 + $0xf8] sm:$0xff] }
  0x2f   : > { %7392 = vst [vmem:[#allocation13_spill] sm:$0xff] %v5093_v21  ;;  %7393 = vst [vmem:[#allocation14_spill] sm:$0xff] %v5096_v22  ;;  %752 = vrot.lane.b32.xlu1 %v675_v44, %s4890_s12  ;;  %v678_v58 = vsel %vm665_vm4, %v676_v52, %v677_v48  ;;  %v682_v8 = vrot.slane %v5157_v53, 2  ;;  %v684_v33 = vrot.slane %v397_v54, 2  ;;  %v681_v34 = vrot.slane %v5159_v55, 2  ;;  %v5213_v41 = vld [vmem:[#allocation2 + $0x60] sm:$0xff] }
  0x30   : > { %7394 = vst [vmem:[#allocation15_spill] sm:$0xff] %v5099_v23  ;;  %372 = vst.msk [vmem:[#allocation2 + $0xf1] sm:$0xff] %vm279_vm0, %v5093_v21  ;;  %575 = vrot.lane.b32.xlu0 %v498_v45, %s4891_s13  ;;  %v508_v31 = vsel %vm488_vm5, %v505_v56, %v507_v59  ;;  %v506_v32 = vsel %vm488_vm5, %v504_v60, %v505_v56  ;;  %v400_v39 = vld [vmem:[#allocation2 + $0x70] sm:$0x3]  ;;  %v510_v42 = vrot.slane %v5204_v37, 1  ;;  %v509_v46 = vrot.slane %v5213_v41, 1 }
  0x31   : > { %373 = vst.msk [vmem:[#allocation2 + $0xf9] sm:$0xff] %vm279_vm0, %v5096_v22  ;;  %7395 = vst [vmem:[#allocation16_spill] sm:$0xff] %v5106_v25  ;;  %v685_v43 = vsel %vm665_vm4, %v682_v8, %v684_v33  ;;  %v683_v44 = vsel %vm665_vm4, %v681_v34, %v682_v8  ;;  %v512_v45 = vrot.slane %v400_v39, 1  ;;  %v687_v47 = vrot.slane %v5204_v37, 2  ;;  %v5229_v52 = vld [vmem:[#allocation2 + $0x80] sm:$0xff]  ;;  %v5231_v56 = vld [vmem:[#allocation2 + $0x78] sm:$0xff] }
  0x32   : > { %374 = vst.msk [vmem:[#allocation2 + $0x109] sm:$0xff] %vm279_vm0, %v5099_v23  ;;  %7396 = vst [vmem:[#allocation17_spill] sm:$0xff] %v5111_v26  ;;  %v686_v51 = vrot.slane %v5213_v41, 2  ;;  %v403_v54 = vld [vmem:[#allocation2 + $0x88] sm:$0x3]  ;;  %v514_v8 = vrot.slane %v5231_v56, 1 }
  0x33   : > { %7397 = vst [vmem:[#allocation18_spill] sm:$0xff] %v5114_v27  ;;  %375 = vst.msk [vmem:[#allocation2 + $0x111] sm:$0xff] %vm279_vm0, %v5106_v25  ;;  %579 = vrot.lane.b32.xlu1 %v503_v49, %s4891_s13  ;;  %v513_v48 = vsel %vm488_vm5, %v510_v42, %v512_v45  ;;  %v511_v49 = vsel %vm488_vm5, %v509_v46, %v510_v42  ;;  %v517_v60 = vrot.slane %v403_v54, 1  ;;  %v694_v34 = vrot.slane %v403_v54, 2  ;;  %v5245_v42 = vld [vmem:[#allocation2 + $0x98] sm:$0xff]  ;;  %v5441_v17 = vld [vmem:[#allocation2] sm:$0xff] }
  0x34   : > { %376 = vst.msk [vmem:[#allocation2 + $0x121] sm:$0xff] %vm279_vm0, %v5111_v26  ;;  %377 = vst.msk [vmem:[#allocation2 + $0x129] sm:$0xff] %vm279_vm0, %v5114_v27  ;;  %577 = vrot.lane.b32.xlu0 %v501_v50, %s4891_s13  ;;  %v689_v50 = vrot.slane %v400_v39, 2  ;;  %v688_v59 = vsel %vm665_vm4, %v686_v51, %v687_v47  ;;  %v691_v39 = vrot.slane %v5231_v56, 2  ;;  %v520_v45 = vrot.slane %v5245_v42, 1 }
  0x35   : > { %vm5133_vm7 = vmpackc.low %vm1038_vm3, %vm4889_vm6  ;;  %7400 = vst [vmem:[#allocation19_spill] sm:$0xff] %v5168_v61 }
  0x36   : > { %4699 = vmatprep.subr.msk.bf16.mxu0 %vm5133_vm7, %v4697_v24  ;;  %7401 = vst [vmem:[#allocation20_spill] sm:$0xff] %v5171_v62  ;;  %378 = vst.msk [vmem:[#allocation2 + $0x139] sm:$0xff] %vm279_vm0, %v5168_v61 }
  0x37   : > { %4702 = vmatpush3.bf16.msk.msra.mxu0 %vm5133_vm7, %v4697_v24  ;;  %379 = vst.msk [vmem:[#allocation2 + $0x141] sm:$0xff] %vm279_vm0, %v5171_v62  ;;  %7402 = vst [vmem:[#allocation21_spill] sm:$0xff] %v5178_v63  ;;  %756 = vrot.lane.b32.xlu1 %v680_v57, %s4890_s12  ;;  %v5194_v24 = vld [vmem:[%s4994_s30 + $0xe8] sm:$0xff]  ;;  %v515_v57 = vrot.slane %v5229_v52, 1 }
  0x38   : > { %7403 = vst [vmem:[#allocation22_spill] sm:$0xff] %v5181_v0  ;;  %7404 = vst [vmem:[#allocation23_spill] sm:$0xff] %v5184_v7  ;;  %754 = vrot.lane.b32.xlu0 %v678_v58, %s4890_s12  ;;  %v690_v58 = vsel %vm665_vm4, %v687_v47, %v689_v50  ;;  %v697_v50 = vrot.slane %v5245_v42, 2 }
  0x39   : > { %380 = vst.msk [vmem:[#allocation2 + $0x151] sm:$0xff] %vm279_vm0, %v5178_v63  ;;  %381 = vst.msk [vmem:[#allocation2 + $0x159] sm:$0xff] %vm279_vm0, %v5181_v0  ;;  %v516_v33 = vsel %vm488_vm5, %v514_v8, %v515_v57  ;;  %v5263_v8 = vld [vmem:[#allocation2 + $0xa8] sm:$0xff] }
  0x3a   : > { %7405 = vst [vmem:[#allocation24_spill] sm:$0xff] %v5194_v24  ;;  %382 = vst.msk [vmem:[#allocation2 + $0x169] sm:$0xff] %vm279_vm0, %v5184_v7  ;;  %v5336_v0 = vld [vmem:[#allocation2 + $0x110] sm:$0xff] }
  0x3b   : > { %7406 = vst [vmem:[#allocation25_spill] sm:$0xff] %v5199_v30  ;;  %383 = vst.msk [vmem:[#allocation2 + $0x171] sm:$0xff] %vm279_vm0, %v5194_v24  ;;  %583 = vrot.lane.b32.xlu1 %v508_v31, %s4891_s13  ;;  %v692_v31 = vrot.slane %v5229_v52, 2  ;;  %v5352_v62 = vld [vmem:[#allocation2 + $0x128] sm:$0xff] }
  0x3c   : > { %7407 = vst [vmem:[#allocation26_spill] sm:$0xff] %v5209_v38  ;;  %384 = vst.msk [vmem:[#allocation2 + $0x181] sm:$0xff] %vm279_vm0, %v5199_v30  ;;  %581 = vrot.lane.b32.xlu0 %v506_v32, %s4891_s13  ;;  %v518_v32 = vsel %vm488_vm5, %v515_v57, %v517_v60  ;;  %v409_v60 = vld [vmem:[#allocation2 + $0xb8] sm:$0x3] }
  0x3d   : > { %385 = vst.msk [vmem:[#allocation2 + $0x189] sm:$0xff] %vm279_vm0, %v5209_v38  ;;  %v695_v46 = vsel %vm665_vm4, %v692_v31, %v694_v34  ;;  %v693_v47 = vsel %vm665_vm4, %v691_v39, %v692_v31  ;;  %v527_v34 = vrot.slane %v409_v60, 1  ;;  %v524_v39 = vrot.slane %v5263_v8, 1 }
  0x3e   : > { %v5368_v27 = vld [vmem:[#allocation2 + $0x140] sm:$0xff] }
  0x3f   : > { %760 = vrot.lane.b32.xlu1 %v685_v43, %s4890_s12  ;;  %v406_v43 = vld [vmem:[#allocation2 + $0xa0] sm:$0x3] }
  0x40   : > { %758 = vrot.lane.b32.xlu0 %v683_v44, %s4890_s12  ;;  %v5247_v44 = vld [vmem:[#allocation2 + $0x90] sm:$0xff]  ;;  %v699_v57 = vrot.slane %v406_v43, 2  ;;  %v5384_v25 = vld [vmem:[#allocation2 + $0x158] sm:$0xff] }
  0x42   : > { %v5400_v22 = vld [vmem:[#allocation2 + $0x170] sm:$0xff] }
  0x43   : > { %587 = vrot.lane.b32.xlu1 %v513_v48, %s4891_s13  ;;  %v522_v48 = vrot.slane %v406_v43, 1 }
  0x44   : > { %585 = vrot.lane.b32.xlu0 %v511_v49, %s4891_s13  ;;  %v519_v49 = vrot.slane %v5247_v44, 1  ;;  %v5416_v20 = vld [vmem:[#allocation2 + $0x188] sm:$0xff] }
  0x45   : > { %v523_v51 = vsel %vm488_vm5, %v520_v45, %v522_v48  ;;  %v701_v48 = vrot.slane %v5263_v8, 2 }
  0x46   : > { %v521_v54 = vsel %vm488_vm5, %v519_v49, %v520_v45  ;;  %v5277_v49 = vld [vmem:[#allocation2 + $0xc8] sm:$0xff] }
  0x47   : > { %764 = vrot.lane.b32.xlu1 %v690_v58, %s4890_s12  ;;  %v696_v58 = vrot.slane %v5247_v44, 2 }
  0x48   : > { %762 = vrot.lane.b32.xlu0 %v688_v59, %s4890_s12  ;;  %v5261_v59 = vld [vmem:[#allocation2 + $0xb0] sm:$0xff] }
  0x49   : > { %v525_v31 = vrot.slane %v5261_v59, 1  ;;  %v702_v43 = vrot.slane %v5261_v59, 2 }
  0x4b   : > { %591 = vrot.lane.b32.xlu1 %v518_v32, %s4891_s13  ;;  %v700_v32 = vsel %vm665_vm4, %v697_v50, %v699_v57  ;;  %v528_v45 = vsel %vm488_vm5, %v525_v31, %v527_v34 }
  0x4c   : > { %589 = vrot.lane.b32.xlu0 %v516_v33, %s4891_s13  ;;  %v698_v33 = vsel %vm665_vm4, %v696_v58, %v697_v50  ;;  %v5279_v50 = vld [vmem:[#allocation2 + $0xc0] sm:$0xff]  ;;  %v703_v58 = vsel %vm665_vm4, %v701_v48, %v702_v43 }
  0x4f   : > { %768 = vrot.lane.b32.xlu1 %v695_v46, %s4890_s12  ;;  %v526_v46 = vsel %vm488_vm5, %v524_v39, %v525_v31  ;;  %v707_v31 = vrot.slane %v5277_v49, 2 }
  0x50   : > { %766 = vrot.lane.b32.xlu0 %v693_v47, %s4890_s12  ;;  %v704_v47 = vrot.slane %v409_v60, 2  ;;  %v529_v60 = vrot.slane %v5279_v50, 1 }
  0x52   : > { %v705_v57 = vsel %vm665_vm4, %v702_v43, %v704_v47  ;;  %v415_v47 = vld [vmem:[#allocation2 + $0xe8] sm:$0x3]  ;;  %v5295_v43 = vld [vmem:[#allocation2 + $0xd8] sm:$0xff] }
  0x53   : > { %595 = vrot.lane.b32.xlu1 %v523_v51, %s4891_s13  ;;  %v412_v51 = vld [vmem:[#allocation2 + $0xd0] sm:$0x3]  ;;  %v714_v30 = vrot.slane %v415_v47, 2 }
  0x54   : > { %593 = vrot.lane.b32.xlu0 %v521_v54, %s4891_s13  ;;  %v530_v54 = vrot.slane %v5277_v49, 1  ;;  %v709_v39 = vrot.slane %v412_v51, 2 }
  0x56   : > { %v531_v34 = vsel %vm488_vm5, %v529_v60, %v530_v54  ;;  %v534_v60 = vrot.slane %v5295_v43, 1 }
  0x57   : > { %772 = vrot.lane.b32.xlu1 %v700_v32, %s4890_s12  ;;  %v532_v32 = vrot.slane %v412_v51, 1  ;;  %v908_v51 = vld [vmem:[%s7349_s1 + $0x8] sm:$0xf] }
  0x58   : > { %770 = vrot.lane.b32.xlu0 %v698_v33, %s4890_s12 }
  0x59   : > { %v533_v33 = vsel %vm488_vm5, %v530_v54, %v532_v32  ;;  %v710_v54 = vsel %vm665_vm4, %v707_v31, %v709_v39 }
  0x5b   : > { %599 = vrot.lane.b32.xlu1 %v528_v45, %s4891_s13  ;;  %v706_v45 = vrot.slane %v5279_v50, 2 }
  0x5c   : > { %597 = vrot.lane.b32.xlu0 %v526_v46, %s4891_s13  ;;  %v5293_v46 = vld [vmem:[#allocation2 + $0xe0] sm:$0xff] }
  0x5d   : > { %v535_v48 = vrot.slane %v5293_v46, 1  ;;  %v708_v32 = vsel %vm665_vm4, %v706_v45, %v707_v31  ;;  %v711_v31 = vrot.slane %v5295_v43, 2  ;;  %v5320_v45 = vld [vmem:[#allocation2 + $0xf8] sm:$0xff] }
  0x5f   : > { %776 = vrot.lane.b32.xlu1 %v705_v57, %s4890_s12  ;;  %v537_v57 = vrot.slane %v415_v47, 1  ;;  %v536_v39 = vsel %vm488_vm5, %v534_v60, %v535_v48 }
  0x60   : > { %774 = vrot.lane.b32.xlu0 %v703_v58, %s4890_s12  ;;  %v907_v58 = vld [vmem:[%s7349_s1] sm:$0xff] }
  0x61   : > { %v538_v38 = vsel %vm488_vm5, %v535_v48, %v537_v57  ;;  %v717_v48 = vrot.slane %v5320_v45, 2 }
  0x63   : > { %603 = vrot.lane.b32.xlu1 %v533_v33, %s4891_s13  ;;  %v5309_v33 = vpack.c.bf16 %v908_v51, %v907_v58  ;;  %v418_v58 = vld [vmem:[#allocation2 + $0x100] sm:$0x3]  ;;  %v5322_v51 = vld [vmem:[#allocation2 + $0xf0] sm:$0xff] }
  0x64   : > { %601 = vrot.lane.b32.xlu0 %v531_v34, %s4891_s13  ;;  %v712_v34 = vrot.slane %v5293_v46, 2  ;;  %v542_v24 = vrot.slane %v418_v58, 1  ;;  %v539_v47 = vrot.slane %v5322_v51, 1  ;;  %v716_v7 = vrot.slane %v5322_v51, 2 }
  0x65   : > { %4705 = vmatprep.subr.msk.bf16.mxu0 %vm5133_vm7, %v5309_v33 }
  0x66   : > { %v713_v57 = vsel %vm665_vm4, %v711_v31, %v712_v34  ;;  %v545_v31 = vrot.slane %v5336_v0, 1 }
  0x67   : > { %780 = vrot.lane.b32.xlu1 %v710_v54, %s4890_s12  ;;  %v540_v54 = vrot.slane %v5320_v45, 1 }
  0x68   : > { %778 = vrot.lane.b32.xlu0 %v708_v32, %s4890_s12  ;;  %v715_v32 = vsel %vm665_vm4, %v712_v34, %v714_v30  ;;  %v421_v30 = vld [vmem:[#allocation2 + $0x118] sm:$0x3]  ;;  %v5338_v34 = vld [vmem:[#allocation2 + $0x108] sm:$0xff] }
  0x69   : > { %v543_v60 = vsel %vm488_vm5, %v540_v54, %v542_v24  ;;  %v718_v24 = vsel %vm665_vm4, %v716_v7, %v717_v48  ;;  %v721_v63 = vrot.slane %v5338_v34, 2  ;;  %v5354_v7 = vld [vmem:[#allocation2 + $0x120] sm:$0xff] }
  0x6a   : > { %v726_v61 = vrot.slane %v5354_v7, 2 }
  0x6b   : > { %607 = vrot.lane.b32.xlu1 %v538_v38, %s4891_s13  ;;  %v541_v38 = vsel %vm488_vm5, %v539_v47, %v540_v54  ;;  %v722_v54 = vrot.slane %v5336_v0, 2 }
  0x6c   : > { %605 = vrot.lane.b32.xlu0 %v536_v39, %s4891_s13  ;;  %v719_v39 = vrot.slane %v418_v58, 2  ;;  %v544_v58 = vrot.slane %v5338_v34, 1 }
  0x6f   : > { %784 = vrot.lane.b32.xlu1 %v715_v32, %s4890_s12  ;;  %v720_v32 = vsel %vm665_vm4, %v717_v48, %v719_v39  ;;  %v424_v39 = vld [vmem:[#allocation2 + $0x130] sm:$0x3]  ;;  %v550_v48 = vrot.slane %v5352_v62, 1 }
  0x70   : > { %782 = vrot.lane.b32.xlu0 %v713_v57, %s4890_s12  ;;  %v547_v57 = vrot.slane %v421_v30, 1 }
  0x72   : > { %v548_v47 = vsel %vm488_vm5, %v545_v31, %v547_v57  ;;  %v552_v57 = vrot.slane %v424_v39, 1 }
  0x73   : > { %611 = vrot.lane.b32.xlu1 %v543_v60, %s4891_s13  ;;  %v546_v60 = vsel %vm488_vm5, %v544_v58, %v545_v31  ;;  %v727_v31 = vrot.slane %v5352_v62, 2 }
  0x74   : > { %609 = vrot.lane.b32.xlu0 %v541_v38, %s4891_s13  ;;  %v724_v38 = vrot.slane %v421_v30, 2  ;;  %v549_v30 = vrot.slane %v5354_v7, 1  ;;  %v553_v58 = vsel %vm488_vm5, %v550_v48, %v552_v57 }
  0x77   : > { %788 = vrot.lane.b32.xlu1 %v720_v32, %s4890_s12  ;;  %v725_v32 = vsel %vm665_vm4, %v722_v54, %v724_v38  ;;  %v427_v38 = vld [vmem:[#allocation2 + $0x148] sm:$0x3] }
  0x78   : > { %786 = vrot.lane.b32.xlu0 %v718_v24, %s4890_s12  ;;  %v723_v24 = vsel %vm665_vm4, %v721_v63, %v722_v54  ;;  %v5370_v63 = vld [vmem:[#allocation2 + $0x138] sm:$0xff]  ;;  %v555_v54 = vrot.slane %v5368_v27, 1  ;;  %v557_v57 = vrot.slane %v427_v38, 1 }
  0x79   : > { %v731_v26 = vrot.slane %v5370_v63, 2 }
  0x7b   : > { %615 = vrot.lane.b32.xlu1 %v548_v47, %s4891_s13  ;;  %v551_v47 = vsel %vm488_vm5, %v549_v30, %v550_v48  ;;  %v732_v48 = vrot.slane %v5368_v27, 2  ;;  %v558_v30 = vsel %vm488_vm5, %v555_v54, %v557_v57 }
  0x7c   : > { %613 = vrot.lane.b32.xlu0 %v546_v60, %s4891_s13  ;;  %v729_v60 = vrot.slane %v424_v39, 2  ;;  %v554_v39 = vrot.slane %v5370_v63, 1 }
  0x7f   : > { %792 = vrot.lane.b32.xlu1 %v725_v32, %s4890_s12  ;;  %v730_v32 = vsel %vm665_vm4, %v727_v31, %v729_v60  ;;  %v430_v60 = vld [vmem:[#allocation2 + $0x160] sm:$0x3] }
  0x80   : > { %790 = vrot.lane.b32.xlu0 %v723_v24, %s4890_s12  ;;  %v728_v24 = vsel %vm665_vm4, %v726_v61, %v727_v31  ;;  %v5386_v61 = vld [vmem:[#allocation2 + $0x150] sm:$0xff]  ;;  %v560_v31 = vrot.slane %v5384_v25, 1  ;;  %v562_v57 = vrot.slane %v430_v60, 1 }
  0x81   : > { %v736_v23 = vrot.slane %v5386_v61, 2 }
  0x83   : > { %619 = vrot.lane.b32.xlu1 %v553_v58, %s4891_s13  ;;  %v556_v58 = vsel %vm488_vm5, %v554_v39, %v555_v54  ;;  %v737_v54 = vrot.slane %v5384_v25, 2  ;;  %v563_v39 = vsel %vm488_vm5, %v560_v31, %v562_v57 }
  0x84   : > { %617 = vrot.lane.b32.xlu0 %v551_v47, %s4891_s13  ;;  %v734_v47 = vrot.slane %v427_v38, 2  ;;  %v559_v38 = vrot.slane %v5386_v61, 1 }
  0x87   : > { %796 = vrot.lane.b32.xlu1 %v730_v32, %s4890_s12  ;;  %v735_v32 = vsel %vm665_vm4, %v732_v48, %v734_v47  ;;  %v433_v47 = vld [vmem:[#allocation2 + $0x178] sm:$0x3] }
  0x88   : > { %794 = vrot.lane.b32.xlu0 %v728_v24, %s4890_s12  ;;  %v733_v24 = vsel %vm665_vm4, %v731_v26, %v732_v48  ;;  %v5402_v26 = vld [vmem:[#allocation2 + $0x168] sm:$0xff]  ;;  %v565_v48 = vrot.slane %v5400_v22, 1  ;;  %v567_v57 = vrot.slane %v433_v47, 1 }
  0x89   : > { %v741_v21 = vrot.slane %v5402_v26, 2 }
  0x8b   : > { %623 = vrot.lane.b32.xlu1 %v558_v30, %s4891_s13  ;;  %v561_v30 = vsel %vm488_vm5, %v559_v38, %v560_v31  ;;  %v742_v31 = vrot.slane %v5400_v22, 2  ;;  %v568_v38 = vsel %vm488_vm5, %v565_v48, %v567_v57 }
  0x8c   : > { %621 = vrot.lane.b32.xlu0 %v556_v58, %s4891_s13  ;;  %v739_v58 = vrot.slane %v430_v60, 2  ;;  %v564_v60 = vrot.slane %v5402_v26, 1 }
  0x8f   : > { %800 = vrot.lane.b32.xlu1 %v735_v32, %s4890_s12  ;;  %v740_v32 = vsel %vm665_vm4, %v737_v54, %v739_v58  ;;  %v436_v58 = vld [vmem:[#allocation2 + $0x190] sm:$0x3] }
  0x90   : > { %798 = vrot.lane.b32.xlu0 %v733_v24, %s4890_s12  ;;  %v738_v24 = vsel %vm665_vm4, %v736_v23, %v737_v54  ;;  %v5418_v23 = vld [vmem:[#allocation2 + $0x180] sm:$0xff]  ;;  %v913_v54 = vrot.slane %v5416_v20, 1 }
  0x91   : > { %v923_v18 = vrot.slane %v5418_v23, 2 }
  0x93   : > { %627 = vrot.lane.b32.xlu1 %v563_v39, %s4891_s13  ;;  %v566_v39 = vsel %vm488_vm5, %v564_v60, %v565_v48  ;;  %v915_v48 = vrot.slane %v436_v58, 1 }
  0x94   : > { %625 = vrot.lane.b32.xlu0 %v561_v30, %s4891_s13  ;;  %v744_v30 = vrot.slane %v433_v47, 2  ;;  %v912_v47 = vrot.slane %v5418_v23, 1 }
  0x97   : > { %804 = vrot.lane.b32.xlu1 %v740_v32, %s4890_s12  ;;  %v745_v32 = vsel %vm665_vm4, %v742_v31, %v744_v30  ;;  %v926_v30 = vrot.slane %v436_v58, 2 }
  0x98   : > { %802 = vrot.lane.b32.xlu0 %v738_v24, %s4890_s12  ;;  %v743_v24 = vsel %vm665_vm4, %v741_v21, %v742_v31  ;;  %v916_v21 = vsel %vm488_vm5, %v913_v54, %v915_v48  ;;  %v914_v31 = vsel %vm488_vm5, %v912_v47, %v913_v54  ;;  %v4037_v47 = vld [vmem:[%s7349_s1 + $0x20] sm:$0xff] }
  0x9b   : > { %631 = vrot.lane.b32.xlu1 %v568_v38, %s4891_s13 }
  0x9c   : > { %629 = vrot.lane.b32.xlu0 %v566_v39, %s4891_s13  ;;  %v924_v39 = vrot.slane %v5416_v20, 2 }
  0x9d   : > { %v751_v57 = vpop.permute.xlu1 %750 }
  0x9e   : > { %v574_v60 = vpop.permute.xlu0 %573 }
  0x9f   : > { %v844_v19 = vsel %vm279_vm0, %v5116_v28, %v574_v60  ;;  %808 = vrot.lane.b32.xlu1 %v745_v32, %s4890_s12  ;;  %v5439_v28 = vld [vmem:[#allocation2 + $0x8] sm:$0xff]  ;;  %v388_v32 = vld [vmem:[#allocation2 + $0x10] sm:$0x3] }
  0xa0   : > { %806 = vrot.lane.b32.xlu0 %v743_v24, %s4890_s12  ;;  %v5431_v38 = vsel %vm874_vm8, %v844_v19, %v751_v57  ;;  %v490_v58 = vrot.slane %v5439_v28, 1  ;;  %v492_v54 = vrot.slane %v388_v32, 1  ;;  %v4038_v57 = vld [vmem:[%s7349_s1 + $0x28] sm:$0xf] }
  0xa1   : > { %4389 = vmatprep.mubr.msk.f32.mxu0 %vm941_vm9, %v5431_v38  ;;  %v753_v60 = vpop.permute.xlu1 %752 }
  0xa2   : > { %v576_v24 = vpop.permute.xlu0 %575 }
  0xa3   : > { %v845_v19 = vsel %vm279_vm0, %v5118_v29, %v576_v24  ;;  %919 = vrot.lane.b32.xlu1 %v916_v21, %s4891_s13  ;;  %v927_v29 = vsel %vm665_vm4, %v924_v39, %v926_v30  ;;  %v925_v21 = vsel %vm665_vm4, %v923_v18, %v924_v39  ;;  %v667_v18 = vrot.slane %v5439_v28, 2 }
  0xa4   : > { %917 = vrot.lane.b32.xlu0 %v914_v31, %s4891_s13  ;;  %v5448_v48 = vsel %vm874_vm8, %v845_v19, %v753_v60  ;;  %v489_v31 = vrot.slane %v5441_v17, 1  ;;  %v5462_v60 = vpack.c.bf16 %v4038_v57, %v4037_v47  ;;  %v493_v39 = vsel %vm488_vm5, %v490_v58, %v492_v54 }
  0xa5   : > { %4390 = vmatmul.mubr.msk.f32.vlgmr.msra.gmra.mrb[0].mxu0 %vm941_vm9, %v5448_v48  ;;  %v580_v24 = vpop.permute.xlu1 %579  ;;  %v669_v47 = vrot.slane %v388_v32, 2  ;;  %v666_v57 = vrot.slane %v5441_v17, 2  ;;  %v439_v32 = vld [vmem:[#allocation2 + $0x1a8] sm:$0x3] }
  0xa6   : > { %v578_v19 = vpop.permute.xlu0 %577  ;;  %4708 = vmatpush3.bf16.msk.msra.mxu0 %vm5133_vm7, %v5309_v33  ;;  %v491_v30 = vsel %vm488_vm5, %v489_v31, %v490_v58  ;;  %v847_v33 = vsel %vm279_vm0, %v5130_v35, %v580_v24  ;;  %v1507_v31 = vrot.slane %v439_v32, 1  ;;  %v1518_v12 = vrot.slane %v439_v32, 2 }
  0xa7   : > { %4711 = vmatprep.subr.msk.bf16.mxu0 %vm5133_vm7, %v5462_v60  ;;  %930 = vrot.lane.b32.xlu1 %v927_v29, %s4890_s12  ;;  %v846_v16 = vsel %vm279_vm0, %v5137_v40, %v578_v19  ;;  %v5480_v29 = vld [vmem:[#allocation2 + $0x198] sm:$0xff]  ;;  %v670_v35 = vsel %vm665_vm4, %v667_v18, %v669_v47  ;;  %v668_v40 = vsel %vm665_vm4, %v666_v57, %v667_v18 }
  0xa8   : > { %928 = vrot.lane.b32.xlu0 %v925_v21, %s4890_s12  ;;  %v5482_v21 = vld [vmem:[#allocation2 + $0x1a0] sm:$0xff]  ;;  %v1504_v54 = vrot.slane %v5480_v29, 1  ;;  %v1515_v19 = vrot.slane %v5480_v29, 2 }
  0xa9   : > { %v757_v15 = vpop.permute.xlu1 %756  ;;  %v1516_v18 = vrot.slane %v5482_v21, 2 }
  0xaa   : > { %v755_v14 = vpop.permute.xlu0 %754  ;;  %v5485_v13 = vsel %vm874_vm8, %v847_v33, %v757_v15  ;;  %v1505_v15 = vrot.slane %v5482_v21, 1 }
  0xab   : > { %v5488_v58 = vsel %vm874_vm8, %v846_v16, %v755_v14  ;;  %571 = vrot.lane.b32.xlu1 %v493_v39, %s4891_s13 }
  0xac   : > { %569 = vrot.lane.b32.xlu0 %v491_v30, %s4891_s13  ;;  %4392 = vmatprep.mubr.msk.f32.mxu0 %vm941_vm9, %v5488_v58  ;;  %v1506_v24 = vsel %vm488_vm5, %v1504_v54, %v1505_v15  ;;  %v1508_v33 = vsel %vm488_vm5, %v1505_v15, %v1507_v31  ;;  %v1519_v54 = vsel %vm665_vm4, %v1516_v18, %v1518_v12 }
  0xad   : > { %4393 = vmatmul.mubr.msk.f32.gmra.mrb[2].mxu0 %vm941_vm9, %v5485_v13  ;;  %v584_v14 = vpop.permute.xlu1 %583 }
  0xae   : > { %v582_v16 = vpop.permute.xlu0 %581  ;;  %v849_v39 = vsel %vm279_vm0, %v5157_v53, %v584_v14  ;;  %v1517_v53 = vsel %vm665_vm4, %v1515_v19, %v1516_v18 }
  0xaf   : > { %748 = vrot.lane.b32.xlu1 %v670_v35, %s4890_s12  ;;  %v848_v30 = vsel %vm279_vm0, %v5159_v55, %v582_v16 }
  0xb0   : > { %746 = vrot.lane.b32.xlu0 %v668_v40, %s4890_s12 }
  0xb1   : > { %v761_v47 = vpop.permute.xlu1 %760 }
  0xb2   : > { %v759_v57 = vpop.permute.xlu0 %758  ;;  %v5511_v35 = vsel %vm874_vm8, %v849_v39, %v761_v47 }
  0xb3   : > { %v5514_v40 = vsel %vm874_vm8, %v848_v30, %v759_v57  ;;  %1511 = vrot.lane.b32.xlu1 %v1508_v33, %s4891_s13 }
  0xb4   : > { %4395 = vmatprep.mubr.msk.f32.mxu0 %vm941_vm9, %v5514_v40  ;;  %1509 = vrot.lane.b32.xlu0 %v1506_v24, %s4891_s13 }
  0xb5   : > { %4396 = vmatmul.mubr.msk.f32.gmra.mrb[4].mxu0 %vm941_vm9, %v5511_v35  ;;  %v588_v55 = vpop.permute.xlu1 %587 }
  0xb6   : > { %v586_v32 = vpop.permute.xlu0 %585  ;;  %v851_v15 = vsel %vm279_vm0, %v5204_v37, %v588_v55 }
  0xb7   : > { %1522 = vrot.lane.b32.xlu1 %v1519_v54, %s4890_s12  ;;  %v850_v14 = vsel %vm279_vm0, %v5213_v41, %v586_v32 }
  0xb8   : > { %1520 = vrot.lane.b32.xlu0 %v1517_v53, %s4890_s12 }
  0xb9   : > { %v765_v16 = vpop.permute.xlu1 %764 }
  0xba   : > { %v763_v31 = vpop.permute.xlu0 %762  ;;  %v5531_v24 = vsel %vm874_vm8, %v851_v15, %v765_v16 }
  0xbb   : > { %v5534_v19 = vsel %vm874_vm8, %v850_v14, %v763_v31 }
  0xbc   : > { %4398 = vmatprep.mubr.msk.f32.mxu0 %vm941_vm9, %v5534_v19 }
  0xbd   : > { %4399 = vmatmul.mubr.msk.f32.gmra.mrb[6].mxu0 %vm941_vm9, %v5531_v24  ;;  %v592_v12 = vpop.permute.xlu1 %591 }
  0xbe   : > { %v590_v18 = vpop.permute.xlu0 %589  ;;  %v853_v37 = vsel %vm279_vm0, %v5229_v52, %v592_v12 }
  0xbf   : > { %v852_v41 = vsel %vm279_vm0, %v5231_v56, %v590_v18 }
  0xc1   : > { %v769_v39 = vpop.permute.xlu1 %768 }
  0xc2   : > { %v767_v30 = vpop.permute.xlu0 %766  ;;  %v5545_v47 = vsel %vm874_vm8, %v853_v37, %v769_v39 }
  0xc3   : > { %v5548_v57 = vsel %vm874_vm8, %v852_v41, %v767_v30 }
  0xc4   : > { %4401 = vmatprep.mubr.msk.f32.mxu0 %vm941_vm9, %v5548_v57 }
  0xc5   : > { %4402 = vmatmul.mubr.msk.f32.gmra.mrb[8].mxu0 %vm941_vm9, %v5545_v47  ;;  %v596_v33 = vpop.permute.xlu1 %595 }
  0xc6   : > { %v594_v53 = vpop.permute.xlu0 %593  ;;  %v855_v52 = vsel %vm279_vm0, %v5245_v42, %v596_v33 }
  0xc7   : > { %v854_v56 = vsel %vm279_vm0, %v5247_v44, %v594_v53 }
  0xc9   : > { %v773_v55 = vpop.permute.xlu1 %772 }
  0xca   : > { %v771_v32 = vpop.permute.xlu0 %770  ;;  %v5559_v54 = vsel %vm874_vm8, %v855_v52, %v773_v55 }
  0xcb   : > { %v5562_v15 = vsel %vm874_vm8, %v854_v56, %v771_v32 }
  0xcc   : > { %4404 = vmatprep.mubr.msk.f32.mxu0 %vm941_vm9, %v5562_v15 }
  0xcd   : > { %4405 = vmatmul.mubr.msk.f32.gmra.mrb[10].mxu0 %vm941_vm9, %v5559_v54  ;;  %v600_v14 = vpop.permute.xlu1 %599 }
  0xce   : > { %v598_v16 = vpop.permute.xlu0 %597  ;;  %v857_v42 = vsel %vm279_vm0, %v5261_v59, %v600_v14 }
  0xcf   : > { %v856_v44 = vsel %vm279_vm0, %v5263_v8, %v598_v16 }
  0xd1   : > { %v777_v31 = vpop.permute.xlu1 %776 }
  0xd2   : > { %v775_v12 = vpop.permute.xlu0 %774  ;;  %v5573_v18 = vsel %vm874_vm8, %v857_v42, %v777_v31 }
  0xd3   : > { %v5576_v37 = vsel %vm874_vm8, %v856_v44, %v775_v12 }
  0xd4   : > { %4407 = vmatprep.mubr.msk.f32.mxu0 %vm941_vm9, %v5576_v37 }
  0xd5   : > { %4408 = vmatmul.mubr.msk.f32.gmra.mrb[12].mxu0 %vm941_vm9, %v5573_v18  ;;  %v604_v41 = vpop.permute.xlu1 %603 }
  0xd6   : > { %v602_v39 = vpop.permute.xlu0 %601  ;;  %v859_v59 = vsel %vm279_vm0, %v5277_v49, %v604_v41 }
  0xd7   : > { %v858_v8 = vsel %vm279_vm0, %v5279_v50, %v602_v39 }
  0xd9   : > { %v781_v30 = vpop.permute.xlu1 %780 }
  0xda   : > { %v779_v33 = vpop.permute.xlu0 %778  ;;  %v5587_v53 = vsel %vm874_vm8, %v859_v59, %v781_v30 }
  0xdb   : > { %v5590_v52 = vsel %vm874_vm8, %v858_v8, %v779_v33 }
  0xdc   : > { %4410 = vmatprep.mubr.msk.f32.mxu0 %vm941_vm9, %v5590_v52 }
  0xdd   : > { %4411 = vmatmul.mubr.msk.f32.gmra.mrb[14].mxu0 %vm941_vm9, %v5587_v53  ;;  %v608_v56 = vpop.permute.xlu1 %607 }
  0xde   : > { %v606_v55 = vpop.permute.xlu0 %605  ;;  %v861_v49 = vsel %vm279_vm0, %v5293_v46, %v608_v56 }
  0xdf   : > { %v860_v50 = vsel %vm279_vm0, %v5295_v43, %v606_v55 }
  0xe1   : > { %v785_v32 = vpop.permute.xlu1 %784 }
  0xe2   : > { %v783_v14 = vpop.permute.xlu0 %782  ;;  %v5601_v16 = vsel %vm874_vm8, %v861_v49, %v785_v32 }
  0xe3   : > { %v5604_v42 = vsel %vm874_vm8, %v860_v50, %v783_v14 }
  0xe4   : > { %4413 = vmatprep.mubr.msk.f32.mxu0 %vm941_vm9, %v5604_v42 }
  0xe5   : > { %4414 = vmatmul.mubr.msk.f32.gmra.mrb[16].mxu0 %vm941_vm9, %v5601_v16  ;;  %v612_v44 = vpop.permute.xlu1 %611 }
  0xe6   : > { %v610_v31 = vpop.permute.xlu0 %609  ;;  %v863_v46 = vsel %vm279_vm0, %v5320_v45, %v612_v44 }
  0xe7   : > { %v862_v43 = vsel %vm279_vm0, %v5322_v51, %v610_v31 }
  0xe9   : > { %v789_v12 = vpop.permute.xlu1 %788 }
  0xea   : > { %v787_v41 = vpop.permute.xlu0 %786  ;;  %v5615_v39 = vsel %vm874_vm8, %v863_v46, %v789_v12 }
  0xeb   : > { %v5618_v59 = vsel %vm874_vm8, %v862_v43, %v787_v41 }
  0xec   : > { %4416 = vmatprep.mubr.msk.f32.mxu0 %vm941_vm9, %v5618_v59 }
  0xed   : > { %4417 = vmatmul.mubr.msk.f32.gmra.mrb[18].mxu0 %vm941_vm9, %v5615_v39  ;;  %v616_v8 = vpop.permute.xlu1 %615 }
  0xee   : > { %v614_v30 = vpop.permute.xlu0 %613  ;;  %v865_v45 = vsel %vm279_vm0, %v5336_v0, %v616_v8 }
  0xef   : > { %v864_v51 = vsel %vm279_vm0, %v5338_v34, %v614_v30 }
  0xf1   : > { %v793_v33 = vpop.permute.xlu1 %792 }
  0xf2   : > { %v791_v56 = vpop.permute.xlu0 %790  ;;  %v5629_v55 = vsel %vm874_vm8, %v865_v45, %v793_v33 }
  0xf3   : > { %v5632_v49 = vsel %vm874_vm8, %v864_v51, %v791_v56 }
  0xf4   : > { %4419 = vmatprep.mubr.msk.f32.mxu0 %vm941_vm9, %v5632_v49 }
  0xf5   : > { %4420 = vmatmul.mubr.msk.f32.gmra.mrb[20].mxu0 %vm941_vm9, %v5629_v55  ;;  %v620_v50 = vpop.permute.xlu1 %619 }
  0xf6   : > { %v618_v32 = vpop.permute.xlu0 %617  ;;  %v867_v0 = vsel %vm279_vm0, %v5352_v62, %v620_v50 }
  0xf7   : > { %v866_v34 = vsel %vm279_vm0, %v5354_v7, %v618_v32 }
  0xf9   : > { %v797_v14 = vpop.permute.xlu1 %796 }
  0xfa   : > { %v795_v44 = vpop.permute.xlu0 %794  ;;  %v5643_v31 = vsel %vm874_vm8, %v867_v0, %v797_v14 }
  0xfb   : > { %v5646_v46 = vsel %vm874_vm8, %v866_v34, %v795_v44 }
  0xfc   : > { %4422 = vmatprep.mubr.msk.f32.mxu0 %vm941_vm9, %v5646_v46 }
  0xfd   : > { %4423 = vmatmul.mubr.msk.f32.gmra.mrb[22].mxu0 %vm941_vm9, %v5643_v31  ;;  %v624_v43 = vpop.permute.xlu1 %623 }
  0xfe   : > { %v622_v12 = vpop.permute.xlu0 %621  ;;  %v869_v62 = vsel %vm279_vm0, %v5368_v27, %v624_v43 }
  0xff   : > { %v868_v7 = vsel %vm279_vm0, %v5370_v63, %v622_v12 }
 0x101   : > { %v801_v41 = vpop.permute.xlu1 %800 }
 0x102   : > { %v799_v8 = vpop.permute.xlu0 %798  ;;  %v5657_v30 = vsel %vm874_vm8, %v869_v62, %v801_v41 }
 0x103   : > { %v5660_v45 = vsel %vm874_vm8, %v868_v7, %v799_v8 }
 0x104   : > { %4425 = vmatprep.mubr.msk.f32.mxu0 %vm941_vm9, %v5660_v45 }
 0x105   : > { %4426 = vmatmul.mubr.msk.f32.gmra.mrb[24].mxu0 %vm941_vm9, %v5657_v30  ;;  %v628_v51 = vpop.permute.xlu1 %627 }
 0x106   : > { %v626_v33 = vpop.permute.xlu0 %625  ;;  %v871_v27 = vsel %vm279_vm0, %v5384_v25, %v628_v51 }
 0x107   : > { %v870_v63 = vsel %vm279_vm0, %v5386_v61, %v626_v33 }
 0x109   : > { %v805_v56 = vpop.permute.xlu1 %804 }
 0x10a   : > { %v803_v50 = vpop.permute.xlu0 %802  ;;  %v5671_v32 = vsel %vm874_vm8, %v871_v27, %v805_v56 }
 0x10b   : > { %v5674_v0 = vsel %vm874_vm8, %v870_v63, %v803_v50 }
 0x10c   : > { %4428 = vmatprep.mubr.msk.f32.mxu0 %vm941_vm9, %v5674_v0 }
 0x10d   : > { %4429 = vmatmul.mubr.msk.f32.gmra.mrb[26].mxu0 %vm941_vm9, %v5671_v32  ;;  %v632_v34 = vpop.permute.xlu1 %631 }
 0x10e   : > { %v630_v14 = vpop.permute.xlu0 %629  ;;  %v873_v25 = vsel %vm279_vm0, %v5400_v22, %v632_v34 }
 0x10f   : > { %v872_v61 = vsel %vm279_vm0, %v5402_v26, %v630_v14 }
 0x111   : > { %v809_v44 = vpop.permute.xlu1 %808 }
 0x112   : > { %v807_v43 = vpop.permute.xlu0 %806  ;;  %v5685_v12 = vsel %vm874_vm8, %v873_v25, %v809_v44 }
 0x113   : > { %v5688_v62 = vsel %vm874_vm8, %v872_v61, %v807_v43 }
 0x114   : > { %4431 = vmatprep.mubr.msk.f32.mxu0 %vm941_vm9, %v5688_v62 }
 0x115   : > { %4432 = vmatmul.mubr.msk.f32.gmra.mrb[28].mxu0 %vm941_vm9, %v5685_v12  ;;  %v920_v7 = vpop.permute.xlu1 %919 }
 0x116   : > { %v918_v41 = vpop.permute.xlu0 %917  ;;  %v935_v22 = vsel %vm279_vm0, %v5416_v20, %v920_v7 }
 0x117   : > { %v934_v26 = vsel %vm279_vm0, %v5418_v23, %v918_v41 }
 0x119   : > { %v931_v8 = vpop.permute.xlu1 %930 }
 0x11a   : > { %v929_v51 = vpop.permute.xlu0 %928  ;;  %v5699_v33 = vsel %vm874_vm8, %v935_v22, %v931_v8 }
 0x11b   : > { %v5702_v27 = vsel %vm874_vm8, %v934_v26, %v929_v51 }
 0x11c   : > { %4434 = vmatprep.mubr.msk.f32.mxu0 %vm941_vm9, %v5702_v27 }
 0x11d   : > { %4435 = vmatmul.mubr.msk.f32.gmra.mrb[30].mxu0 %vm941_vm9, %v5699_v33  ;;  %v572_v63 = vpop.permute.xlu1 %571 }
 0x11e   : > { %v570_v56 = vpop.permute.xlu0 %569  ;;  %v843_v20 = vsel %vm279_vm0, %v5439_v28, %v572_v63 }
 0x11f   : > { %v842_v23 = vsel %vm279_vm0, %v5441_v17, %v570_v56 }
 0x121   : > { %v749_v50 = vpop.permute.xlu1 %748 }
 0x122   : > { %v747_v34 = vpop.permute.xlu0 %746  ;;  %v876_v14 = vsel %vm874_vm8, %v843_v20, %v749_v50 }
 0x123   : > { %v875_v25 = vsel %vm874_vm8, %v842_v23, %v747_v34 }
 0x124   : > { %4441 = vmatprep.mubr.msk.f32.mxu0 %vm941_vm9, %v875_v25 }
 0x125   : > { %4442 = vmatmul.mubr.msk.f32.vlgmr.msra.gmra.mrb[0].mxu0 %vm941_vm9, %v876_v14  ;;  %v1512_v17 = vpop.permute.xlu1 %1511 }
 0x126   : > { %4714 = vmatpush3.bf16.msk.msra.mxu0 %vm5133_vm7, %v5462_v60  ;;  %4444 = vmatprep.mubr.msk.f32.mxu0 %vm941_vm9, %v5431_v38  ;;  %v1527_v60 = vsel %vm279_vm0, %v5482_v21, %v1512_v17 }
 0x129   : > { %4445 = vmatmul.mubr.msk.f32.gmra.mrb[2].mxu0 %vm941_vm9, %v5448_v48 }
 0x12a   : > { %4447 = vmatprep.mubr.msk.f32.mxu0 %vm941_vm9, %v5488_v58 }
 0x12d   : > { %4448 = vmatmul.mubr.msk.f32.gmra.mrb[4].mxu0 %vm941_vm9, %v5485_v13 }
 0x12e   : > { %4450 = vmatprep.mubr.msk.f32.mxu0 %vm941_vm9, %v5514_v40 }
 0x131   : > { %4451 = vmatmul.mubr.msk.f32.gmra.mrb[6].mxu0 %vm941_vm9, %v5511_v35 }
 0x132   : > { %4453 = vmatprep.mubr.msk.f32.mxu0 %vm941_vm9, %v5534_v19 }
 0x135   : > { %4454 = vmatmul.mubr.msk.f32.gmra.mrb[8].mxu0 %vm941_vm9, %v5531_v24 }
 0x136   : > { %4456 = vmatprep.mubr.msk.f32.mxu0 %vm941_vm9, %v5548_v57 }
 0x139   : > { %4457 = vmatmul.mubr.msk.f32.gmra.mrb[10].mxu0 %vm941_vm9, %v5545_v47 }
 0x13a   : > { %4459 = vmatprep.mubr.msk.f32.mxu0 %vm941_vm9, %v5562_v15 }
 0x13d   : > { %4460 = vmatmul.mubr.msk.f32.gmra.mrb[12].mxu0 %vm941_vm9, %v5559_v54 }
 0x13e   : > { %4462 = vmatprep.mubr.msk.f32.mxu0 %vm941_vm9, %v5576_v37 }
 0x141   : > { %4463 = vmatmul.mubr.msk.f32.gmra.mrb[14].mxu0 %vm941_vm9, %v5573_v18 }
 0x142   : > { %4465 = vmatprep.mubr.msk.f32.mxu0 %vm941_vm9, %v5590_v52 }
 0x145   : > { %4466 = vmatmul.mubr.msk.f32.gmra.mrb[16].mxu0 %vm941_vm9, %v5587_v53 }
 0x146   : > { %4468 = vmatprep.mubr.msk.f32.mxu0 %vm941_vm9, %v5604_v42 }
 0x149   : > { %4469 = vmatmul.mubr.msk.f32.gmra.mrb[18].mxu0 %vm941_vm9, %v5601_v16 }
 0x14a   : > { %4471 = vmatprep.mubr.msk.f32.mxu0 %vm941_vm9, %v5618_v59 }
 0x14d   : > { %4472 = vmatmul.mubr.msk.f32.gmra.mrb[20].mxu0 %vm941_vm9, %v5615_v39 }
 0x14e   : > { %4474 = vmatprep.mubr.msk.f32.mxu0 %vm941_vm9, %v5632_v49 }
 0x151   : > { %4475 = vmatmul.mubr.msk.f32.gmra.mrb[22].mxu0 %vm941_vm9, %v5629_v55 }
 0x152   : > { %4477 = vmatprep.mubr.msk.f32.mxu0 %vm941_vm9, %v5646_v46 }
 0x155   : > { %4478 = vmatmul.mubr.msk.f32.gmra.mrb[24].mxu0 %vm941_vm9, %v5643_v31 }
 0x156   : > { %4480 = vmatprep.mubr.msk.f32.mxu0 %vm941_vm9, %v5660_v45 }
 0x159   : > { %4481 = vmatmul.mubr.msk.f32.gmra.mrb[26].mxu0 %vm941_vm9, %v5657_v30 }
 0x15a   : > { %4483 = vmatprep.mubr.msk.f32.mxu0 %vm941_vm9, %v5674_v0 }
 0x15d   : > { %4484 = vmatmul.mubr.msk.f32.gmra.mrb[28].mxu0 %vm941_vm9, %v5671_v32 }
 0x15e   : > { %4486 = vmatprep.mubr.msk.f32.mxu0 %vm941_vm9, %v5688_v62 }
 0x161   : > { %4487 = vmatmul.mubr.msk.f32.gmra.mrb[30].mxu0 %vm941_vm9, %v5685_v12 }
 0x162   : > { %4493 = vmatprep.mubr.msk.f32.mxu0 %vm941_vm9, %v5488_v58  ;;  %v1523_v58 = vpop.permute.xlu1 %1522 }
 0x165   : > { %4494 = vmatmul.mubr.msk.f32.vlgmr.msra.gmra.mrb[0].mxu0 %vm941_vm9, %v5485_v13  ;;  %v1510_v13 = vpop.permute.xlu0 %1509 }
 0x166   : > { %4496 = vmatprep.mubr.msk.f32.mxu0 %vm941_vm9, %v5514_v40  ;;  %v1526_v38 = vsel %vm279_vm0, %v5480_v29, %v1510_v13  ;;  %v1529_v29 = vsel %vm874_vm8, %v1527_v60, %v1523_v58  ;;  %v2150_v40 = vld [vmem:[#allocation2 + $0x10] sm:$0x3] }
 0x169   : > { %4497 = vmatmul.mubr.msk.f32.gmra.mrb[2].mxu0 %vm941_vm9, %v5511_v35  ;;  %v1521_v28 = vpop.permute.xlu0 %1520  ;;  %v2149_v35 = vld [vmem:[#allocation2 + $0x8] sm:$0xff] }
 0x16a   : > { %4499 = vmatprep.mubr.msk.f32.mxu0 %vm941_vm9, %v5534_v19  ;;  %v1528_v48 = vsel %vm874_vm8, %v1526_v38, %v1521_v28  ;;  %v2253_v19 = vrot.slane %v2150_v40, 1 }
 0x16d   : > { %4500 = vmatmul.mubr.msk.f32.gmra.mrb[4].mxu0 %vm941_vm9, %v5531_v24  ;;  %v2251_v24 = vrot.slane %v2149_v35, 1 }
 0x16e   : > { %4502 = vmatprep.mubr.msk.f32.mxu0 %vm941_vm9, %v5548_v57 }
 0x16f   : > { %v2254_v57 = vsel %vm488_vm5, %v2251_v24, %v2253_v19 }
 0x170   : > { %2332 = vrot.lane.b32.xlu1 %v2254_v57, %s4891_s13 }
 0x171   : > { %4503 = vmatmul.mubr.msk.f32.gmra.mrb[6].mxu0 %vm941_vm9, %v5545_v47  ;;  %v2148_v47 = vld [vmem:[#allocation2] sm:$0xff] }
 0x172   : > { %4505 = vmatprep.mubr.msk.f32.mxu0 %vm941_vm9, %v5562_v15 }
 0x175   : > { %4506 = vmatmul.mubr.msk.f32.gmra.mrb[8].mxu0 %vm941_vm9, %v5559_v54  ;;  %v2250_v54 = vrot.slane %v2148_v47, 1 }
 0x176   : > { %4508 = vmatprep.mubr.msk.f32.mxu0 %vm941_vm9, %v5576_v37 }
 0x177   : > { %v2252_v21 = vsel %vm488_vm5, %v2250_v54, %v2251_v24 }
 0x178   : > { %2330 = vrot.lane.b32.xlu0 %v2252_v21, %s4891_s13 }
 0x179   : > { %4509 = vmatmul.mubr.msk.f32.gmra.mrb[10].mxu0 %vm941_vm9, %v5573_v18 }
 0x17a   : > { %4511 = vmatprep.mubr.msk.f32.mxu0 %vm941_vm9, %v5590_v52 }
 0x17d   : > { %4512 = vmatmul.mubr.msk.f32.gmra.mrb[12].mxu0 %vm941_vm9, %v5587_v53 }
 0x17e   : > { %4514 = vmatprep.mubr.msk.f32.mxu0 %vm941_vm9, %v5604_v42 }
 0x181   : > { %4515 = vmatmul.mubr.msk.f32.gmra.mrb[14].mxu0 %vm941_vm9, %v5601_v16 }
 0x182   : > { %4517 = vmatprep.mubr.msk.f32.mxu0 %vm941_vm9, %v5618_v59 }
 0x185   : > { %4518 = vmatmul.mubr.msk.f32.gmra.mrb[16].mxu0 %vm941_vm9, %v5615_v39 }
 0x186   : > { %4520 = vmatprep.mubr.msk.f32.mxu0 %vm941_vm9, %v5632_v49 }
 0x189   : > { %4521 = vmatmul.mubr.msk.f32.gmra.mrb[18].mxu0 %vm941_vm9, %v5629_v55 }
 0x18a   : > { %4523 = vmatprep.mubr.msk.f32.mxu0 %vm941_vm9, %v5646_v46 }
 0x18d   : > { %4524 = vmatmul.mubr.msk.f32.gmra.mrb[20].mxu0 %vm941_vm9, %v5643_v31 }
 0x18e   : > { %4526 = vmatprep.mubr.msk.f32.mxu0 %vm941_vm9, %v5660_v45 }
 0x191   : > { %4527 = vmatmul.mubr.msk.f32.gmra.mrb[22].mxu0 %vm941_vm9, %v5657_v30 }
 0x192   : > { %4529 = vmatprep.mubr.msk.f32.mxu0 %vm941_vm9, %v5674_v0 }
 0x195   : > { %4530 = vmatmul.mubr.msk.f32.gmra.mrb[24].mxu0 %vm941_vm9, %v5671_v32 }
 0x196   : > { %4532 = vmatprep.mubr.msk.f32.mxu0 %vm941_vm9, %v5688_v62 }
 0x199   : > { %4533 = vmatmul.mubr.msk.f32.gmra.mrb[26].mxu0 %vm941_vm9, %v5685_v12 }
 0x19a   : > { %4535 = vmatprep.mubr.msk.f32.mxu0 %vm941_vm9, %v5702_v27 }
 0x19d   : > { %4536 = vmatmul.mubr.msk.f32.gmra.mrb[28].mxu0 %vm941_vm9, %v5699_v33 }
 0x19e   : > { %4538 = vmatprep.mubr.msk.f32.mxu0 %vm941_vm9, %v1528_v48 }
 0x1a1   : > { %4539 = vmatmul.mubr.msk.f32.gmra.mrb[30].mxu0 %vm941_vm9, %v1529_v29 }
 0x238   : > { %v5851_v15 = vpop.f32.mrb[0].mxu0 }
 0x239   : > { %v1800_v18 = vsel %vm279_vm0, %v5851_v15, 0.0  ;;  %v1869_v37 = vmul.f32 %v5851_v15, %v5851_v15  ;;  %v5857_v53 = vpop.f32.mrb[1].mxu0 }
 0x23a   : > { %v1799_v52 = vsel %vm279_vm0, %v5857_v53, 0.0  ;;  %v1868_v16 = vmul.f32 %v5857_v53, %v5857_v53 }
 0x23b   : > { %v1901_v42 = vsel %vm279_vm0, %v1869_v37, 0.0  ;;  %v1801_v39 = vadd.f32 %v1800_v18, %v1799_v52 }
 0x23c   : > { %v1900_v59 = vsel %vm279_vm0, %v1868_v16, 0.0  ;;  %v5865_v55 = vpop.f32.mrb[2].mxu0 }
 0x23d   : > { %v1902_v49 = vadd.f32 %v1901_v42, %v1900_v59  ;;  %v5867_v31 = vpop.f32.mrb[3].mxu0  ;;  %v1871_v46 = vmul.f32 %v5865_v55, %v5865_v55  ;;  %v1804_v0 = vsel %vm279_vm0, %v5865_v55, 0.0 }
 0x23e   : > { %v1802_v30 = vsel %vm279_vm0, %v5867_v31, 0.0  ;;  %v1870_v45 = vmul.f32 %v5867_v31, %v5867_v31 }
 0x23f   : > { %v1803_v32 = vadd.f32 %v1802_v30, %v1801_v39  ;;  %v1905_v7 = vsel %vm279_vm0, %v1871_v46, 0.0 }
 0x240   : > { %v1903_v61 = vsel %vm279_vm0, %v1870_v45, 0.0  ;;  %v5878_v44 = vpop.f32.mrb[4].mxu0 }
 0x241   : > { %v1904_v43 = vadd.f32 %v1903_v61, %v1902_v49  ;;  %v5880_v12 = vpop.f32.mrb[5].mxu0  ;;  %v1805_v62 = vadd.f32 %v1804_v0, %v1803_v32  ;;  %v1873_v41 = vmul.f32 %v5878_v44, %v5878_v44  ;;  %v1808_v33 = vsel %vm279_vm0, %v5878_v44, 0.0 }
 0x242   : > { %v1806_v22 = vsel %vm279_vm0, %v5880_v12, 0.0  ;;  %v1872_v26 = vmul.f32 %v5880_v12, %v5880_v12 }
 0x243   : > { %v1807_v8 = vadd.f32 %v1806_v22, %v1805_v62  ;;  %v1906_v51 = vadd.f32 %v1905_v7, %v1904_v43  ;;  %v1909_v50 = vsel %vm279_vm0, %v1873_v41, 0.0 }
 0x244   : > { %v1907_v27 = vsel %vm279_vm0, %v1872_v26, 0.0  ;;  %v5892_v63 = vpop.f32.mrb[6].mxu0 }
 0x245   : > { %v1908_v56 = vadd.f32 %v1907_v27, %v1906_v51  ;;  %v5894_v20 = vpop.f32.mrb[7].mxu0  ;;  %v1809_v23 = vadd.f32 %v1808_v33, %v1807_v8  ;;  %v1875_v34 = vmul.f32 %v5892_v63, %v5892_v63  ;;  %v1812_v38 = vsel %vm279_vm0, %v5892_v63, 0.0 }
 0x246   : > { %v1810_v14 = vsel %vm279_vm0, %v5894_v20, 0.0  ;;  %v1874_v25 = vmul.f32 %v5894_v20, %v5894_v20 }
 0x247   : > { %v1811_v13 = vadd.f32 %v1810_v14, %v1809_v23  ;;  %v1910_v17 = vadd.f32 %v1909_v50, %v1908_v56  ;;  %v1913_v35 = vsel %vm279_vm0, %v1875_v34, 0.0 }
 0x248   : > { %v1911_v28 = vsel %vm279_vm0, %v1874_v25, 0.0  ;;  %v5906_v48 = vpop.f32.mrb[8].mxu0 }
 0x249   : > { %v1912_v60 = vadd.f32 %v1911_v28, %v1910_v17  ;;  %v5908_v58 = vpop.f32.mrb[9].mxu0  ;;  %v1813_v29 = vadd.f32 %v1812_v38, %v1811_v13  ;;  %v1877_v40 = vmul.f32 %v5906_v48, %v5906_v48  ;;  %v1816_v54 = vsel %vm279_vm0, %v5906_v48, 0.0 }
 0x24a   : > { %v1814_v24 = vsel %vm279_vm0, %v5908_v58, 0.0  ;;  %v1876_v19 = vmul.f32 %v5908_v58, %v5908_v58 }
 0x24b   : > { %v1815_v47 = vadd.f32 %v1814_v24, %v1813_v29  ;;  %v1914_v57 = vadd.f32 %v1913_v35, %v1912_v60  ;;  %v1917_v42 = vsel %vm279_vm0, %v1877_v40, 0.0 }
 0x24c   : > { %v1915_v21 = vsel %vm279_vm0, %v1876_v19, 0.0  ;;  %v5920_v18 = vpop.f32.mrb[10].mxu0 }
 0x24d   : > { %v1916_v37 = vadd.f32 %v1915_v21, %v1914_v57  ;;  %v5922_v52 = vpop.f32.mrb[11].mxu0  ;;  %v1817_v16 = vadd.f32 %v1816_v54, %v1815_v47  ;;  %v1879_v39 = vmul.f32 %v5920_v18, %v5920_v18  ;;  %v1820_v45 = vsel %vm279_vm0, %v5920_v18, 0.0 }
 0x24e   : > { %v1818_v59 = vsel %vm279_vm0, %v5922_v52, 0.0  ;;  %v1878_v49 = vmul.f32 %v5922_v52, %v5922_v52 }
 0x24f   : > { %v1819_v46 = vadd.f32 %v1818_v59, %v1817_v16  ;;  %v1918_v30 = vadd.f32 %v1917_v42, %v1916_v37  ;;  %v1921_v7 = vsel %vm279_vm0, %v1879_v39, 0.0 }
 0x250   : > { %v1919_v32 = vsel %vm279_vm0, %v1878_v49, 0.0  ;;  %v5934_v0 = vpop.f32.mrb[12].mxu0 }
 0x251   : > { %v1920_v61 = vadd.f32 %v1919_v32, %v1918_v30  ;;  %v5936_v43 = vpop.f32.mrb[13].mxu0  ;;  %v1821_v62 = vadd.f32 %v1820_v45, %v1819_v46  ;;  %v1881_v41 = vmul.f32 %v5934_v0, %v5934_v0  ;;  %v1824_v33 = vsel %vm279_vm0, %v5934_v0, 0.0 }
 0x252   : > { %v1822_v22 = vsel %vm279_vm0, %v5936_v43, 0.0  ;;  %v1880_v26 = vmul.f32 %v5936_v43, %v5936_v43 }
 0x253   : > { %v1823_v8 = vadd.f32 %v1822_v22, %v1821_v62  ;;  %v1922_v51 = vadd.f32 %v1921_v7, %v1920_v61  ;;  %v1925_v14 = vsel %vm279_vm0, %v1881_v41, 0.0 }
 0x254   : > { %v1923_v27 = vsel %vm279_vm0, %v1880_v26, 0.0  ;;  %v5948_v56 = vpop.f32.mrb[14].mxu0 }
 0x255   : > { %v1924_v23 = vadd.f32 %v1923_v27, %v1922_v51  ;;  %v5950_v50 = vpop.f32.mrb[15].mxu0  ;;  %v1825_v34 = vadd.f32 %v1824_v33, %v1823_v8  ;;  %v1883_v25 = vmul.f32 %v5948_v56, %v5948_v56  ;;  %v1828_v60 = vsel %vm279_vm0, %v5948_v56, 0.0 }
 0x256   : > { %v1826_v13 = vsel %vm279_vm0, %v5950_v50, 0.0  ;;  %v1882_v17 = vmul.f32 %v5950_v50, %v5950_v50 }
 0x257   : > { %v1827_v38 = vadd.f32 %v1826_v13, %v1825_v34  ;;  %v1926_v28 = vadd.f32 %v1925_v14, %v1924_v23  ;;  %v1929_v47 = vsel %vm279_vm0, %v1883_v25, 0.0 }
 0x258   : > { %v1927_v29 = vsel %vm279_vm0, %v1882_v17, 0.0  ;;  %v5962_v35 = vpop.f32.mrb[16].mxu0 }
 0x259   : > { %v1928_v40 = vadd.f32 %v1927_v29, %v1926_v28  ;;  %v5964_v24 = vpop.f32.mrb[17].mxu0  ;;  %v1829_v19 = vadd.f32 %v1828_v60, %v1827_v38  ;;  %v1885_v57 = vmul.f32 %v5962_v35, %v5962_v35  ;;  %v1832_v42 = vsel %vm279_vm0, %v5962_v35, 0.0 }
 0x25a   : > { %v1830_v54 = vsel %vm279_vm0, %v5964_v24, 0.0  ;;  %v1884_v21 = vmul.f32 %v5964_v24, %v5964_v24 }
 0x25b   : > { %v1831_v37 = vadd.f32 %v1830_v54, %v1829_v19  ;;  %v1930_v16 = vadd.f32 %v1929_v47, %v1928_v40  ;;  %v1933_v45 = vsel %vm279_vm0, %v1885_v57, 0.0 }
 0x25c   : > { %v1931_v39 = vsel %vm279_vm0, %v1884_v21, 0.0  ;;  %v5976_v59 = vpop.f32.mrb[18].mxu0 }
 0x25d   : > { %v1932_v49 = vadd.f32 %v1931_v39, %v1930_v16  ;;  %v5978_v46 = vpop.f32.mrb[19].mxu0  ;;  %v1833_v30 = vadd.f32 %v1832_v42, %v1831_v37  ;;  %v1887_v32 = vmul.f32 %v5976_v59, %v5976_v59  ;;  %v1836_v22 = vsel %vm279_vm0, %v5976_v59, 0.0 }
 0x25e   : > { %v1834_v61 = vsel %vm279_vm0, %v5978_v46, 0.0  ;;  %v1886_v62 = vmul.f32 %v5978_v46, %v5978_v46 }
 0x25f   : > { %v1835_v7 = vadd.f32 %v1834_v61, %v1833_v30  ;;  %v1934_v41 = vadd.f32 %v1933_v45, %v1932_v49  ;;  %v1937_v23 = vsel %vm279_vm0, %v1887_v32, 0.0 }
 0x260   : > { %v1935_v26 = vsel %vm279_vm0, %v1886_v62, 0.0  ;;  %v5990_v8 = vpop.f32.mrb[20].mxu0 }
 0x261   : > { %v1936_v51 = vadd.f32 %v1935_v26, %v1934_v41  ;;  %v5992_v33 = vpop.f32.mrb[21].mxu0  ;;  %v1837_v27 = vadd.f32 %v1836_v22, %v1835_v7  ;;  %v1889_v34 = vmul.f32 %v5990_v8, %v5990_v8  ;;  %v1840_v38 = vsel %vm279_vm0, %v5990_v8, 0.0 }
 0x262   : > { %v1838_v14 = vsel %vm279_vm0, %v5992_v33, 0.0  ;;  %v1888_v25 = vmul.f32 %v5992_v33, %v5992_v33 }
 0x263   : > { %v1839_v13 = vadd.f32 %v1838_v14, %v1837_v27  ;;  %v1938_v17 = vadd.f32 %v1937_v23, %v1936_v51  ;;  %v1941_v47 = vsel %vm279_vm0, %v1889_v34, 0.0 }
 0x264   : > { %v1939_v28 = vsel %vm279_vm0, %v1888_v25, 0.0  ;;  %v6004_v60 = vpop.f32.mrb[22].mxu0 }
 0x265   : > { %v1940_v29 = vadd.f32 %v1939_v28, %v1938_v17  ;;  %v6006_v40 = vpop.f32.mrb[23].mxu0  ;;  %v1841_v19 = vadd.f32 %v1840_v38, %v1839_v13  ;;  %v1891_v57 = vmul.f32 %v6004_v60, %v6004_v60  ;;  %v1844_v42 = vsel %vm279_vm0, %v6004_v60, 0.0 }
 0x266   : > { %v1842_v54 = vsel %vm279_vm0, %v6006_v40, 0.0  ;;  %v1890_v21 = vmul.f32 %v6006_v40, %v6006_v40 }
 0x267   : > { %v1843_v37 = vadd.f32 %v1842_v54, %v1841_v19  ;;  %v1942_v16 = vadd.f32 %v1941_v47, %v1940_v29  ;;  %v1945_v61 = vsel %vm279_vm0, %v1891_v57, 0.0 }
 0x268   : > { %v1943_v39 = vsel %vm279_vm0, %v1890_v21, 0.0  ;;  %v6018_v49 = vpop.f32.mrb[24].mxu0 }
 0x269   : > { %v1944_v30 = vadd.f32 %v1943_v39, %v1942_v16  ;;  %v6020_v45 = vpop.f32.mrb[25].mxu0  ;;  %v1845_v32 = vadd.f32 %v1844_v42, %v1843_v37  ;;  %v1893_v62 = vmul.f32 %v6018_v49, %v6018_v49  ;;  %v1848_v51 = vsel %vm279_vm0, %v6018_v49, 0.0 }
 0x26a   : > { %v1846_v7 = vsel %vm279_vm0, %v6020_v45, 0.0  ;;  %v1892_v41 = vmul.f32 %v6020_v45, %v6020_v45 }
 0x26b   : > { %v1847_v22 = vadd.f32 %v1846_v7, %v1845_v32  ;;  %v1946_v26 = vadd.f32 %v1945_v61, %v1944_v30  ;;  %v1949_v13 = vsel %vm279_vm0, %v1893_v62, 0.0 }
 0x26c   : > { %v1947_v27 = vsel %vm279_vm0, %v1892_v41, 0.0  ;;  %v6032_v23 = vpop.f32.mrb[26].mxu0 }
 0x26d   : > { %v1948_v34 = vadd.f32 %v1947_v27, %v1946_v26  ;;  %v6034_v14 = vpop.f32.mrb[27].mxu0  ;;  %v1849_v25 = vadd.f32 %v1848_v51, %v1847_v22  ;;  %v1895_v17 = vmul.f32 %v6032_v23, %v6032_v23  ;;  %v1852_v47 = vsel %vm279_vm0, %v6032_v23, 0.0 }
 0x26e   : > { %v1850_v38 = vsel %vm279_vm0, %v6034_v14, 0.0  ;;  %v1894_v28 = vmul.f32 %v6034_v14, %v6034_v14 }
 0x26f   : > { %v1851_v29 = vadd.f32 %v1850_v38, %v1849_v25  ;;  %v1950_v19 = vadd.f32 %v1949_v13, %v1948_v34  ;;  %v1953_v42 = vsel %vm279_vm0, %v1895_v17, 0.0 }
 0x270   : > { %v1951_v57 = vsel %vm279_vm0, %v1894_v28, 0.0  ;;  %v6046_v54 = vpop.f32.mrb[28].mxu0 }
 0x271   : > { %v1952_v21 = vadd.f32 %v1951_v57, %v1950_v19  ;;  %v6048_v37 = vpop.f32.mrb[29].mxu0  ;;  %v1853_v16 = vadd.f32 %v1852_v47, %v1851_v29  ;;  %v1897_v39 = vmul.f32 %v6046_v54, %v6046_v54  ;;  %v1856_v7 = vsel %vm279_vm0, %v6046_v54, 0.0 }
 0x272   : > { %v1854_v30 = vsel %vm279_vm0, %v6048_v37, 0.0  ;;  %v1896_v32 = vmul.f32 %v6048_v37, %v6048_v37 }
 0x273   : > { %v1855_v61 = vadd.f32 %v1854_v30, %v1853_v16  ;;  %v1954_v62 = vadd.f32 %v1953_v42, %v1952_v21  ;;  %v1957_v34 = vsel %vm279_vm0, %v1897_v39, 0.0 }
 0x274   : > { %v1955_v41 = vsel %vm279_vm0, %v1896_v32, 0.0  ;;  %v6060_v22 = vpop.f32.mrb[30].mxu0 }
 0x275   : > { %v1956_v26 = vadd.f32 %v1955_v41, %v1954_v62  ;;  %v6062_v51 = vpop.f32.mrb[31].mxu0  ;;  %v1857_v27 = vadd.f32 %v1856_v7, %v1855_v61  ;;  %v1899_v25 = vmul.f32 %v6060_v22, %v6060_v22  ;;  %v1860_v29 = vsel %vm279_vm0, %v6060_v22, 0.0 }
 0x276   : > { %v1858_v13 = vsel %vm279_vm0, %v6062_v51, 0.0  ;;  %v1898_v17 = vmul.f32 %v6062_v51, %v6062_v51 }
 0x277   : > { %v1859_v38 = vadd.f32 %v1858_v13, %v1857_v27  ;;  %v1958_v28 = vadd.f32 %v1957_v34, %v1956_v26  ;;  %v1961_v21 = vsel %vm279_vm0, %v1899_v25, 0.0 }
 0x278   : > { %v1959_v19 = vsel %vm279_vm0, %v1898_v17, 0.0  ;;  %v2009_v17 = vlaneseq }
 0x279   : > { %v1861_v47 = vadd.f32 %v1860_v29, %v1859_v38  ;;  %v1960_v57 = vadd.f32 %v1959_v19, %v1958_v28 }
 0x27b   : > { %v1862_v16 = vrot.slane %v1861_v47, 4  ;;  %v1962_v42 = vadd.f32 %v1961_v21, %v1960_v57 }
 0x27d   : > { %v1863_v39 = vadd.f32 %v1862_v16, %v1861_v47  ;;  %v1963_v30 = vrot.slane %v1962_v42, 4 }
 0x27f   : > { %v1864_v32 = vrot.slane %v1863_v39, 2  ;;  %v1964_v61 = vadd.f32 %v1963_v30, %v1962_v42  ;;  %v6143_v30 = vshrl.u32 %v2009_v17, 7 }
 0x281   : > { %v1865_v62 = vadd.f32 %v1864_v32, %v1863_v39  ;;  %v1965_v7 = vrot.slane %v1964_v61, 2 }
 0x283   : > { %v1866_v41 = vrot.slane %v1865_v62, 1  ;;  %v1966_v27 = vadd.f32 %v1965_v7, %v1964_v61 }
 0x285   : > { %v1867_v26 = vadd.f32 %v1866_v41, %v1865_v62  ;;  %v1967_v34 = vrot.slane %v1966_v27, 1 }
 0x287   : > { %v1968_v13 = vadd.f32 %v1967_v34, %v1966_v27  ;;  %v6075_v11 = vmul.f32 0.00390625, %v1867_v26 }
 0x289   : > { %v1970_v38 = vmul.f32 0.00390625, %v1968_v13  ;;  %v1971_v25 = vmul.f32 %v6075_v11, %v6075_v11  ;;  %v2005_v28 = vsub.f32 %v6062_v51, %v6075_v11  ;;  %v1975_v29 = vsub.f32 %v5857_v53, %v6075_v11 }
 0x28a   : > { %v1976_v19 = vsub.f32 %v5851_v15, %v6075_v11  ;;  %v1977_v47 = vsub.f32 %v5867_v31, %v6075_v11  ;;  %v1978_v57 = vsub.f32 %v5865_v55, %v6075_v11  ;;  %v1979_v21 = vsub.f32 %v5880_v12, %v6075_v11 }
 0x28b   : > { %v1972_v16 = vsub.f32 %v1970_v38, %v1971_v25  ;;  %v1980_v42 = vsub.f32 %v5878_v44, %v6075_v11  ;;  %v1981_v51 = vsub.f32 %v5894_v20, %v6075_v11  ;;  %v1982_v53 = vsub.f32 %v5892_v63, %v6075_v11 }
 0x28c   : > { %v1983_v15 = vsub.f32 %v5908_v58, %v6075_v11  ;;  %v1984_v31 = vsub.f32 %v5906_v48, %v6075_v11  ;;  %v1985_v55 = vsub.f32 %v5922_v52, %v6075_v11  ;;  %v1986_v12 = vsub.f32 %v5920_v18, %v6075_v11 }
 0x28d   : > { %v1973_v39 = vadd.f32 1e-05, %v1972_v16  ;;  %v1987_v44 = vsub.f32 %v5936_v43, %v6075_v11  ;;  %v1988_v20 = vsub.f32 %v5934_v0, %v6075_v11  ;;  %v1989_v63 = vsub.f32 %v5950_v50, %v6075_v11 }
 0x28e   : > { %v1990_v58 = vsub.f32 %v5948_v56, %v6075_v11  ;;  %v1991_v48 = vsub.f32 %v5964_v24, %v6075_v11  ;;  %v1992_v52 = vsub.f32 %v5962_v35, %v6075_v11  ;;  %v1993_v18 = vsub.f32 %v5978_v46, %v6075_v11 }
 0x28f   : > { %4873 = vrsqrt.f32 %v1973_v39  ;;  %v1994_v43 = vsub.f32 %v5976_v59, %v6075_v11  ;;  %v1995_v0 = vsub.f32 %v5992_v33, %v6075_v11  ;;  %v1996_v50 = vsub.f32 %v5990_v8, %v6075_v11 }
 0x290   : > { %v1997_v56 = vsub.f32 %v6006_v40, %v6075_v11  ;;  %v1998_v24 = vsub.f32 %v6004_v60, %v6075_v11  ;;  %v1999_v35 = vsub.f32 %v6020_v45, %v6075_v11  ;;  %v2000_v46 = vsub.f32 %v6018_v49, %v6075_v11  ;;  %v2007_v49 = vld [vmem:[%s7351_s3] sm:$0x1] }
 0x291   : > { %v2001_v59 = vsub.f32 %v6034_v14, %v6075_v11  ;;  %v2002_v33 = vsub.f32 %v6032_v23, %v6075_v11  ;;  %v2003_v8 = vsub.f32 %v6048_v37, %v6075_v11  ;;  %v2004_v40 = vsub.f32 %v6046_v54, %v6075_v11  ;;  %v6154_v54 = vld [vmem:[%s7352_s4] ss:$0 sm:$0xff] }
 0x292   : > { %v2006_v60 = vsub.f32 %v6060_v22, %v6075_v11  ;;  %v7380_v45 = vsub.s32 0, %v6143_v30 }
 0x299   : > { %v4874_v14 = vpop.eup %4873 }
 0x29a   : > { %v2008_v32 = vmul.f32 %v4874_v14, %v2007_v49 }
 0x29c   : > { %v2012_v23 = vrot.slane %v2008_v32, %v7380_v45 }
 0x29e   : > { %v2043_v37 = vmul.f32 %v2012_v23, %v2005_v28  ;;  %v2013_v11 = vmul.f32 %v2012_v23, %v1975_v29  ;;  %v2014_v22 = vmul.f32 %v2012_v23, %v1976_v19  ;;  %v2015_v61 = vmul.f32 %v2012_v23, %v1977_v47 }
 0x29f   : > { %v2016_v62 = vmul.f32 %v2012_v23, %v1978_v57  ;;  %v2017_v7 = vmul.f32 %v2012_v23, %v1979_v21  ;;  %v2018_v41 = vmul.f32 %v2012_v23, %v1980_v42  ;;  %v2019_v27 = vmul.f32 %v2012_v23, %v1981_v51 }
 0x2a0   : > { %v2082_v26 = vadd.f32 %v6154_v54, %v2043_v37  ;;  %v2020_v34 = vmul.f32 %v2012_v23, %v1982_v53  ;;  %v2021_v13 = vmul.f32 %v2012_v23, %v1983_v15  ;;  %v2022_v17 = vmul.f32 %v2012_v23, %v1984_v31 }
 0x2a1   : > { %v2023_v38 = vmul.f32 %v2012_v23, %v1985_v55  ;;  %v2024_v25 = vmul.f32 %v2012_v23, %v1986_v12  ;;  %v2025_v16 = vmul.f32 %v2012_v23, %v1987_v44  ;;  %v2026_v39 = vmul.f32 %v2012_v23, %v1988_v20 }
 0x2a2   : > { %v2114_v49 = vmax.f32 %v2082_v26, 0.0  ;;  %v2027_v14 = vmul.f32 %v2012_v23, %v1989_v63  ;;  %v2028_v32 = vmul.f32 %v2012_v23, %v1990_v58  ;;  %v2029_v28 = vmul.f32 %v2012_v23, %v1991_v48 }
 0x2a3   : > { %v2030_v29 = vmul.f32 %v2012_v23, %v1992_v52  ;;  %v2031_v19 = vmul.f32 %v2012_v23, %v1993_v18  ;;  %v2032_v47 = vmul.f32 %v2012_v23, %v1994_v43  ;;  %v2033_v57 = vmul.f32 %v2012_v23, %v1995_v0 }
 0x2a4   : > { %2146 = vst.msk [vmem:[#allocation2 + $0x181] sm:$0xff] %vm279_vm0, %v2114_v49  ;;  %v2034_v21 = vmul.f32 %v2012_v23, %v1996_v50  ;;  %v2035_v42 = vmul.f32 %v2012_v23, %v1997_v56  ;;  %v2036_v51 = vmul.f32 %v2012_v23, %v1998_v24  ;;  %v2037_v53 = vmul.f32 %v2012_v23, %v1999_v35 }
 0x2a5   : > { %v2038_v15 = vmul.f32 %v2012_v23, %v2000_v46  ;;  %v2039_v31 = vmul.f32 %v2012_v23, %v2001_v59  ;;  %v2040_v55 = vmul.f32 %v2012_v23, %v2002_v33  ;;  %v2041_v12 = vmul.f32 %v2012_v23, %v2003_v8 }
 0x2a6   : > { %v2042_v44 = vmul.f32 %v2012_v23, %v2004_v40  ;;  %v2044_v20 = vmul.f32 %v2012_v23, %v2006_v60  ;;  %v2052_v63 = vadd.f32 %v6154_v54, %v2013_v11  ;;  %v2053_v58 = vadd.f32 %v6154_v54, %v2014_v22 }
 0x2a7   : > { %v2054_v48 = vadd.f32 %v6154_v54, %v2015_v61  ;;  %v2055_v52 = vadd.f32 %v6154_v54, %v2016_v62  ;;  %v2056_v18 = vadd.f32 %v6154_v54, %v2017_v7  ;;  %v2057_v43 = vadd.f32 %v6154_v54, %v2018_v41 }
 0x2a8   : > { %v2058_v0 = vadd.f32 %v6154_v54, %v2019_v27  ;;  %v2059_v50 = vadd.f32 %v6154_v54, %v2020_v34  ;;  %v2060_v56 = vadd.f32 %v6154_v54, %v2021_v13  ;;  %v2061_v24 = vadd.f32 %v6154_v54, %v2022_v17 }
 0x2a9   : > { %v2062_v35 = vadd.f32 %v6154_v54, %v2023_v38  ;;  %v2063_v46 = vadd.f32 %v6154_v54, %v2024_v25  ;;  %v2064_v59 = vadd.f32 %v6154_v54, %v2025_v16  ;;  %v2065_v33 = vadd.f32 %v6154_v54, %v2026_v39 }
 0x2aa   : > { %v2066_v8 = vadd.f32 %v6154_v54, %v2027_v14  ;;  %v2067_v40 = vadd.f32 %v6154_v54, %v2028_v32  ;;  %v2068_v60 = vadd.f32 %v6154_v54, %v2029_v28  ;;  %v2069_v23 = vadd.f32 %v6154_v54, %v2030_v29 }
 0x2ab   : > { %v2070_v37 = vadd.f32 %v6154_v54, %v2031_v19  ;;  %v6178_v11 = vadd.f32 %v6154_v54, %v2032_v47  ;;  %v6181_v22 = vadd.f32 %v6154_v54, %v2033_v57  ;;  %v6184_v61 = vadd.f32 %v6154_v54, %v2034_v21 }
 0x2ac   : > { %v6187_v62 = vadd.f32 %v6154_v54, %v2035_v42  ;;  %v6190_v7 = vadd.f32 %v6154_v54, %v2036_v51  ;;  %v6193_v41 = vadd.f32 %v6154_v54, %v2037_v53  ;;  %v6196_v27 = vadd.f32 %v6154_v54, %v2038_v15 }
 0x2ad   : > { %v6199_v26 = vadd.f32 %v6154_v54, %v2039_v31  ;;  %v6202_v34 = vadd.f32 %v6154_v54, %v2040_v55  ;;  %v6205_v13 = vadd.f32 %v6154_v54, %v2041_v12  ;;  %v6208_v17 = vadd.f32 %v6154_v54, %v2042_v44  ;;  %v4073_v12 = vld [vmem:[%s7350_s2 + $0x10] sm:$0xff] }
 0x2ae   : > { %v6211_v38 = vadd.f32 %v6154_v54, %v2044_v20  ;;  %v2084_v25 = vmax.f32 %v2052_v63, 0.0  ;;  %v2085_v16 = vmax.f32 %v2053_v58, 0.0  ;;  %v2086_v39 = vmax.f32 %v2054_v48, 0.0  ;;  %v4074_v48 = vld [vmem:[%s7350_s2 + $0x18] sm:$0xf] }
 0x2af   : > { %v2087_v49 = vmax.f32 %v2055_v52, 0.0  ;;  %v2088_v14 = vmax.f32 %v2056_v18, 0.0  ;;  %v2089_v32 = vmax.f32 %v2057_v43, 0.0  ;;  %v2090_v28 = vmax.f32 %v2058_v0, 0.0 }
 0x2b0   : > { %2116 = vst.msk [vmem:[#allocation2 + $0x19] sm:$0xff] %vm279_vm0, %v2084_v25  ;;  %2117 = vst.msk [vmem:[#allocation2 + $0x21] sm:$0xff] %vm279_vm0, %v2085_v16  ;;  %v2091_v29 = vmax.f32 %v2059_v50, 0.0  ;;  %v2092_v19 = vmax.f32 %v2060_v56, 0.0  ;;  %v2093_v47 = vmax.f32 %v2061_v24, 0.0  ;;  %v2094_v57 = vmax.f32 %v2062_v35, 0.0 }
 0x2b1   : > { %2118 = vst.msk [vmem:[#allocation2 + $0x31] sm:$0xff] %vm279_vm0, %v2086_v39  ;;  %v2095_v21 = vmax.f32 %v2063_v46, 0.0  ;;  %v2096_v54 = vmax.f32 %v2064_v59, 0.0  ;;  %v2097_v42 = vmax.f32 %v2065_v33, 0.0  ;;  %v2098_v51 = vmax.f32 %v2066_v8, 0.0  ;;  %2119 = vst.msk [vmem:[#allocation2 + $0x39] sm:$0xff] %vm279_vm0, %v2087_v49 }
 0x2b2   : > { %2120 = vst.msk [vmem:[#allocation2 + $0x49] sm:$0xff] %vm279_vm0, %v2088_v14  ;;  %2121 = vst.msk [vmem:[#allocation2 + $0x51] sm:$0xff] %vm279_vm0, %v2089_v32  ;;  %v2099_v53 = vmax.f32 %v2067_v40, 0.0  ;;  %v2100_v15 = vmax.f32 %v2068_v60, 0.0  ;;  %v2101_v31 = vmax.f32 %v2069_v23, 0.0  ;;  %v2102_v55 = vmax.f32 %v2070_v37, 0.0 }
 0x2b3   : > { %2122 = vst.msk [vmem:[#allocation2 + $0x61] sm:$0xff] %vm279_vm0, %v2090_v28  ;;  %2123 = vst.msk [vmem:[#allocation2 + $0x69] sm:$0xff] %vm279_vm0, %v2091_v29  ;;  %v2103_v44 = vmax.f32 %v6178_v11, 0.0  ;;  %v2104_v20 = vmax.f32 %v6181_v22, 0.0  ;;  %v2105_v63 = vmax.f32 %v6184_v61, 0.0  ;;  %v2106_v58 = vmax.f32 %v6187_v62, 0.0 }
 0x2b4   : > { %2124 = vst.msk [vmem:[#allocation2 + $0x79] sm:$0xff] %vm279_vm0, %v2092_v19  ;;  %2125 = vst.msk [vmem:[#allocation2 + $0x81] sm:$0xff] %vm279_vm0, %v2093_v47  ;;  %v2107_v52 = vmax.f32 %v6190_v7, 0.0  ;;  %v2108_v18 = vmax.f32 %v6193_v41, 0.0  ;;  %v2109_v43 = vmax.f32 %v6196_v27, 0.0  ;;  %v2110_v0 = vmax.f32 %v6199_v26, 0.0 }
 0x2b5   : > { %2126 = vst.msk [vmem:[#allocation2 + $0x91] sm:$0xff] %vm279_vm0, %v2094_v57  ;;  %2127 = vst.msk [vmem:[#allocation2 + $0x99] sm:$0xff] %vm279_vm0, %v2095_v21  ;;  %v2111_v50 = vmax.f32 %v6202_v34, 0.0  ;;  %v2112_v56 = vmax.f32 %v6205_v13, 0.0  ;;  %v2113_v24 = vmax.f32 %v6208_v17, 0.0  ;;  %v2115_v35 = vmax.f32 %v6211_v38, 0.0 }
 0x2b6   : > { %2128 = vst.msk [vmem:[#allocation2 + $0xa9] sm:$0xff] %vm279_vm0, %v2096_v54  ;;  %2129 = vst.msk [vmem:[#allocation2 + $0xb1] sm:$0xff] %vm279_vm0, %v2097_v42  ;;  %v4715_v46 = vpack.c.bf16 %v4074_v48, %v4073_v12 }
 0x2b7   : > { %2130 = vst.msk [vmem:[#allocation2 + $0xc1] sm:$0xff] %vm279_vm0, %v2098_v51  ;;  %2131 = vst.msk [vmem:[#allocation2 + $0xc9] sm:$0xff] %vm279_vm0, %v2099_v53  ;;  %v6258_v59 = vld [vmem:[#allocation2 + $0x20] sm:$0xff]  ;;  %v2153_v33 = vld [vmem:[#allocation2 + $0x28] sm:$0x3] }
 0x2b8   : > { %2132 = vst.msk [vmem:[#allocation2 + $0xd9] sm:$0xff] %vm279_vm0, %v2100_v15  ;;  %2133 = vst.msk [vmem:[#allocation2 + $0xe1] sm:$0xff] %vm279_vm0, %v2101_v31  ;;  %v6260_v8 = vld [vmem:[#allocation2 + $0x18] sm:$0xff]  ;;  %v2256_v40 = vrot.slane %v6258_v59, 1  ;;  %v2258_v60 = vrot.slane %v2153_v33, 1  ;;  %4717 = vmatprep.subr.msk.bf16.mxu1 %vm5133_vm7, %v4715_v46  ;;  %v2432_v37 = vrot.slane %v6258_v59, 2 }
 0x2b9   : > { %2134 = vst.msk [vmem:[#allocation2 + $0xf1] sm:$0xff] %vm279_vm0, %v2102_v55  ;;  %2135 = vst.msk [vmem:[#allocation2 + $0xf9] sm:$0xff] %vm279_vm0, %v2103_v44  ;;  %v2255_v23 = vrot.slane %v6260_v8, 1  ;;  %4720 = vmatpush3.bf16.msk.msra.mxu1 %vm5133_vm7, %v4715_v46  ;;  %v2434_v61 = vrot.slane %v2153_v33, 2  ;;  %v2431_v62 = vrot.slane %v6260_v8, 2  ;;  %v6276_v7 = vld [vmem:[#allocation2 + $0x38] sm:$0xff] }
 0x2ba   : > { %2136 = vst.msk [vmem:[#allocation2 + $0x109] sm:$0xff] %vm279_vm0, %v2104_v20  ;;  %2137 = vst.msk [vmem:[#allocation2 + $0x111] sm:$0xff] %vm279_vm0, %v2105_v63  ;;  %v2259_v11 = vsel %vm488_vm5, %v2256_v40, %v2258_v60  ;;  %v2156_v41 = vld [vmem:[#allocation2 + $0x40] sm:$0x3]  ;;  %v6280_v27 = vld [vmem:[#allocation2 + $0x30] sm:$0xff]  ;;  %v2261_v26 = vrot.slane %v6276_v7, 1 }
 0x2bb   : > { %2138 = vst.msk [vmem:[#allocation2 + $0x121] sm:$0xff] %vm279_vm0, %v2106_v58  ;;  %2139 = vst.msk [vmem:[#allocation2 + $0x129] sm:$0xff] %vm279_vm0, %v2107_v52  ;;  %v2257_v22 = vsel %vm488_vm5, %v2255_v23, %v2256_v40  ;;  %2336 = vrot.lane.b32.xlu1 %v2259_v11, %s4891_s13  ;;  %v2435_v34 = vsel %vm665_vm4, %v2432_v37, %v2434_v61  ;;  %v2433_v13 = vsel %vm665_vm4, %v2431_v62, %v2432_v37  ;;  %v6292_v32 = vld [vmem:[#allocation2 + $0x50] sm:$0xff]  ;;  %v2159_v28 = vld [vmem:[#allocation2 + $0x58] sm:$0x3] }
 0x2bc   : > { %2140 = vst.msk [vmem:[#allocation2 + $0x139] sm:$0xff] %vm279_vm0, %v2108_v18  ;;  %2141 = vst.msk [vmem:[#allocation2 + $0x141] sm:$0xff] %vm279_vm0, %v2109_v43  ;;  %2334 = vrot.lane.b32.xlu0 %v2257_v22, %s4891_s13  ;;  %v2263_v17 = vrot.slane %v2156_v41, 1  ;;  %v2260_v38 = vrot.slane %v6280_v27, 1  ;;  %v2437_v25 = vrot.slane %v6276_v7, 2  ;;  %v2439_v49 = vrot.slane %v2156_v41, 2 }
 0x2bd   : > { %2142 = vst.msk [vmem:[#allocation2 + $0x151] sm:$0xff] %vm279_vm0, %v2110_v0  ;;  %2143 = vst.msk [vmem:[#allocation2 + $0x159] sm:$0xff] %vm279_vm0, %v2111_v50  ;;  %v2436_v14 = vrot.slane %v6280_v27, 2  ;;  %v6296_v29 = vld [vmem:[#allocation2 + $0x48] sm:$0xff]  ;;  %v2266_v19 = vrot.slane %v6292_v32, 1  ;;  %v2268_v21 = vrot.slane %v2159_v28, 1 }
 0x2be   : > { %2144 = vst.msk [vmem:[#allocation2 + $0x169] sm:$0xff] %vm279_vm0, %v2112_v56  ;;  %2145 = vst.msk [vmem:[#allocation2 + $0x171] sm:$0xff] %vm279_vm0, %v2113_v24  ;;  %v2264_v16 = vsel %vm488_vm5, %v2261_v26, %v2263_v17  ;;  %v2262_v39 = vsel %vm488_vm5, %v2260_v38, %v2261_v26  ;;  %v2440_v47 = vsel %vm665_vm4, %v2437_v25, %v2439_v49  ;;  %v2265_v54 = vrot.slane %v6296_v29, 1  ;;  %v6308_v55 = vld [vmem:[#allocation2 + $0x68] sm:$0xff]  ;;  %v2162_v12 = vld [vmem:[#allocation2 + $0x70] sm:$0x3] }
 0x2bf   : > { %2147 = vst.msk [vmem:[#allocation2 + $0x189] sm:$0xff] %vm279_vm0, %v2115_v35  ;;  %2512 = vrot.lane.b32.xlu1 %v2435_v34, %s4890_s12  ;;  %v2438_v57 = vsel %vm665_vm4, %v2436_v14, %v2437_v25  ;;  %v2442_v42 = vrot.slane %v6292_v32, 2  ;;  %v2269_v51 = vsel %vm488_vm5, %v2266_v19, %v2268_v21  ;;  %v2444_v15 = vrot.slane %v2159_v28, 2  ;;  %v6312_v44 = vld [vmem:[#allocation2 + $0x60] sm:$0xff]  ;;  %v2165_v35 = vld [vmem:[#allocation2 + $0x88] sm:$0x3] }
 0x2c0   : > { %2510 = vrot.lane.b32.xlu0 %v2433_v13, %s4890_s12  ;;  %v2267_v53 = vsel %vm488_vm5, %v2265_v54, %v2266_v19  ;;  %v2441_v31 = vrot.slane %v6296_v29, 2  ;;  %v2271_v20 = vrot.slane %v6308_v55, 1  ;;  %v2273_v48 = vrot.slane %v2162_v12, 1  ;;  %v6324_v24 = vld [vmem:[#allocation2 + $0x80] sm:$0xff]  ;;  %v6328_v46 = vld [vmem:[#allocation2 + $0x78] sm:$0xff]  ;;  %v6344_v13 = vld [vmem:[#allocation2 + $0x90] sm:$0xff] }
 0x2c1   : > { %v2445_v63 = vsel %vm665_vm4, %v2442_v42, %v2444_v15  ;;  %v2270_v52 = vrot.slane %v6312_v44, 1  ;;  %v2447_v18 = vrot.slane %v6308_v55, 2  ;;  %v2449_v50 = vrot.slane %v2162_v12, 2  ;;  %v6340_v26 = vld [vmem:[#allocation2 + $0x98] sm:$0xff]  ;;  %v2168_v34 = vld [vmem:[#allocation2 + $0xa0] sm:$0x3] }
 0x2c2   : > { %v2443_v58 = vsel %vm665_vm4, %v2441_v31, %v2442_v42  ;;  %v2274_v43 = vsel %vm488_vm5, %v2271_v20, %v2273_v48  ;;  %v2446_v56 = vrot.slane %v6312_v44, 2  ;;  %v2276_v33 = vrot.slane %v6324_v24, 1  ;;  %v2171_v21 = vld [vmem:[#allocation2 + $0xb8] sm:$0x3]  ;;  %v6360_v54 = vld [vmem:[#allocation2 + $0xa8] sm:$0xff] }
 0x2c3   : > { %2340 = vrot.lane.b32.xlu1 %v2264_v16, %s4891_s13  ;;  %v2272_v0 = vsel %vm488_vm5, %v2270_v52, %v2271_v20  ;;  %v2450_v40 = vsel %vm665_vm4, %v2447_v18, %v2449_v50  ;;  %v2278_v23 = vrot.slane %v2165_v35, 1  ;;  %v2275_v37 = vrot.slane %v6328_v46, 1  ;;  %v6372_v52 = vld [vmem:[#allocation2 + $0xc8] sm:$0xff] }
 0x2c4   : > { %2338 = vrot.lane.b32.xlu0 %v2262_v39, %s4891_s13  ;;  %v2448_v60 = vsel %vm665_vm4, %v2446_v56, %v2447_v18  ;;  %v2452_v11 = vrot.slane %v6324_v24, 2  ;;  %v2454_v62 = vrot.slane %v2165_v35, 2  ;;  %v2451_v41 = vrot.slane %v6328_v46, 2  ;;  %v2174_v18 = vld [vmem:[#allocation2 + $0xd0] sm:$0x3] }
 0x2c5   : > { %v2279_v22 = vsel %vm488_vm5, %v2276_v33, %v2278_v23  ;;  %v2277_v61 = vsel %vm488_vm5, %v2275_v37, %v2276_v33  ;;  %v2281_v17 = vrot.slane %v6340_v26, 1  ;;  %v2283_v16 = vrot.slane %v2168_v34, 1 }
 0x2c6   : > { %v2455_v38 = vsel %vm665_vm4, %v2452_v11, %v2454_v62  ;;  %v2453_v25 = vsel %vm665_vm4, %v2451_v41, %v2452_v11  ;;  %v2280_v39 = vrot.slane %v6344_v13, 1  ;;  %v2457_v49 = vrot.slane %v6340_v26, 2  ;;  %v6399_v41 = vld [vmem:[#allocation2 + $0xe0] sm:$0xff] }
 0x2c7   : > { %2516 = vrot.lane.b32.xlu1 %v2440_v47, %s4890_s12  ;;  %v2284_v14 = vsel %vm488_vm5, %v2281_v17, %v2283_v16  ;;  %v2459_v19 = vrot.slane %v2168_v34, 2  ;;  %v2456_v47 = vrot.slane %v6344_v13, 2  ;;  %v2288_v15 = vrot.slane %v2171_v21, 1  ;;  %v2177_v34 = vld [vmem:[#allocation2 + $0xe8] sm:$0x3] }
 0x2c8   : > { %2514 = vrot.lane.b32.xlu0 %v2438_v57, %s4890_s12  ;;  %v2282_v28 = vsel %vm488_vm5, %v2280_v39, %v2281_v17  ;;  %v6356_v57 = vld [vmem:[#allocation2 + $0xb0] sm:$0xff]  ;;  %v2285_v31 = vrot.slane %v6360_v54, 1  ;;  %v2461_v48 = vrot.slane %v6360_v54, 2  ;;  %v2293_v35 = vrot.slane %v2174_v18, 1  ;;  %v6403_v17 = vld [vmem:[#allocation2 + $0xd8] sm:$0xff] }
 0x2c9   : > { %v2286_v42 = vrot.slane %v6356_v57, 1  ;;  %v2462_v12 = vrot.slane %v6356_v57, 2  ;;  %v2467_v37 = vrot.slane %v6372_v52, 2  ;;  %v2298_v39 = vrot.slane %v2177_v34, 1 }
 0x2cb   : > { %2344 = vrot.lane.b32.xlu1 %v2269_v51, %s4891_s13  ;;  %v2460_v51 = vsel %vm665_vm4, %v2457_v49, %v2459_v19  ;;  %v2289_v20 = vsel %vm488_vm5, %v2286_v42, %v2288_v15  ;;  %v2463_v56 = vsel %vm665_vm4, %v2461_v48, %v2462_v12 }
 0x2cc   : > { %2342 = vrot.lane.b32.xlu0 %v2267_v53, %s4891_s13  ;;  %v2458_v53 = vsel %vm665_vm4, %v2456_v47, %v2457_v49  ;;  %v2295_v49 = vrot.slane %v6403_v17, 1  ;;  %v2474_v47 = vrot.slane %v2177_v34, 2 }
 0x2cf   : > { %2520 = vrot.lane.b32.xlu1 %v2445_v63, %s4890_s12  ;;  %v2287_v63 = vsel %vm488_vm5, %v2285_v31, %v2286_v42  ;;  %v6415_v42 = vld [vmem:[#allocation2 + $0xf8] sm:$0xff] }
 0x2d0   : > { %2518 = vrot.lane.b32.xlu0 %v2443_v58, %s4890_s12  ;;  %v2464_v58 = vrot.slane %v2171_v21, 2  ;;  %v2471_v21 = vrot.slane %v6403_v17, 2  ;;  %v2301_v15 = vrot.slane %v6415_v42, 1 }
 0x2d2   : > { %v2465_v50 = vsel %vm665_vm4, %v2462_v12, %v2464_v58  ;;  %v2477_v58 = vrot.slane %v6415_v42, 2 }
 0x2d3   : > { %2348 = vrot.lane.b32.xlu1 %v2274_v43, %s4891_s13  ;;  %v6376_v43 = vld [vmem:[#allocation2 + $0xc0] sm:$0xff] }
 0x2d4   : > { %2346 = vrot.lane.b32.xlu0 %v2272_v0, %s4891_s13  ;;  %v2291_v0 = vrot.slane %v6372_v52, 1  ;;  %v2290_v33 = vrot.slane %v6376_v43, 1  ;;  %v2466_v62 = vrot.slane %v6376_v43, 2 }
 0x2d6   : > { %v2294_v11 = vsel %vm488_vm5, %v2291_v0, %v2293_v35  ;;  %v2468_v16 = vsel %vm665_vm4, %v2466_v62, %v2467_v37  ;;  %v2183_v35 = vld [vmem:[#allocation2 + $0x118] sm:$0x3] }
 0x2d7   : > { %2524 = vrot.lane.b32.xlu1 %v2450_v40, %s4890_s12  ;;  %v2666_v40 = vld [vmem:[%s7350_s2] sm:$0xff] }
 0x2d8   : > { %2522 = vrot.lane.b32.xlu0 %v2448_v60, %s4890_s12  ;;  %v2667_v60 = vld [vmem:[%s7350_s2 + $0x8] sm:$0xf] }
 0x2d9   : > { %v6390_v23 = vpack.c.bf16 %v2667_v60, %v2666_v40 }
 0x2db   : > { %2352 = vrot.lane.b32.xlu1 %v2279_v22, %s4891_s13  ;;  %4723 = vmatprep.subr.msk.bf16.mxu1 %vm5133_vm7, %v6390_v23  ;;  %v2292_v22 = vsel %vm488_vm5, %v2290_v33, %v2291_v0  ;;  %v6435_v33 = vld [vmem:[#allocation2 + $0x108] sm:$0xff] }
 0x2dc   : > { %2350 = vrot.lane.b32.xlu0 %v2277_v61, %s4891_s13  ;;  %v2469_v61 = vrot.slane %v2174_v18, 2 }
 0x2df   : > { %2528 = vrot.lane.b32.xlu1 %v2455_v38, %s4890_s12  ;;  %v2296_v38 = vrot.slane %v6399_v41, 1 }
 0x2e0   : > { %2526 = vrot.lane.b32.xlu0 %v2453_v25, %s4890_s12  ;;  %v2470_v25 = vsel %vm665_vm4, %v2467_v37, %v2469_v61 }
 0x2e1   : > { %v2297_v19 = vsel %vm488_vm5, %v2295_v49, %v2296_v38  ;;  %v6451_v49 = vld [vmem:[#allocation2 + $0x120] sm:$0xff] }
 0x2e3   : > { %2356 = vrot.lane.b32.xlu1 %v2284_v14, %s4891_s13  ;;  %v2472_v14 = vrot.slane %v6399_v41, 2 }
 0x2e4   : > { %2354 = vrot.lane.b32.xlu0 %v2282_v28, %s4891_s13  ;;  %v2299_v28 = vsel %vm488_vm5, %v2296_v38, %v2298_v39  ;;  %v2484_v38 = vrot.slane %v2183_v35, 2  ;;  %v2186_v39 = vld [vmem:[#allocation2 + $0x130] sm:$0x3] }
 0x2e5   : > { %v2475_v31 = vsel %vm665_vm4, %v2472_v14, %v2474_v47  ;;  %v2473_v12 = vsel %vm665_vm4, %v2471_v21, %v2472_v14  ;;  %v2313_v47 = vrot.slane %v2186_v39, 1  ;;  %v2310_v21 = vrot.slane %v6451_v49, 1 }
 0x2e7   : > { %2532 = vrot.lane.b32.xlu1 %v2460_v51, %s4890_s12  ;;  %v2180_v51 = vld [vmem:[#allocation2 + $0x100] sm:$0x3] }
 0x2e8   : > { %2530 = vrot.lane.b32.xlu0 %v2458_v53, %s4890_s12  ;;  %v6419_v53 = vld [vmem:[#allocation2 + $0xf0] sm:$0xff]  ;;  %v2479_v0 = vrot.slane %v2180_v51, 2 }
 0x2ea   : > { %v2480_v60 = vsel %vm665_vm4, %v2477_v58, %v2479_v0 }
 0x2eb   : > { %2360 = vrot.lane.b32.xlu1 %v2289_v20, %s4891_s13  ;;  %v2303_v20 = vrot.slane %v2180_v51, 1 }
 0x2ec   : > { %2358 = vrot.lane.b32.xlu0 %v2287_v63, %s4891_s13  ;;  %v2300_v63 = vrot.slane %v6419_v53, 1 }
 0x2ed   : > { %v2304_v48 = vsel %vm488_vm5, %v2301_v15, %v2303_v20  ;;  %v2486_v20 = vrot.slane %v6451_v49, 2 }
 0x2ee   : > { %v2302_v18 = vsel %vm488_vm5, %v2300_v63, %v2301_v15  ;;  %v6463_v63 = vld [vmem:[#allocation2 + $0x140] sm:$0xff] }
 0x2ef   : > { %2536 = vrot.lane.b32.xlu1 %v2465_v50, %s4890_s12  ;;  %v2476_v50 = vrot.slane %v6419_v53, 2 }
 0x2f0   : > { %2534 = vrot.lane.b32.xlu0 %v2463_v56, %s4890_s12  ;;  %v6431_v56 = vld [vmem:[#allocation2 + $0x110] sm:$0xff] }
 0x2f1   : > { %v2306_v40 = vrot.slane %v6431_v56, 1  ;;  %v2478_v37 = vsel %vm665_vm4, %v2476_v50, %v2477_v58  ;;  %v2482_v61 = vrot.slane %v6431_v56, 2  ;;  %v2189_v58 = vld [vmem:[#allocation2 + $0x148] sm:$0x3] }
 0x2f3   : > { %2364 = vrot.lane.b32.xlu1 %v2294_v11, %s4891_s13  ;;  %v2308_v11 = vrot.slane %v2183_v35, 1  ;;  %v2318_v35 = vrot.slane %v2189_v58, 1 }
 0x2f4   : > { %2362 = vrot.lane.b32.xlu0 %v2292_v22, %s4891_s13  ;;  %v2305_v22 = vrot.slane %v6435_v33, 1 }
 0x2f5   : > { %v2309_v62 = vsel %vm488_vm5, %v2306_v40, %v2308_v11 }
 0x2f6   : > { %v2307_v34 = vsel %vm488_vm5, %v2305_v22, %v2306_v40  ;;  %v2494_v22 = vrot.slane %v2189_v58, 2  ;;  %v6499_v58 = vld [vmem:[#allocation2 + $0x168] sm:$0xff] }
 0x2f7   : > { %2540 = vrot.lane.b32.xlu1 %v2470_v25, %s4890_s12  ;;  %v2481_v25 = vrot.slane %v6435_v33, 2 }
 0x2f8   : > { %2538 = vrot.lane.b32.xlu0 %v2468_v16, %s4890_s12  ;;  %v6447_v16 = vld [vmem:[#allocation2 + $0x128] sm:$0xff] }
 0x2f9   : > { %v2311_v14 = vrot.slane %v6447_v16, 1  ;;  %v2487_v51 = vrot.slane %v6447_v16, 2 }
 0x2fb   : > { %2368 = vrot.lane.b32.xlu1 %v2299_v28, %s4891_s13  ;;  %v2485_v28 = vsel %vm665_vm4, %v2482_v61, %v2484_v38  ;;  %v2314_v15 = vsel %vm488_vm5, %v2311_v14, %v2313_v47  ;;  %v2488_v50 = vsel %vm665_vm4, %v2486_v20, %v2487_v51  ;;  %v6483_v38 = vld [vmem:[#allocation2 + $0x150] sm:$0xff]  ;;  %v2195_v20 = vld [vmem:[#allocation2 + $0x178] sm:$0x3] }
 0x2fc   : > { %2366 = vrot.lane.b32.xlu0 %v2297_v19, %s4891_s13  ;;  %v2483_v19 = vsel %vm665_vm4, %v2481_v25, %v2482_v61 }
 0x2ff   : > { %2544 = vrot.lane.b32.xlu1 %v2475_v31, %s4890_s12  ;;  %v2312_v31 = vsel %vm488_vm5, %v2310_v21, %v2311_v14 }
 0x300   : > { %2542 = vrot.lane.b32.xlu0 %v2473_v12, %s4890_s12  ;;  %v2489_v12 = vrot.slane %v2186_v39, 2 }
 0x302   : > { %v2490_v0 = vsel %vm665_vm4, %v2487_v51, %v2489_v12  ;;  %v6495_v12 = vld [vmem:[#allocation2 + $0x170] sm:$0xff] }
 0x303   : > { %2372 = vrot.lane.b32.xlu1 %v2304_v48, %s4891_s13  ;;  %v6467_v48 = vld [vmem:[#allocation2 + $0x138] sm:$0xff] }
 0x304   : > { %2370 = vrot.lane.b32.xlu0 %v2302_v18, %s4891_s13  ;;  %v2316_v18 = vrot.slane %v6463_v63, 1  ;;  %v2315_v40 = vrot.slane %v6467_v48, 1  ;;  %v2491_v61 = vrot.slane %v6467_v48, 2 }
 0x306   : > { %v2317_v11 = vsel %vm488_vm5, %v2315_v40, %v2316_v18  ;;  %v2325_v40 = vrot.slane %v6499_v58, 1 }
 0x307   : > { %2548 = vrot.lane.b32.xlu1 %v2480_v60, %s4890_s12  ;;  %v2492_v60 = vrot.slane %v6463_v63, 2 }
 0x308   : > { %2546 = vrot.lane.b32.xlu0 %v2478_v37, %s4890_s12  ;;  %v2319_v37 = vsel %vm488_vm5, %v2316_v18, %v2318_v35  ;;  %v2326_v18 = vrot.slane %v6495_v12, 1  ;;  %v2328_v35 = vrot.slane %v2195_v20, 1 }
 0x309   : > { %v2495_v39 = vsel %vm665_vm4, %v2492_v60, %v2494_v22  ;;  %v2493_v14 = vsel %vm665_vm4, %v2491_v61, %v2492_v60  ;;  %v6507_v60 = vpop.permute.xlu1 %2332 }
 0x30a   : > { %v2329_v22 = vsel %vm488_vm5, %v2326_v18, %v2328_v35  ;;  %v2327_v61 = vsel %vm488_vm5, %v2325_v40, %v2326_v18 }
 0x30b   : > { %2376 = vrot.lane.b32.xlu1 %v2309_v62, %s4891_s13  ;;  %v6479_v62 = vld [vmem:[#allocation2 + $0x158] sm:$0xff] }
 0x30c   : > { %2374 = vrot.lane.b32.xlu0 %v2307_v34, %s4891_s13  ;;  %v2192_v34 = vld [vmem:[#allocation2 + $0x160] sm:$0x3]  ;;  %v2321_v25 = vrot.slane %v6479_v62, 1  ;;  %v2497_v47 = vrot.slane %v6479_v62, 2 }
 0x30f   : > { %2552 = vrot.lane.b32.xlu1 %v2485_v28, %s4890_s12  ;;  %v2323_v28 = vrot.slane %v2192_v34, 1 }
 0x310   : > { %2550 = vrot.lane.b32.xlu0 %v2483_v19, %s4890_s12  ;;  %v2320_v19 = vrot.slane %v6483_v38, 1 }
 0x311   : > { %v2324_v21 = vsel %vm488_vm5, %v2321_v25, %v2323_v28  ;;  %v2198_v28 = vld [vmem:[#allocation2 + $0x190] sm:$0x3] }
 0x312   : > { %v2322_v51 = vsel %vm488_vm5, %v2320_v19, %v2321_v25  ;;  %v2501_v25 = vrot.slane %v6499_v58, 2 }
 0x313   : > { %2380 = vrot.lane.b32.xlu1 %v2314_v15, %s4891_s13  ;;  %v2499_v15 = vrot.slane %v2192_v34, 2  ;;  %v2504_v34 = vrot.slane %v2195_v20, 2  ;;  %v2674_v20 = vrot.slane %v2198_v28, 1 }
 0x314   : > { %2378 = vrot.lane.b32.xlu0 %v2312_v31, %s4891_s13  ;;  %v2496_v31 = vrot.slane %v6483_v38, 2 }
 0x317   : > { %2556 = vrot.lane.b32.xlu1 %v2490_v0, %s4890_s12  ;;  %v2500_v0 = vsel %vm665_vm4, %v2497_v47, %v2499_v15 }
 0x318   : > { %2554 = vrot.lane.b32.xlu0 %v2488_v50, %s4890_s12  ;;  %v2498_v50 = vsel %vm665_vm4, %v2496_v31, %v2497_v47 }
 0x31b   : > { %2384 = vrot.lane.b32.xlu1 %v2319_v37, %s4891_s13  ;;  %v6509_v37 = vpop.permute.xlu0 %2330 }
 0x31c   : > { %2382 = vrot.lane.b32.xlu0 %v2317_v11, %s4891_s13  ;;  %v2502_v11 = vrot.slane %v6495_v12, 2 }
 0x31e   : > { %v2503_v15 = vsel %vm665_vm4, %v2501_v25, %v2502_v11 }
 0x31f   : > { %2560 = vrot.lane.b32.xlu1 %v2495_v39, %s4890_s12  ;;  %v6515_v39 = vld [vmem:[#allocation2 + $0x180] sm:$0xff] }
 0x320   : > { %2558 = vrot.lane.b32.xlu0 %v2493_v14, %s4890_s12  ;;  %v6519_v14 = vld [vmem:[#allocation2 + $0x188] sm:$0xff]  ;;  %v2682_v18 = vrot.slane %v6515_v39, 2 }
 0x321   : > { %v2672_v31 = vrot.slane %v6519_v14, 1 }
 0x323   : > { %2388 = vrot.lane.b32.xlu1 %v2324_v21, %s4891_s13  ;;  %v2671_v21 = vrot.slane %v6515_v39, 1 }
 0x324   : > { %2386 = vrot.lane.b32.xlu0 %v2322_v51, %s4891_s13  ;;  %v2505_v51 = vsel %vm665_vm4, %v2502_v11, %v2504_v34  ;;  %v2685_v11 = vrot.slane %v2198_v28, 2  ;;  %v4142_v34 = vld [vmem:[%s7350_s2 + $0x28] sm:$0xf] }
 0x325   : > { %v6549_v28 = vld [vmem:[#allocation2 + $0x8] sm:$0xff] }
 0x327   : > { %2564 = vrot.lane.b32.xlu1 %v2500_v0, %s4890_s12 }
 0x328   : > { %2562 = vrot.lane.b32.xlu0 %v2498_v50, %s4890_s12 }
 0x32b   : > { %2392 = vrot.lane.b32.xlu1 %v2329_v22, %s4891_s13  ;;  %v2683_v22 = vrot.slane %v6519_v14, 2 }
 0x32c   : > { %2390 = vrot.lane.b32.xlu0 %v2327_v61, %s4891_s13  ;;  %v4141_v61 = vld [vmem:[%s7350_s2 + $0x20] sm:$0xff] }
 0x32d   : > { %v2337_v19 = vpop.permute.xlu1 %2336 }
 0x32e   : > { %v2335_v47 = vpop.permute.xlu0 %2334  ;;  %v2605_v0 = vsel %vm279_vm0, %v6258_v59, %v2337_v19  ;;  %v2675_v59 = vsel %vm488_vm5, %v2672_v31, %v2674_v20 }
 0x32f   : > { %2568 = vrot.lane.b32.xlu1 %v2505_v51, %s4890_s12  ;;  %v2604_v50 = vsel %vm279_vm0, %v6260_v8, %v2335_v47  ;;  %v2673_v8 = vsel %vm488_vm5, %v2671_v21, %v2672_v31  ;;  %v2427_v47 = vrot.slane %v6549_v28, 2  ;;  %v4878_v51 = vld [vmem:[#allocation2 + $0x10] sm:$0x3]  ;;  %v6557_v31 = vpack.c.bf16 %v4142_v34, %v4141_v61 }
 0x330   : > { %2566 = vrot.lane.b32.xlu0 %v2503_v15, %s4890_s12  ;;  %v2429_v15 = vrot.slane %v4878_v51, 2  ;;  %v2684_v51 = vsel %vm665_vm4, %v2682_v18, %v2683_v22 }
 0x331   : > { %v2513_v35 = vpop.permute.xlu1 %2512 }
 0x332   : > { %v2511_v40 = vpop.permute.xlu0 %2510  ;;  %v6540_v25 = vsel %vm874_vm8, %v2605_v0, %v2513_v35  ;;  %v6554_v0 = vld [vmem:[#allocation2] sm:$0xff]  ;;  %v6561_v35 = vld [vmem:[#allocation2 + $0x198] sm:$0xff]  ;;  %v2430_v61 = vsel %vm665_vm4, %v2427_v47, %v2429_v15 }
 0x333   : > { %v6545_v19 = vsel %vm874_vm8, %v2604_v50, %v2511_v40  ;;  %2678 = vrot.lane.b32.xlu1 %v2675_v59, %s4891_s13  ;;  %v2426_v21 = vrot.slane %v6554_v0, 2  ;;  %v6563_v40 = vld [vmem:[#allocation2 + $0x1a0] sm:$0xff]  ;;  %v2201_v59 = vld [vmem:[#allocation2 + $0x1a8] sm:$0x3] }
 0x334   : > { %2676 = vrot.lane.b32.xlu0 %v2673_v8, %s4891_s13  ;;  %4545 = vmatprep.mubr.msk.f32.mxu1 %vm941_vm9, %v6545_v19  ;;  %v2686_v8 = vsel %vm665_vm4, %v2683_v22, %v2685_v11  ;;  %v3261_v11 = vrot.slane %v6561_v35, 1  ;;  %v3262_v18 = vrot.slane %v6563_v40, 1  ;;  %v3264_v22 = vrot.slane %v2201_v59, 1 }
 0x335   : > { %4546 = vmatmul.mubr.msk.f32.vlgmr.msra.gmra.mrb[0].mxu1 %vm941_vm9, %v6540_v25  ;;  %v2341_v20 = vpop.permute.xlu1 %2340  ;;  %v2428_v34 = vsel %vm665_vm4, %v2426_v21, %v2427_v47 }
 0x336   : > { %v2339_v50 = vpop.permute.xlu0 %2338  ;;  %4726 = vmatpush3.bf16.msk.msra.mxu1 %vm5133_vm7, %v6390_v23  ;;  %v2607_v23 = vsel %vm279_vm0, %v6276_v7, %v2341_v20  ;;  %v3263_v7 = vsel %vm488_vm5, %v3261_v11, %v3262_v18  ;;  %v3265_v21 = vsel %vm488_vm5, %v3262_v18, %v3264_v22  ;;  %v3273_v20 = vrot.slane %v6563_v40, 2 }
 0x337   : > { %2689 = vrot.lane.b32.xlu1 %v2686_v8, %s4890_s12  ;;  %4729 = vmatprep.subr.msk.bf16.mxu1 %vm5133_vm7, %v6557_v31  ;;  %v2606_v8 = vsel %vm279_vm0, %v6280_v27, %v2339_v50  ;;  %v3272_v27 = vrot.slane %v6561_v35, 2 }
 0x338   : > { %2687 = vrot.lane.b32.xlu0 %v2684_v51, %s4890_s12 }
 0x339   : > { %v2517_v51 = vpop.permute.xlu1 %2516 }
 0x33a   : > { %v2515_v45 = vpop.permute.xlu0 %2514  ;;  %v6584_v15 = vsel %vm874_vm8, %v2607_v23, %v2517_v51  ;;  %v3275_v23 = vrot.slane %v2201_v59, 2 }
 0x33b   : > { %v6587_v47 = vsel %vm874_vm8, %v2606_v8, %v2515_v45  ;;  %2508 = vrot.lane.b32.xlu1 %v2430_v61, %s4890_s12  ;;  %v3274_v61 = vsel %vm665_vm4, %v3272_v27, %v3273_v20 }
 0x33c   : > { %2506 = vrot.lane.b32.xlu0 %v2428_v34, %s4890_s12  ;;  %4548 = vmatprep.mubr.msk.f32.mxu1 %vm941_vm9, %v6587_v47  ;;  %v3276_v8 = vsel %vm665_vm4, %v3273_v20, %v3275_v23 }
 0x33d   : > { %4549 = vmatmul.mubr.msk.f32.gmra.mrb[2].mxu1 %vm941_vm9, %v6584_v15  ;;  %v2345_v45 = vpop.permute.xlu1 %2344 }
 0x33e   : > { %v2343_v50 = vpop.permute.xlu0 %2342  ;;  %v2609_v34 = vsel %vm279_vm0, %v6292_v32, %v2345_v45 }
 0x33f   : > { %3268 = vrot.lane.b32.xlu1 %v3265_v21, %s4891_s13  ;;  %v2608_v11 = vsel %vm279_vm0, %v6296_v29, %v2343_v50 }
 0x340   : > { %3266 = vrot.lane.b32.xlu0 %v3263_v7, %s4891_s13 }
 0x341   : > { %v2521_v18 = vpop.permute.xlu1 %2520 }
 0x342   : > { %v2519_v22 = vpop.permute.xlu0 %2518  ;;  %v6608_v51 = vsel %vm874_vm8, %v2609_v34, %v2521_v18 }
 0x343   : > { %v6611_v59 = vsel %vm874_vm8, %v2608_v11, %v2519_v22  ;;  %3279 = vrot.lane.b32.xlu1 %v3276_v8, %s4890_s12 }
 0x344   : > { %4551 = vmatprep.mubr.msk.f32.mxu1 %vm941_vm9, %v6611_v59  ;;  %3277 = vrot.lane.b32.xlu0 %v3274_v61, %s4890_s12 }
 0x345   : > { %4552 = vmatmul.mubr.msk.f32.gmra.mrb[4].mxu1 %vm941_vm9, %v6608_v51  ;;  %v2349_v32 = vpop.permute.xlu1 %2348 }
 0x346   : > { %v2347_v29 = vpop.permute.xlu0 %2346  ;;  %v2611_v7 = vsel %vm279_vm0, %v6308_v55, %v2349_v32 }
 0x347   : > { %v2610_v21 = vsel %vm279_vm0, %v6312_v44, %v2347_v29 }
 0x349   : > { %v2525_v27 = vpop.permute.xlu1 %2524 }
 0x34a   : > { %v2523_v20 = vpop.permute.xlu0 %2522  ;;  %v6624_v45 = vsel %vm874_vm8, %v2611_v7, %v2525_v27 }
 0x34b   : > { %v6627_v50 = vsel %vm874_vm8, %v2610_v21, %v2523_v20 }
 0x34c   : > { %4554 = vmatprep.mubr.msk.f32.mxu1 %vm941_vm9, %v6627_v50 }
 0x34d   : > { %4555 = vmatmul.mubr.msk.f32.gmra.mrb[6].mxu1 %vm941_vm9, %v6624_v45  ;;  %v2353_v23 = vpop.permute.xlu1 %2352 }
 0x34e   : > { %v2351_v61 = vpop.permute.xlu0 %2350  ;;  %v2613_v55 = vsel %vm279_vm0, %v6324_v24, %v2353_v23 }
 0x34f   : > { %v2612_v44 = vsel %vm279_vm0, %v6328_v46, %v2351_v61 }
 0x351   : > { %v2529_v34 = vpop.permute.xlu1 %2528 }
 0x352   : > { %v2527_v11 = vpop.permute.xlu0 %2526  ;;  %v6638_v18 = vsel %vm874_vm8, %v2613_v55, %v2529_v34 }
 0x353   : > { %v6641_v22 = vsel %vm874_vm8, %v2612_v44, %v2527_v11 }
 0x354   : > { %4557 = vmatprep.mubr.msk.f32.mxu1 %vm941_vm9, %v6641_v22 }
 0x355   : > { %4558 = vmatmul.mubr.msk.f32.gmra.mrb[8].mxu1 %vm941_vm9, %v6638_v18  ;;  %v2357_v8 = vpop.permute.xlu1 %2356 }
 0x356   : > { %v2355_v32 = vpop.permute.xlu0 %2354  ;;  %v2615_v24 = vsel %vm279_vm0, %v6340_v26, %v2357_v8 }
 0x357   : > { %v2614_v46 = vsel %vm279_vm0, %v6344_v13, %v2355_v32 }
 0x359   : > { %v2533_v29 = vpop.permute.xlu1 %2532 }
 0x35a   : > { %v2531_v7 = vpop.permute.xlu0 %2530  ;;  %v6652_v21 = vsel %vm874_vm8, %v2615_v24, %v2533_v29 }
 0x35b   : > { %v6655_v27 = vsel %vm874_vm8, %v2614_v46, %v2531_v7 }
 0x35c   : > { %4560 = vmatprep.mubr.msk.f32.mxu1 %vm941_vm9, %v6655_v27 }
 0x35d   : > { %4561 = vmatmul.mubr.msk.f32.gmra.mrb[10].mxu1 %vm941_vm9, %v6652_v21  ;;  %v2361_v20 = vpop.permute.xlu1 %2360 }
 0x35e   : > { %v2359_v23 = vpop.permute.xlu0 %2358  ;;  %v2617_v26 = vsel %vm279_vm0, %v6356_v57, %v2361_v20 }
 0x35f   : > { %v2616_v13 = vsel %vm279_vm0, %v6360_v54, %v2359_v23 }
 0x361   : > { %v2537_v61 = vpop.permute.xlu1 %2536 }
 0x362   : > { %v2535_v55 = vpop.permute.xlu0 %2534  ;;  %v6666_v44 = vsel %vm874_vm8, %v2617_v26, %v2537_v61 }
 0x363   : > { %v6669_v34 = vsel %vm874_vm8, %v2616_v13, %v2535_v55 }
 0x364   : > { %4563 = vmatprep.mubr.msk.f32.mxu1 %vm941_vm9, %v6669_v34 }
 0x365   : > { %4564 = vmatmul.mubr.msk.f32.gmra.mrb[12].mxu1 %vm941_vm9, %v6666_v44  ;;  %v2365_v11 = vpop.permute.xlu1 %2364 }
 0x366   : > { %v2363_v8 = vpop.permute.xlu0 %2362  ;;  %v2619_v57 = vsel %vm279_vm0, %v6372_v52, %v2365_v11 }
 0x367   : > { %v2618_v54 = vsel %vm279_vm0, %v6376_v43, %v2363_v8 }
 0x369   : > { %v2541_v32 = vpop.permute.xlu1 %2540 }
 0x36a   : > { %v2539_v24 = vpop.permute.xlu0 %2538  ;;  %v6680_v46 = vsel %vm874_vm8, %v2619_v57, %v2541_v32 }
 0x36b   : > { %v6683_v29 = vsel %vm874_vm8, %v2618_v54, %v2539_v24 }
 0x36c   : > { %4566 = vmatprep.mubr.msk.f32.mxu1 %vm941_vm9, %v6683_v29 }
 0x36d   : > { %4567 = vmatmul.mubr.msk.f32.gmra.mrb[14].mxu1 %vm941_vm9, %v6680_v46  ;;  %v2369_v7 = vpop.permute.xlu1 %2368 }
 0x36e   : > { %v2367_v20 = vpop.permute.xlu0 %2366  ;;  %v2621_v52 = vsel %vm279_vm0, %v6399_v41, %v2369_v7 }
 0x36f   : > { %v2620_v43 = vsel %vm279_vm0, %v6403_v17, %v2367_v20 }
 0x371   : > { %v2545_v23 = vpop.permute.xlu1 %2544 }
 0x372   : > { %v2543_v26 = vpop.permute.xlu0 %2542  ;;  %v6694_v13 = vsel %vm874_vm8, %v2621_v52, %v2545_v23 }
 0x373   : > { %v6697_v61 = vsel %vm874_vm8, %v2620_v43, %v2543_v26 }
 0x374   : > { %4569 = vmatprep.mubr.msk.f32.mxu1 %vm941_vm9, %v6697_v61 }
 0x375   : > { %4570 = vmatmul.mubr.msk.f32.gmra.mrb[16].mxu1 %vm941_vm9, %v6694_v13  ;;  %v2373_v55 = vpop.permute.xlu1 %2372 }
 0x376   : > { %v2371_v11 = vpop.permute.xlu0 %2370  ;;  %v2623_v41 = vsel %vm279_vm0, %v6415_v42, %v2373_v55 }
 0x377   : > { %v2622_v17 = vsel %vm279_vm0, %v6419_v53, %v2371_v11 }
 0x379   : > { %v2549_v8 = vpop.permute.xlu1 %2548 }
 0x37a   : > { %v2547_v57 = vpop.permute.xlu0 %2546  ;;  %v6708_v54 = vsel %vm874_vm8, %v2623_v41, %v2549_v8 }
 0x37b   : > { %v6711_v32 = vsel %vm874_vm8, %v2622_v17, %v2547_v57 }
 0x37c   : > { %4572 = vmatprep.mubr.msk.f32.mxu1 %vm941_vm9, %v6711_v32 }
 0x37d   : > { %4573 = vmatmul.mubr.msk.f32.gmra.mrb[18].mxu1 %vm941_vm9, %v6708_v54  ;;  %v2377_v24 = vpop.permute.xlu1 %2376 }
 0x37e   : > { %v2375_v7 = vpop.permute.xlu0 %2374  ;;  %v2625_v42 = vsel %vm279_vm0, %v6431_v56, %v2377_v24 }
 0x37f   : > { %v2624_v53 = vsel %vm279_vm0, %v6435_v33, %v2375_v7 }
 0x381   : > { %v2553_v20 = vpop.permute.xlu1 %2552 }
 0x382   : > { %v2551_v52 = vpop.permute.xlu0 %2550  ;;  %v6722_v43 = vsel %vm874_vm8, %v2625_v42, %v2553_v20 }
 0x383   : > { %v6725_v23 = vsel %vm874_vm8, %v2624_v53, %v2551_v52 }
 0x384   : > { %4575 = vmatprep.mubr.msk.f32.mxu1 %vm941_vm9, %v6725_v23 }
 0x385   : > { %4576 = vmatmul.mubr.msk.f32.gmra.mrb[20].mxu1 %vm941_vm9, %v6722_v43  ;;  %v2381_v26 = vpop.permute.xlu1 %2380 }
 0x386   : > { %v2379_v55 = vpop.permute.xlu0 %2378  ;;  %v2627_v56 = vsel %vm279_vm0, %v6447_v16, %v2381_v26 }
 0x387   : > { %v2626_v33 = vsel %vm279_vm0, %v6451_v49, %v2379_v55 }
 0x389   : > { %v2557_v11 = vpop.permute.xlu1 %2556 }
 0x38a   : > { %v2555_v41 = vpop.permute.xlu0 %2554  ;;  %v6736_v17 = vsel %vm874_vm8, %v2627_v56, %v2557_v11 }
 0x38b   : > { %v6739_v8 = vsel %vm874_vm8, %v2626_v33, %v2555_v41 }
 0x38c   : > { %4578 = vmatprep.mubr.msk.f32.mxu1 %vm941_vm9, %v6739_v8 }
 0x38d   : > { %4579 = vmatmul.mubr.msk.f32.gmra.mrb[22].mxu1 %vm941_vm9, %v6736_v17  ;;  %v2385_v57 = vpop.permute.xlu1 %2384 }
 0x38e   : > { %v2383_v24 = vpop.permute.xlu0 %2382  ;;  %v2629_v16 = vsel %vm279_vm0, %v6463_v63, %v2385_v57 }
 0x38f   : > { %v2628_v49 = vsel %vm279_vm0, %v6467_v48, %v2383_v24 }
 0x391   : > { %v2561_v7 = vpop.permute.xlu1 %2560 }
 0x392   : > { %v2559_v42 = vpop.permute.xlu0 %2558  ;;  %v6750_v53 = vsel %vm874_vm8, %v2629_v16, %v2561_v7 }
 0x393   : > { %v6753_v20 = vsel %vm874_vm8, %v2628_v49, %v2559_v42 }
 0x394   : > { %4581 = vmatprep.mubr.msk.f32.mxu1 %vm941_vm9, %v6753_v20 }
 0x395   : > { %4582 = vmatmul.mubr.msk.f32.gmra.mrb[24].mxu1 %vm941_vm9, %v6750_v53  ;;  %v2389_v52 = vpop.permute.xlu1 %2388 }
 0x396   : > { %v2387_v26 = vpop.permute.xlu0 %2386  ;;  %v2631_v63 = vsel %vm279_vm0, %v6479_v62, %v2389_v52 }
 0x397   : > { %v2630_v48 = vsel %vm279_vm0, %v6483_v38, %v2387_v26 }
 0x399   : > { %v2565_v55 = vpop.permute.xlu1 %2564 }
 0x39a   : > { %v2563_v56 = vpop.permute.xlu0 %2562  ;;  %v6764_v33 = vsel %vm874_vm8, %v2631_v63, %v2565_v55 }
 0x39b   : > { %v6767_v11 = vsel %vm874_vm8, %v2630_v48, %v2563_v56 }
 0x39c   : > { %4584 = vmatprep.mubr.msk.f32.mxu1 %vm941_vm9, %v6767_v11 }
 0x39d   : > { %4585 = vmatmul.mubr.msk.f32.gmra.mrb[26].mxu1 %vm941_vm9, %v6764_v33  ;;  %v2393_v41 = vpop.permute.xlu1 %2392 }
 0x39e   : > { %v2391_v57 = vpop.permute.xlu0 %2390  ;;  %v2633_v62 = vsel %vm279_vm0, %v6495_v12, %v2393_v41 }
 0x39f   : > { %v2632_v38 = vsel %vm279_vm0, %v6499_v58, %v2391_v57 }
 0x3a1   : > { %v2569_v24 = vpop.permute.xlu1 %2568 }
 0x3a2   : > { %v2567_v16 = vpop.permute.xlu0 %2566  ;;  %v6778_v49 = vsel %vm874_vm8, %v2633_v62, %v2569_v24 }
 0x3a3   : > { %v6781_v7 = vsel %vm874_vm8, %v2632_v38, %v2567_v16 }
 0x3a4   : > { %4587 = vmatprep.mubr.msk.f32.mxu1 %vm941_vm9, %v6781_v7 }
 0x3a5   : > { %4588 = vmatmul.mubr.msk.f32.gmra.mrb[28].mxu1 %vm941_vm9, %v6778_v49  ;;  %v2679_v42 = vpop.permute.xlu1 %2678 }
 0x3a6   : > { %v2677_v52 = vpop.permute.xlu0 %2676  ;;  %v2694_v12 = vsel %vm279_vm0, %v6519_v14, %v2679_v42  ;;  %v2603_v14 = vsel %vm279_vm0, %v6549_v28, %v6507_v60 }
 0x3a7   : > { %v2693_v58 = vsel %vm279_vm0, %v6515_v39, %v2677_v52  ;;  %v2602_v39 = vsel %vm279_vm0, %v6554_v0, %v6509_v37 }
 0x3a9   : > { %v2690_v26 = vpop.permute.xlu1 %2689 }
 0x3aa   : > { %v2688_v63 = vpop.permute.xlu0 %2687  ;;  %v6792_v48 = vsel %vm874_vm8, %v2694_v12, %v2690_v26 }
 0x3ab   : > { %v6795_v55 = vsel %vm874_vm8, %v2693_v58, %v2688_v63 }
 0x3ac   : > { %4590 = vmatprep.mubr.msk.f32.mxu1 %vm941_vm9, %v6795_v55 }
 0x3ad   : > { %4591 = vmatmul.mubr.msk.f32.gmra.mrb[30].mxu1 %vm941_vm9, %v6792_v48  ;;  %v2509_v56 = vpop.permute.xlu1 %2508 }
 0x3ae   : > { %v2507_v41 = vpop.permute.xlu0 %2506  ;;  %v2635_v57 = vsel %vm874_vm8, %v2603_v14, %v2509_v56 }
 0x3af   : > { %v2634_v62 = vsel %vm874_vm8, %v2602_v39, %v2507_v41 }
 0x3b0   : > { %4597 = vmatprep.mubr.msk.f32.mxu1 %vm941_vm9, %v2634_v62 }
 0x3b1   : > { %4598 = vmatmul.mubr.msk.f32.vlgmr.msra.gmra.mrb[0].mxu1 %vm941_vm9, %v2635_v57  ;;  %v3269_v60 = vpop.permute.xlu1 %3268 }
 0x3b2   : > { %4732 = vmatpush3.bf16.msk.msra.mxu1 %vm5133_vm7, %v6557_v31  ;;  %4600 = vmatprep.mubr.msk.f32.mxu1 %vm941_vm9, %v6545_v19  ;;  %v3267_v36 = vpop.permute.xlu0 %3266  ;;  %v3284_v28 = vsel %vm279_vm0, %v6563_v40, %v3269_v60 }
 0x3b3   : > { %v3283_v37 = vsel %vm279_vm0, %v6561_v35, %v3267_v36 }
 0x3b5   : > { %4601 = vmatmul.mubr.msk.f32.gmra.mrb[2].mxu1 %vm941_vm9, %v6540_v25  ;;  %v3280_v0 = vpop.permute.xlu1 %3279 }
 0x3b6   : > { %4603 = vmatprep.mubr.msk.f32.mxu1 %vm941_vm9, %v6587_v47  ;;  %v3278_v25 = vpop.permute.xlu0 %3277  ;;  %v3286_v31 = vsel %vm874_vm8, %v3284_v28, %v3280_v0 }
 0x3b7   : > { %v3285_v19 = vsel %vm874_vm8, %v3283_v37, %v3278_v25 }
 0x3b9   : > { %4604 = vmatmul.mubr.msk.f32.gmra.mrb[4].mxu1 %vm941_vm9, %v6584_v15 }
 0x3ba   : > { %4606 = vmatprep.mubr.msk.f32.mxu1 %vm941_vm9, %v6611_v59 }
 0x3bd   : > { %4607 = vmatmul.mubr.msk.f32.gmra.mrb[6].mxu1 %vm941_vm9, %v6608_v51 }
 0x3be   : > { %4609 = vmatprep.mubr.msk.f32.mxu1 %vm941_vm9, %v6627_v50 }
 0x3c1   : > { %4610 = vmatmul.mubr.msk.f32.gmra.mrb[8].mxu1 %vm941_vm9, %v6624_v45 }
 0x3c2   : > { %4612 = vmatprep.mubr.msk.f32.mxu1 %vm941_vm9, %v6641_v22 }
 0x3c5   : > { %4613 = vmatmul.mubr.msk.f32.gmra.mrb[10].mxu1 %vm941_vm9, %v6638_v18 }
 0x3c6   : > { %4615 = vmatprep.mubr.msk.f32.mxu1 %vm941_vm9, %v6655_v27 }
 0x3c9   : > { %4616 = vmatmul.mubr.msk.f32.gmra.mrb[12].mxu1 %vm941_vm9, %v6652_v21 }
 0x3ca   : > { %4618 = vmatprep.mubr.msk.f32.mxu1 %vm941_vm9, %v6669_v34 }
 0x3cd   : > { %4619 = vmatmul.mubr.msk.f32.gmra.mrb[14].mxu1 %vm941_vm9, %v6666_v44 }
 0x3ce   : > { %4621 = vmatprep.mubr.msk.f32.mxu1 %vm941_vm9, %v6683_v29 }
 0x3d1   : > { %4622 = vmatmul.mubr.msk.f32.gmra.mrb[16].mxu1 %vm941_vm9, %v6680_v46 }
 0x3d2   : > { %4624 = vmatprep.mubr.msk.f32.mxu1 %vm941_vm9, %v6697_v61 }
 0x3d5   : > { %4625 = vmatmul.mubr.msk.f32.gmra.mrb[18].mxu1 %vm941_vm9, %v6694_v13 }
 0x3d6   : > { %4627 = vmatprep.mubr.msk.f32.mxu1 %vm941_vm9, %v6711_v32 }
 0x3d9   : > { %4628 = vmatmul.mubr.msk.f32.gmra.mrb[20].mxu1 %vm941_vm9, %v6708_v54 }
 0x3da   : > { %4630 = vmatprep.mubr.msk.f32.mxu1 %vm941_vm9, %v6725_v23 }
 0x3dd   : > { %4631 = vmatmul.mubr.msk.f32.gmra.mrb[22].mxu1 %vm941_vm9, %v6722_v43 }
 0x3de   : > { %4633 = vmatprep.mubr.msk.f32.mxu1 %vm941_vm9, %v6739_v8 }
 0x3e1   : > { %4634 = vmatmul.mubr.msk.f32.gmra.mrb[24].mxu1 %vm941_vm9, %v6736_v17 }
 0x3e2   : > { %4636 = vmatprep.mubr.msk.f32.mxu1 %vm941_vm9, %v6753_v20 }
 0x3e5   : > { %4637 = vmatmul.mubr.msk.f32.gmra.mrb[26].mxu1 %vm941_vm9, %v6750_v53 }
 0x3e6   : > { %4639 = vmatprep.mubr.msk.f32.mxu1 %vm941_vm9, %v6767_v11 }
 0x3e9   : > { %4640 = vmatmul.mubr.msk.f32.gmra.mrb[28].mxu1 %vm941_vm9, %v6764_v33 }
 0x3ea   : > { %4642 = vmatprep.mubr.msk.f32.mxu1 %vm941_vm9, %v6781_v7 }
 0x3ed   : > { %4643 = vmatmul.mubr.msk.f32.gmra.mrb[30].mxu1 %vm941_vm9, %v6778_v49 }
 0x3ee   : > { %4649 = vmatprep.mubr.msk.f32.mxu1 %vm941_vm9, %v6587_v47 }
 0x3f1   : > { %4650 = vmatmul.mubr.msk.f32.vlgmr.msra.gmra.mrb[0].mxu1 %vm941_vm9, %v6584_v15 }
 0x3f2   : > { %4652 = vmatprep.mubr.msk.f32.mxu1 %vm941_vm9, %v6611_v59 }
 0x3f5   : > { %4653 = vmatmul.mubr.msk.f32.gmra.mrb[2].mxu1 %vm941_vm9, %v6608_v51 }
 0x3f6   : > { %4655 = vmatprep.mubr.msk.f32.mxu1 %vm941_vm9, %v6627_v50 }
 0x3f9   : > { %4656 = vmatmul.mubr.msk.f32.gmra.mrb[4].mxu1 %vm941_vm9, %v6624_v45 }
 0x3fa   : > { %4658 = vmatprep.mubr.msk.f32.mxu1 %vm941_vm9, %v6641_v22 }
 0x3fd   : > { %4659 = vmatmul.mubr.msk.f32.gmra.mrb[6].mxu1 %vm941_vm9, %v6638_v18 }
 0x3fe   : > { %4661 = vmatprep.mubr.msk.f32.mxu1 %vm941_vm9, %v6655_v27 }
 0x401   : > { %4662 = vmatmul.mubr.msk.f32.gmra.mrb[8].mxu1 %vm941_vm9, %v6652_v21 }
 0x402   : > { %4664 = vmatprep.mubr.msk.f32.mxu1 %vm941_vm9, %v6669_v34 }
 0x405   : > { %4665 = vmatmul.mubr.msk.f32.gmra.mrb[10].mxu1 %vm941_vm9, %v6666_v44 }
 0x406   : > { %4667 = vmatprep.mubr.msk.f32.mxu1 %vm941_vm9, %v6683_v29 }
 0x409   : > { %4668 = vmatmul.mubr.msk.f32.gmra.mrb[12].mxu1 %vm941_vm9, %v6680_v46 }
 0x40a   : > { %4670 = vmatprep.mubr.msk.f32.mxu1 %vm941_vm9, %v6697_v61 }
 0x40d   : > { %4671 = vmatmul.mubr.msk.f32.gmra.mrb[14].mxu1 %vm941_vm9, %v6694_v13 }
 0x40e   : > { %4673 = vmatprep.mubr.msk.f32.mxu1 %vm941_vm9, %v6711_v32 }
 0x411   : > { %4674 = vmatmul.mubr.msk.f32.gmra.mrb[16].mxu1 %vm941_vm9, %v6708_v54 }
 0x412   : > { %4676 = vmatprep.mubr.msk.f32.mxu1 %vm941_vm9, %v6725_v23 }
 0x415   : > { %4677 = vmatmul.mubr.msk.f32.gmra.mrb[18].mxu1 %vm941_vm9, %v6722_v43 }
 0x416   : > { %4679 = vmatprep.mubr.msk.f32.mxu1 %vm941_vm9, %v6739_v8 }
 0x419   : > { %4680 = vmatmul.mubr.msk.f32.gmra.mrb[20].mxu1 %vm941_vm9, %v6736_v17 }
 0x41a   : > { %4682 = vmatprep.mubr.msk.f32.mxu1 %vm941_vm9, %v6753_v20 }
 0x41d   : > { %4683 = vmatmul.mubr.msk.f32.gmra.mrb[22].mxu1 %vm941_vm9, %v6750_v53 }
 0x41e   : > { %4685 = vmatprep.mubr.msk.f32.mxu1 %vm941_vm9, %v6767_v11 }
 0x421   : > { %4686 = vmatmul.mubr.msk.f32.gmra.mrb[24].mxu1 %vm941_vm9, %v6764_v33 }
 0x422   : > { %4688 = vmatprep.mubr.msk.f32.mxu1 %vm941_vm9, %v6781_v7 }
 0x425   : > { %4689 = vmatmul.mubr.msk.f32.gmra.mrb[26].mxu1 %vm941_vm9, %v6778_v49 }
 0x426   : > { %4691 = vmatprep.mubr.msk.f32.mxu1 %vm941_vm9, %v6795_v55 }
 0x429   : > { %4692 = vmatmul.mubr.msk.f32.gmra.mrb[28].mxu1 %vm941_vm9, %v6792_v48 }
 0x42a   : > { %4694 = vmatprep.mubr.msk.f32.mxu1 %vm941_vm9, %v3285_v19 }
 0x42d   : > { %4695 = vmatmul.mubr.msk.f32.gmra.mrb[30].mxu1 %vm941_vm9, %v3286_v31 }
 0x4c4   : > { %v6942_v35 = vpop.f32.mrb[0].mxu1 }
 0x4c5   : > { %v3557_v15 = vsel %vm279_vm0, %v6942_v35, 0.0  ;;  %v3626_v47 = vmul.f32 %v6942_v35, %v6942_v35  ;;  %v6948_v51 = vpop.f32.mrb[1].mxu1 }
 0x4c6   : > { %v3556_v40 = vsel %vm279_vm0, %v6948_v51, 0.0  ;;  %v3625_v59 = vmul.f32 %v6948_v51, %v6948_v51 }
 0x4c7   : > { %v3658_v45 = vsel %vm279_vm0, %v3626_v47, 0.0  ;;  %v3558_v50 = vadd.f32 %v3557_v15, %v3556_v40 }
 0x4c8   : > { %v3657_v18 = vsel %vm279_vm0, %v3625_v59, 0.0  ;;  %v6956_v22 = vpop.f32.mrb[2].mxu1 }
 0x4c9   : > { %v3659_v21 = vadd.f32 %v3658_v45, %v3657_v18  ;;  %v6958_v27 = vpop.f32.mrb[3].mxu1  ;;  %v3628_v44 = vmul.f32 %v6956_v22, %v6956_v22  ;;  %v3561_v13 = vsel %vm279_vm0, %v6956_v22, 0.0 }
 0x4ca   : > { %v3559_v34 = vsel %vm279_vm0, %v6958_v27, 0.0  ;;  %v3627_v46 = vmul.f32 %v6958_v27, %v6958_v27 }
 0x4cb   : > { %v3560_v29 = vadd.f32 %v3559_v34, %v3558_v50  ;;  %v3662_v17 = vsel %vm279_vm0, %v3628_v44, 0.0 }
 0x4cc   : > { %v3660_v61 = vsel %vm279_vm0, %v3627_v46, 0.0  ;;  %v6969_v54 = vpop.f32.mrb[4].mxu1 }
 0x4cd   : > { %v3661_v32 = vadd.f32 %v3660_v61, %v3659_v21  ;;  %v6971_v43 = vpop.f32.mrb[5].mxu1  ;;  %v3562_v23 = vadd.f32 %v3561_v13, %v3560_v29  ;;  %v3630_v8 = vmul.f32 %v6969_v54, %v6969_v54  ;;  %v3565_v38 = vsel %vm279_vm0, %v6969_v54, 0.0 }
 0x4ce   : > { %v3563_v53 = vsel %vm279_vm0, %v6971_v43, 0.0  ;;  %v3629_v20 = vmul.f32 %v6971_v43, %v6971_v43 }
 0x4cf   : > { %v3564_v33 = vadd.f32 %v3563_v53, %v3562_v23  ;;  %v3663_v11 = vadd.f32 %v3662_v17, %v3661_v32  ;;  %v3666_v52 = vsel %vm279_vm0, %v3630_v8, 0.0 }
 0x4d0   : > { %v3664_v24 = vsel %vm279_vm0, %v3629_v20, 0.0  ;;  %v6983_v16 = vpop.f32.mrb[6].mxu1 }
 0x4d1   : > { %v3665_v49 = vadd.f32 %v3664_v24, %v3663_v11  ;;  %v6985_v7 = vpop.f32.mrb[7].mxu1  ;;  %v3566_v42 = vadd.f32 %v3565_v38, %v3564_v33  ;;  %v3632_v12 = vmul.f32 %v6983_v16, %v6983_v16  ;;  %v3569_v55 = vsel %vm279_vm0, %v6983_v16, 0.0 }
 0x4d2   : > { %v3567_v58 = vsel %vm279_vm0, %v6985_v7, 0.0  ;;  %v3631_v26 = vmul.f32 %v6985_v7, %v6985_v7 }
 0x4d3   : > { %v3568_v63 = vadd.f32 %v3567_v58, %v3566_v42  ;;  %v3667_v48 = vadd.f32 %v3666_v52, %v3665_v49  ;;  %v3670_v62 = vsel %vm279_vm0, %v3632_v12, 0.0 }
 0x4d4   : > { %v3668_v14 = vsel %vm279_vm0, %v3631_v26, 0.0  ;;  %v6997_v39 = vpop.f32.mrb[8].mxu1 }
 0x4d5   : > { %v3669_v56 = vadd.f32 %v3668_v14, %v3667_v48  ;;  %v6999_v41 = vpop.f32.mrb[9].mxu1  ;;  %v3570_v57 = vadd.f32 %v3569_v55, %v3568_v63  ;;  %v3634_v36 = vmul.f32 %v6997_v39, %v6997_v39  ;;  %v3573_v28 = vsel %vm279_vm0, %v6997_v39, 0.0 }
 0x4d6   : > { %v3571_v60 = vsel %vm279_vm0, %v6999_v41, 0.0  ;;  %v3633_v37 = vmul.f32 %v6999_v41, %v6999_v41 }
 0x4d7   : > { %v3572_v25 = vadd.f32 %v3571_v60, %v3570_v57  ;;  %v3671_v19 = vadd.f32 %v3670_v62, %v3669_v56  ;;  %v3674_v59 = vsel %vm279_vm0, %v3634_v36, 0.0 }
 0x4d8   : > { %v3672_v0 = vsel %vm279_vm0, %v3633_v37, 0.0  ;;  %v7011_v31 = vpop.f32.mrb[10].mxu1 }
 0x4d9   : > { %v3673_v15 = vadd.f32 %v3672_v0, %v3671_v19  ;;  %v7013_v47 = vpop.f32.mrb[11].mxu1  ;;  %v3574_v40 = vadd.f32 %v3573_v28, %v3572_v25  ;;  %v3636_v45 = vmul.f32 %v7011_v31, %v7011_v31  ;;  %v3577_v34 = vsel %vm279_vm0, %v7011_v31, 0.0 }
 0x4da   : > { %v3575_v50 = vsel %vm279_vm0, %v7013_v47, 0.0  ;;  %v3635_v18 = vmul.f32 %v7013_v47, %v7013_v47 }
 0x4db   : > { %v3576_v21 = vadd.f32 %v3575_v50, %v3574_v40  ;;  %v3675_v44 = vadd.f32 %v3674_v59, %v3673_v15  ;;  %v3678_v23 = vsel %vm279_vm0, %v3636_v45, 0.0 }
 0x4dc   : > { %v3676_v46 = vsel %vm279_vm0, %v3635_v18, 0.0  ;;  %v7025_v29 = vpop.f32.mrb[12].mxu1 }
 0x4dd   : > { %v3677_v13 = vadd.f32 %v3676_v46, %v3675_v44  ;;  %v7027_v61 = vpop.f32.mrb[13].mxu1  ;;  %v3578_v32 = vadd.f32 %v3577_v34, %v3576_v21  ;;  %v3638_v17 = vmul.f32 %v7025_v29, %v7025_v29  ;;  %v3581_v11 = vsel %vm279_vm0, %v7025_v29, 0.0 }
 0x4de   : > { %v3579_v8 = vsel %vm279_vm0, %v7027_v61, 0.0  ;;  %v3637_v53 = vmul.f32 %v7027_v61, %v7027_v61 }
 0x4df   : > { %v3580_v20 = vadd.f32 %v3579_v8, %v3578_v32  ;;  %v3679_v33 = vadd.f32 %v3678_v23, %v3677_v13  ;;  %v3682_v12 = vsel %vm279_vm0, %v3638_v17, 0.0 }
 0x4e0   : > { %v3680_v38 = vsel %vm279_vm0, %v3637_v53, 0.0  ;;  %v7039_v24 = vpop.f32.mrb[14].mxu1 }
 0x4e1   : > { %v3681_v49 = vadd.f32 %v3680_v38, %v3679_v33  ;;  %v7041_v42 = vpop.f32.mrb[15].mxu1  ;;  %v3582_v52 = vadd.f32 %v3581_v11, %v3580_v20  ;;  %v3640_v58 = vmul.f32 %v7039_v24, %v7039_v24  ;;  %v3585_v14 = vsel %vm279_vm0, %v7039_v24, 0.0 }
 0x4e2   : > { %v3583_v26 = vsel %vm279_vm0, %v7041_v42, 0.0  ;;  %v3639_v63 = vmul.f32 %v7041_v42, %v7041_v42 }
 0x4e3   : > { %v3584_v48 = vadd.f32 %v3583_v26, %v3582_v52  ;;  %v3683_v55 = vadd.f32 %v3682_v12, %v3681_v49  ;;  %v3686_v37 = vsel %vm279_vm0, %v3640_v58, 0.0 }
 0x4e4   : > { %v3684_v56 = vsel %vm279_vm0, %v3639_v63, 0.0  ;;  %v7053_v57 = vpop.f32.mrb[16].mxu1 }
 0x4e5   : > { %v3685_v62 = vadd.f32 %v3684_v56, %v3683_v55  ;;  %v7055_v36 = vpop.f32.mrb[17].mxu1  ;;  %v3586_v60 = vadd.f32 %v3585_v14, %v3584_v48  ;;  %v3642_v25 = vmul.f32 %v7053_v57, %v7053_v57  ;;  %v3589_v40 = vsel %vm279_vm0, %v7053_v57, 0.0 }
 0x4e6   : > { %v3587_v19 = vsel %vm279_vm0, %v7055_v36, 0.0  ;;  %v3641_v28 = vmul.f32 %v7055_v36, %v7055_v36 }
 0x4e7   : > { %v3588_v0 = vadd.f32 %v3587_v19, %v3586_v60  ;;  %v3687_v15 = vadd.f32 %v3686_v37, %v3685_v62  ;;  %v3690_v44 = vsel %vm279_vm0, %v3642_v25, 0.0 }
 0x4e8   : > { %v3688_v59 = vsel %vm279_vm0, %v3641_v28, 0.0  ;;  %v7067_v45 = vpop.f32.mrb[18].mxu1 }
 0x4e9   : > { %v3689_v50 = vadd.f32 %v3688_v59, %v3687_v15  ;;  %v7069_v18 = vpop.f32.mrb[19].mxu1  ;;  %v3590_v21 = vadd.f32 %v3589_v40, %v3588_v0  ;;  %v3644_v34 = vmul.f32 %v7067_v45, %v7067_v45  ;;  %v3593_v17 = vsel %vm279_vm0, %v7067_v45, 0.0 }
 0x4ea   : > { %v3591_v46 = vsel %vm279_vm0, %v7069_v18, 0.0  ;;  %v3643_v13 = vmul.f32 %v7069_v18, %v7069_v18 }
 0x4eb   : > { %v3592_v32 = vadd.f32 %v3591_v46, %v3590_v21  ;;  %v3691_v23 = vadd.f32 %v3690_v44, %v3689_v50  ;;  %v3694_v38 = vsel %vm279_vm0, %v3644_v34, 0.0 }
 0x4ec   : > { %v3692_v8 = vsel %vm279_vm0, %v3643_v13, 0.0  ;;  %v7081_v53 = vpop.f32.mrb[20].mxu1 }
 0x4ed   : > { %v3693_v20 = vadd.f32 %v3692_v8, %v3691_v23  ;;  %v7083_v33 = vpop.f32.mrb[21].mxu1  ;;  %v3594_v11 = vadd.f32 %v3593_v17, %v3592_v32  ;;  %v3646_v49 = vmul.f32 %v7081_v53, %v7081_v53  ;;  %v3597_v63 = vsel %vm279_vm0, %v7081_v53, 0.0 }
 0x4ee   : > { %v3595_v52 = vsel %vm279_vm0, %v7083_v33, 0.0  ;;  %v3645_v12 = vmul.f32 %v7083_v33, %v7083_v33 }
 0x4ef   : > { %v3596_v58 = vadd.f32 %v3595_v52, %v3594_v11  ;;  %v3695_v26 = vadd.f32 %v3694_v38, %v3693_v20  ;;  %v3698_v60 = vsel %vm279_vm0, %v3646_v49, 0.0 }
 0x4f0   : > { %v3696_v48 = vsel %vm279_vm0, %v3645_v12, 0.0  ;;  %v7095_v55 = vpop.f32.mrb[22].mxu1 }
 0x4f1   : > { %v3697_v14 = vadd.f32 %v3696_v48, %v3695_v26  ;;  %v7097_v56 = vpop.f32.mrb[23].mxu1  ;;  %v3598_v62 = vadd.f32 %v3597_v63, %v3596_v58  ;;  %v3648_v37 = vmul.f32 %v7095_v55, %v7095_v55  ;;  %v3601_v15 = vsel %vm279_vm0, %v7095_v55, 0.0 }
 0x4f2   : > { %v3599_v25 = vsel %vm279_vm0, %v7097_v56, 0.0  ;;  %v3647_v19 = vmul.f32 %v7097_v56, %v7097_v56 }
 0x4f3   : > { %v3600_v28 = vadd.f32 %v3599_v25, %v3598_v62  ;;  %v3699_v0 = vadd.f32 %v3698_v60, %v3697_v14  ;;  %v3702_v34 = vsel %vm279_vm0, %v3648_v37, 0.0 }
 0x4f4   : > { %v3700_v40 = vsel %vm279_vm0, %v3647_v19, 0.0  ;;  %v7109_v59 = vpop.f32.mrb[24].mxu1 }
 0x4f5   : > { %v3701_v50 = vadd.f32 %v3700_v40, %v3699_v0  ;;  %v7111_v21 = vpop.f32.mrb[25].mxu1  ;;  %v3602_v44 = vadd.f32 %v3601_v15, %v3600_v28  ;;  %v3650_v46 = vmul.f32 %v7109_v59, %v7109_v59  ;;  %v3605_v8 = vsel %vm279_vm0, %v7109_v59, 0.0 }
 0x4f6   : > { %v3603_v13 = vsel %vm279_vm0, %v7111_v21, 0.0  ;;  %v3649_v32 = vmul.f32 %v7111_v21, %v7111_v21 }
 0x4f7   : > { %v3604_v23 = vadd.f32 %v3603_v13, %v3602_v44  ;;  %v3703_v17 = vadd.f32 %v3702_v34, %v3701_v50  ;;  %v3706_v12 = vsel %vm279_vm0, %v3650_v46, 0.0 }
 0x4f8   : > { %v3704_v20 = vsel %vm279_vm0, %v3649_v32, 0.0  ;;  %v7123_v11 = vpop.f32.mrb[26].mxu1 }
 0x4f9   : > { %v3705_v38 = vadd.f32 %v3704_v20, %v3703_v17  ;;  %v7125_v49 = vpop.f32.mrb[27].mxu1  ;;  %v3606_v52 = vadd.f32 %v3605_v8, %v3604_v23  ;;  %v3652_v58 = vmul.f32 %v7123_v11, %v7123_v11  ;;  %v3609_v62 = vsel %vm279_vm0, %v7123_v11, 0.0 }
 0x4fa   : > { %v3607_v26 = vsel %vm279_vm0, %v7125_v49, 0.0  ;;  %v3651_v63 = vmul.f32 %v7125_v49, %v7125_v49 }
 0x4fb   : > { %v3608_v48 = vadd.f32 %v3607_v26, %v3606_v52  ;;  %v3707_v14 = vadd.f32 %v3706_v12, %v3705_v38  ;;  %v3710_v0 = vsel %vm279_vm0, %v3652_v58, 0.0 }
 0x4fc   : > { %v3708_v60 = vsel %vm279_vm0, %v3651_v63, 0.0  ;;  %v7137_v37 = vpop.f32.mrb[28].mxu1 }
 0x4fd   : > { %v3709_v25 = vadd.f32 %v3708_v60, %v3707_v14  ;;  %v7139_v19 = vpop.f32.mrb[29].mxu1  ;;  %v3610_v28 = vadd.f32 %v3609_v62, %v3608_v48  ;;  %v3654_v15 = vmul.f32 %v7137_v37, %v7137_v37  ;;  %v3613_v46 = vsel %vm279_vm0, %v7137_v37, 0.0 }
 0x4fe   : > { %v3611_v40 = vsel %vm279_vm0, %v7139_v19, 0.0  ;;  %v3653_v50 = vmul.f32 %v7139_v19, %v7139_v19 }
 0x4ff   : > { %v3612_v44 = vadd.f32 %v3611_v40, %v3610_v28  ;;  %v3711_v34 = vadd.f32 %v3710_v0, %v3709_v25  ;;  %v3714_v20 = vsel %vm279_vm0, %v3654_v15, 0.0 }
 0x500   : > { %v3712_v13 = vsel %vm279_vm0, %v3653_v50, 0.0  ;;  %v7151_v32 = vpop.f32.mrb[30].mxu1 }
 0x501   : > { %v3713_v23 = vadd.f32 %v3712_v13, %v3711_v34  ;;  %v7153_v17 = vpop.f32.mrb[31].mxu1  ;;  %v3614_v8 = vadd.f32 %v3613_v46, %v3612_v44  ;;  %v3656_v38 = vmul.f32 %v7151_v32, %v7151_v32  ;;  %v3617_v63 = vsel %vm279_vm0, %v7151_v32, 0.0 }
 0x502   : > { %v3615_v52 = vsel %vm279_vm0, %v7153_v17, 0.0  ;;  %v3655_v12 = vmul.f32 %v7153_v17, %v7153_v17 }
 0x503   : > { %v3616_v58 = vadd.f32 %v3615_v52, %v3614_v8  ;;  %v3715_v26 = vadd.f32 %v3714_v20, %v3713_v23  ;;  %v3718_v60 = vsel %vm279_vm0, %v3656_v38, 0.0 }
 0x504   : > { %v3716_v48 = vsel %vm279_vm0, %v3655_v12, 0.0 }
 0x505   : > { %v3618_v14 = vadd.f32 %v3617_v63, %v3616_v58  ;;  %v3717_v62 = vadd.f32 %v3716_v48, %v3715_v26 }
 0x507   : > { %v3619_v25 = vrot.slane %v3618_v14, 4  ;;  %v3719_v28 = vadd.f32 %v3718_v60, %v3717_v62 }
 0x509   : > { %v3620_v0 = vadd.f32 %v3619_v25, %v3618_v14  ;;  %v3720_v15 = vrot.slane %v3719_v28, 4 }
 0x50b   : > { %v3621_v40 = vrot.slane %v3620_v0, 2  ;;  %v3721_v50 = vadd.f32 %v3720_v15, %v3719_v28 }
 0x50d   : > { %v3622_v44 = vadd.f32 %v3621_v40, %v3620_v0  ;;  %v3722_v34 = vrot.slane %v3721_v50, 2 }
 0x50f   : > { %v3623_v46 = vrot.slane %v3622_v44, 1  ;;  %v3723_v13 = vadd.f32 %v3722_v34, %v3721_v50 }
 0x511   : > { %v3624_v23 = vadd.f32 %v3623_v46, %v3622_v44  ;;  %v3724_v8 = vrot.slane %v3723_v13, 1 }
 0x513   : > { %v3725_v20 = vadd.f32 %v3724_v8, %v3723_v13  ;;  %v7166_v52 = vmul.f32 0.00390625, %v3624_v23 }
 0x515   : > { %v3727_v12 = vmul.f32 0.00390625, %v3725_v20  ;;  %v3728_v58 = vmul.f32 %v7166_v52, %v7166_v52  ;;  %v3732_v38 = vsub.f32 %v6948_v51, %v7166_v52  ;;  %v3733_v26 = vsub.f32 %v6942_v35, %v7166_v52 }
 0x516   : > { %v3734_v63 = vsub.f32 %v6958_v27, %v7166_v52  ;;  %v3735_v48 = vsub.f32 %v6956_v22, %v7166_v52  ;;  %v3736_v14 = vsub.f32 %v6971_v43, %v7166_v52  ;;  %v3737_v62 = vsub.f32 %v6969_v54, %v7166_v52 }
 0x517   : > { %v3729_v60 = vsub.f32 %v3727_v12, %v3728_v58  ;;  %v3738_v25 = vsub.f32 %v6985_v7, %v7166_v52  ;;  %v3739_v51 = vsub.f32 %v6983_v16, %v7166_v52  ;;  %v3740_v35 = vsub.f32 %v6999_v41, %v7166_v52 }
 0x518   : > { %v3741_v27 = vsub.f32 %v6997_v39, %v7166_v52  ;;  %v3742_v22 = vsub.f32 %v7013_v47, %v7166_v52  ;;  %v3743_v43 = vsub.f32 %v7011_v31, %v7166_v52  ;;  %v3744_v54 = vsub.f32 %v7027_v61, %v7166_v52 }
 0x519   : > { %v3730_v28 = vadd.f32 1e-05, %v3729_v60  ;;  %v3745_v7 = vsub.f32 %v7025_v29, %v7166_v52  ;;  %v3746_v16 = vsub.f32 %v7041_v42, %v7166_v52  ;;  %v3747_v41 = vsub.f32 %v7039_v24, %v7166_v52 }
 0x51a   : > { %v3748_v39 = vsub.f32 %v7055_v36, %v7166_v52  ;;  %v3749_v47 = vsub.f32 %v7053_v57, %v7166_v52  ;;  %v3750_v31 = vsub.f32 %v7069_v18, %v7166_v52  ;;  %v3751_v61 = vsub.f32 %v7067_v45, %v7166_v52 }
 0x51b   : > { %4875 = vrsqrt.f32 %v3730_v28  ;;  %v3752_v29 = vsub.f32 %v7083_v33, %v7166_v52  ;;  %v3753_v42 = vsub.f32 %v7081_v53, %v7166_v52  ;;  %v3754_v24 = vsub.f32 %v7097_v56, %v7166_v52 }
 0x51c   : > { %v3755_v36 = vsub.f32 %v7095_v55, %v7166_v52  ;;  %v3756_v57 = vsub.f32 %v7111_v21, %v7166_v52  ;;  %v3757_v18 = vsub.f32 %v7109_v59, %v7166_v52  ;;  %v3758_v45 = vsub.f32 %v7125_v49, %v7166_v52  ;;  %v3764_v59 = vld [vmem:[%s7353_s5] sm:$0x1] }
 0x51d   : > { %v3759_v33 = vsub.f32 %v7123_v11, %v7166_v52  ;;  %v3760_v53 = vsub.f32 %v7139_v19, %v7166_v52  ;;  %v3761_v56 = vsub.f32 %v7137_v37, %v7166_v52  ;;  %v3762_v55 = vsub.f32 %v7153_v17, %v7166_v52 }
 0x51e   : > { %v3763_v21 = vsub.f32 %v7151_v32, %v7166_v52  ;;  %v7408_v11 = vsub.s32 0, %v6143_v30 }
 0x525   : > { %v4876_v49 = vpop.eup %4875 }
 0x526   : > { %v3765_v0 = vmul.f32 %v4876_v49, %v3764_v59 }
 0x528   : > { %v3769_v15 = vrot.slane %v3765_v0, %v7408_v11 }
 0x52a   : > { %v3770_v40 = vmul.f32 %v3769_v15, %v3732_v38  ;;  %v3771_v19 = vmul.f32 %v3769_v15, %v3733_v26  ;;  %v3772_v50 = vmul.f32 %v3769_v15, %v3734_v63  ;;  %v3773_v44 = vmul.f32 %v3769_v15, %v3735_v48 }
 0x52b   : > { %v3774_v37 = vmul.f32 %v3769_v15, %v3736_v14  ;;  %v3775_v34 = vmul.f32 %v3769_v15, %v3737_v62  ;;  %v3776_v46 = vmul.f32 %v3769_v15, %v3738_v25  ;;  %v3777_v17 = vmul.f32 %v3769_v15, %v3739_v51  ;;  %v4176_v14 = vld [vmem:[%s7354_s6] ss:$0 sm:$0xff] }
 0x52c   : > { %v3778_v13 = vmul.f32 %v3769_v15, %v3740_v35  ;;  %v3779_v23 = vmul.f32 %v3769_v15, %v3741_v27  ;;  %v3780_v32 = vmul.f32 %v3769_v15, %v3742_v22  ;;  %v3781_v8 = vmul.f32 %v3769_v15, %v3743_v43 }
 0x52d   : > { %v3782_v20 = vmul.f32 %v3769_v15, %v3744_v54  ;;  %v3783_v52 = vmul.f32 %v3769_v15, %v3745_v7  ;;  %v3784_v12 = vmul.f32 %v3769_v15, %v3746_v16  ;;  %v3785_v58 = vmul.f32 %v3769_v15, %v3747_v41 }
 0x52e   : > { %v3786_v60 = vmul.f32 %v3769_v15, %v3748_v39  ;;  %v3787_v28 = vmul.f32 %v3769_v15, %v3749_v47  ;;  %v3788_v30 = vmul.f32 %v3769_v15, %v3750_v31  ;;  %v3789_v59 = vmul.f32 %v3769_v15, %v3751_v61 }
 0x52f   : > { %v3790_v38 = vmul.f32 %v3769_v15, %v3752_v29  ;;  %v3791_v26 = vmul.f32 %v3769_v15, %v3753_v42  ;;  %v3792_v63 = vmul.f32 %v3769_v15, %v3754_v24  ;;  %v3793_v48 = vmul.f32 %v3769_v15, %v3755_v36 }
 0x530   : > { %v3794_v62 = vmul.f32 %v3769_v15, %v3756_v57  ;;  %v3795_v25 = vmul.f32 %v3769_v15, %v3757_v18  ;;  %v3796_v51 = vmul.f32 %v3769_v15, %v3758_v45  ;;  %v3797_v35 = vmul.f32 %v3769_v15, %v3759_v33 }
 0x531   : > { %v3798_v27 = vmul.f32 %v3769_v15, %v3760_v53  ;;  %v3799_v22 = vmul.f32 %v3769_v15, %v3761_v56  ;;  %v3800_v43 = vmul.f32 %v3769_v15, %v3762_v55  ;;  %v3801_v54 = vmul.f32 %v3769_v15, %v3763_v21 }
 0x532   : > { %v3809_v7 = vadd.f32 %v4176_v14, %v3770_v40  ;;  %v3810_v16 = vadd.f32 %v4176_v14, %v3771_v19  ;;  %v3811_v41 = vadd.f32 %v4176_v14, %v3772_v50  ;;  %v3812_v39 = vadd.f32 %v4176_v14, %v3773_v44 }
 0x533   : > { %v3813_v47 = vadd.f32 %v4176_v14, %v3774_v37  ;;  %v3814_v31 = vadd.f32 %v4176_v14, %v3775_v34  ;;  %v3815_v61 = vadd.f32 %v4176_v14, %v3776_v46  ;;  %v3816_v29 = vadd.f32 %v4176_v14, %v3777_v17 }
 0x534   : > { %v3817_v42 = vadd.f32 %v4176_v14, %v3778_v13  ;;  %v3818_v24 = vadd.f32 %v4176_v14, %v3779_v23  ;;  %v3819_v36 = vadd.f32 %v4176_v14, %v3780_v32  ;;  %v3820_v49 = vadd.f32 %v4176_v14, %v3781_v8 }
 0x535   : > { %v3821_v57 = vadd.f32 %v4176_v14, %v3782_v20  ;;  %v3822_v18 = vadd.f32 %v4176_v14, %v3783_v52  ;;  %v3823_v45 = vadd.f32 %v4176_v14, %v3784_v12  ;;  %v3824_v33 = vadd.f32 %v4176_v14, %v3785_v58 }
 0x536   : > { %v3825_v53 = vadd.f32 %v4176_v14, %v3786_v60  ;;  %v3826_v56 = vadd.f32 %v4176_v14, %v3787_v28  ;;  %v3827_v55 = vadd.f32 %v4176_v14, %v3788_v30  ;;  %v3828_v21 = vadd.f32 %v4176_v14, %v3789_v59  ;;  %v7409_v28 = vld [vmem:[#allocation3_spill] sm:$0xff]  ;;  %v7410_v30 = vld [vmem:[#allocation4_spill] sm:$0xff]  ;;  %v7411_v59 = vld [vmem:[#allocation5_spill] sm:$0xff] }
 0x537   : > { %v3829_v0 = vadd.f32 %v4176_v14, %v3790_v38  ;;  %v3830_v11 = vadd.f32 %v4176_v14, %v3791_v26  ;;  %v3831_v15 = vadd.f32 %v4176_v14, %v3792_v63  ;;  %v3832_v40 = vadd.f32 %v4176_v14, %v3793_v48  ;;  %v7412_v38 = vld [vmem:[#allocation6_spill] sm:$0xff]  ;;  %v7415_v26 = vld [vmem:[#allocation9_spill] sm:$0xff] }
 0x538   : > { %v3833_v19 = vadd.f32 %v4176_v14, %v3794_v62  ;;  %v3834_v50 = vadd.f32 %v4176_v14, %v3795_v25  ;;  %v3835_v44 = vadd.f32 %v4176_v14, %v3796_v51  ;;  %v3836_v37 = vadd.f32 %v4176_v14, %v3797_v35  ;;  %v7416_v48 = vld [vmem:[#allocation10_spill] sm:$0xff]  ;;  %v7417_v62 = vld [vmem:[#allocation11_spill] sm:$0xff]  ;;  %v7418_v51 = vld [vmem:[#allocation12_spill] sm:$0xff] }
 0x539   : > { %v3837_v34 = vadd.f32 %v4176_v14, %v3798_v27  ;;  %v3838_v46 = vadd.f32 %v4176_v14, %v3799_v22  ;;  %v3839_v17 = vadd.f32 %v4176_v14, %v3800_v43  ;;  %v3840_v13 = vadd.f32 %v4176_v14, %v3801_v54  ;;  %v7419_v27 = vld [vmem:[#allocation13_spill] sm:$0xff]  ;;  %v7420_v43 = vld [vmem:[#allocation14_spill] sm:$0xff] }
 0x53a   : > { %v3841_v23 = vadd.f32 %v3809_v7, %v4997_v1  ;;  %v3842_v32 = vadd.f32 %v3810_v16, %v5000_v2  ;;  %v3843_v8 = vadd.f32 %v3811_v41, %v5003_v3  ;;  %v3844_v20 = vadd.f32 %v3812_v39, %v5010_v4  ;;  %v7421_v7 = vld [vmem:[#allocation15_spill] sm:$0xff]  ;;  %v7422_v41 = vld [vmem:[#allocation16_spill] sm:$0xff] }
 0x53b   : > { %v3845_v52 = vadd.f32 %v3813_v47, %v5015_v5  ;;  %v3846_v12 = vadd.f32 %v3814_v31, %v5018_v6  ;;  %v3847_v58 = vadd.f32 %v3815_v61, %v5033_v9  ;;  %v3848_v60 = vadd.f32 %v3816_v29, %v5036_v10  ;;  %v7413_v5 = vld [vmem:[#allocation7_spill] sm:$0xff]  ;;  %v7414_v9 = vld [vmem:[#allocation8_spill] sm:$0xff]  ;;  %v7423_v47 = vld [vmem:[#allocation17_spill] sm:$0xff] }
 0x53c   : > { %v3849_v1 = vadd.f32 %v3817_v42, %v7409_v28  ;;  %v3850_v2 = vadd.f32 %v3818_v24, %v7410_v30  ;;  %v3851_v3 = vadd.f32 %v3819_v36, %v7411_v59  ;;  %v3852_v4 = vadd.f32 %v3820_v49, %v7412_v38  ;;  %3873 = vst.msk [vmem:[%s7247_s26] sm:$0xff] %vm279_vm0, %v3841_v23  ;;  %v7424_v61 = vld [vmem:[#allocation18_spill] sm:$0xff]  ;;  %v7425_v42 = vld [vmem:[#allocation19_spill] sm:$0xff]  ;;  %v7426_v36 = vld [vmem:[#allocation20_spill] sm:$0xff] }
 0x53d   : > { %3874 = vst.msk [vmem:[%s7247_s26 + $0x8] sm:$0xff] %vm279_vm0, %v3842_v32  ;;  %3875 = vst.msk [vmem:[%s7247_s26 + $0x10] sm:$0xff] %vm279_vm0, %v3843_v8  ;;  %v3853_v6 = vadd.f32 %v3821_v57, %v7413_v5  ;;  %v3854_v10 = vadd.f32 %v3822_v18, %v7414_v9  ;;  %v3855_v63 = vadd.f32 %v3823_v45, %v7415_v26  ;;  %v7427_v57 = vld [vmem:[#allocation21_spill] sm:$0xff]  ;;  %v7428_v45 = vld [vmem:[#allocation22_spill] sm:$0xff] }
 0x53e   : > { %3876 = vst.msk [vmem:[%s7247_s26 + $0x18] sm:$0xff] %vm279_vm0, %v3844_v20  ;;  %v3856_v14 = vadd.f32 %v3824_v33, %v7416_v48  ;;  %3877 = vst.msk [vmem:[%s7247_s26 + $0x20] sm:$0xff] %vm279_vm0, %v3845_v52  ;;  %v3857_v25 = vadd.f32 %v3825_v53, %v7417_v62  ;;  %v3858_v35 = vadd.f32 %v3826_v56, %v7418_v51  ;;  %v7429_v53 = vld [vmem:[#allocation23_spill] sm:$0xff] }
 0x53f   : > { %3878 = vst.msk [vmem:[%s7247_s26 + $0x28] sm:$0xff] %vm279_vm0, %v3846_v12  ;;  %3879 = vst.msk [vmem:[%s7247_s26 + $0x30] sm:$0xff] %vm279_vm0, %v3847_v58  ;;  %v3859_v22 = vadd.f32 %v3827_v55, %v7419_v27  ;;  %v3860_v54 = vadd.f32 %v3828_v21, %v7420_v43  ;;  %v3861_v16 = vadd.f32 %v3829_v0, %v7421_v7  ;;  %v7430_v55 = vld [vmem:[#allocation24_spill] sm:$0xff]  ;;  %v7431_v0 = vld [vmem:[#allocation25_spill] sm:$0xff] }
 0x540   : > { %3880 = vst.msk [vmem:[%s7247_s26 + $0x38] sm:$0xff] %vm279_vm0, %v3848_v60  ;;  %3881 = vst.msk [vmem:[%s7247_s26 + $0x40] sm:$0xff] %vm279_vm0, %v3849_v1  ;;  %v3862_v39 = vadd.f32 %v3830_v11, %v7422_v41  ;;  %v3863_v31 = vadd.f32 %v3831_v15, %v7423_v47  ;;  %v3864_v29 = vadd.f32 %v3832_v40, %v7424_v61  ;;  %v7432_v15 = vld [vmem:[#allocation26_spill] sm:$0xff] }
 0x541   : > { %3882 = vst.msk [vmem:[%s7247_s26 + $0x48] sm:$0xff] %vm279_vm0, %v3850_v2  ;;  %3883 = vst.msk [vmem:[%s7247_s26 + $0x50] sm:$0xff] %vm279_vm0, %v3851_v3  ;;  %v3865_v24 = vadd.f32 %v3833_v19, %v7425_v42  ;;  %v3866_v49 = vadd.f32 %v3834_v50, %v7426_v36  ;;  %v3867_v18 = vadd.f32 %v3835_v44, %v7427_v57 }
 0x542   : > { %3884 = vst.msk [vmem:[%s7247_s26 + $0x58] sm:$0xff] %vm279_vm0, %v3852_v4  ;;  %3885 = vst.msk [vmem:[%s7247_s26 + $0x60] sm:$0xff] %vm279_vm0, %v3853_v6  ;;  %v3868_v33 = vadd.f32 %v3836_v37, %v7428_v45  ;;  %v3869_v56 = vadd.f32 %v3837_v34, %v7429_v53  ;;  %v3870_v21 = vadd.f32 %v3838_v46, %v7430_v55 }
 0x543   : > { %3886 = vst.msk [vmem:[%s7247_s26 + $0x68] sm:$0xff] %vm279_vm0, %v3854_v10  ;;  %3887 = vst.msk [vmem:[%s7247_s26 + $0x70] sm:$0xff] %vm279_vm0, %v3855_v63  ;;  %v3871_v11 = vadd.f32 %v3839_v17, %v7431_v0  ;;  %v3872_v40 = vadd.f32 %v3840_v13, %v7432_v15 }
 0x544   : > { %3888 = vst.msk [vmem:[%s7247_s26 + $0x78] sm:$0xff] %vm279_vm0, %v3856_v14  ;;  %3889 = vst.msk [vmem:[%s7247_s26 + $0x80] sm:$0xff] %vm279_vm0, %v3857_v25 }
 0x545   : > { %3890 = vst.msk [vmem:[%s7247_s26 + $0x88] sm:$0xff] %vm279_vm0, %v3858_v35  ;;  %3891 = vst.msk [vmem:[%s7247_s26 + $0x90] sm:$0xff] %vm279_vm0, %v3859_v22 }
 0x546   : > { %3892 = vst.msk [vmem:[%s7247_s26 + $0x98] sm:$0xff] %vm279_vm0, %v3860_v54  ;;  %3893 = vst.msk [vmem:[%s7247_s26 + $0xa0] sm:$0xff] %vm279_vm0, %v3861_v16 }
 0x547   : > { %3894 = vst.msk [vmem:[%s7247_s26 + $0xa8] sm:$0xff] %vm279_vm0, %v3862_v39  ;;  %3895 = vst.msk [vmem:[%s7247_s26 + $0xb0] sm:$0xff] %vm279_vm0, %v3863_v31 }
 0x548   : > { %3896 = vst.msk [vmem:[%s7247_s26 + $0xb8] sm:$0xff] %vm279_vm0, %v3864_v29  ;;  %3897 = vst.msk [vmem:[%s7247_s26 + $0xc0] sm:$0xff] %vm279_vm0, %v3865_v24 }
 0x549   : > { %3898 = vst.msk [vmem:[%s7247_s26 + $0xc8] sm:$0xff] %vm279_vm0, %v3866_v49  ;;  %3899 = vst.msk [vmem:[%s7247_s26 + $0xd0] sm:$0xff] %vm279_vm0, %v3867_v18 }
 0x54a   : > { %3900 = vst.msk [vmem:[%s7247_s26 + $0xd8] sm:$0xff] %vm279_vm0, %v3868_v33  ;;  %3901 = vst.msk [vmem:[%s7247_s26 + $0xe0] sm:$0xff] %vm279_vm0, %v3869_v56 }
 0x54b   : > { %3902 = vst.msk [vmem:[%s7247_s26 + $0xe8] sm:$0xff] %vm279_vm0, %v3870_v21  ;;  %3903 = vst.msk [vmem:[%s7247_s26 + $0xf0] sm:$0xff] %vm279_vm0, %v3871_v11 }
 0x54c   : > { %3904 = vst.msk [vmem:[%s7247_s26 + $0xf8] sm:$0xff] %vm279_vm0, %v3872_v40 }
 0x54d PF: > { %s17_s24 = sadd.s32 1, %s4886_s24  }
 0x54e   : > { %p14_p4 = scmp.ge.s32.totalorder %s17_s24, 4  }
 0x550   :  { %16 = sbr.rel (!%p14_p4) target bundleno = 1 (0x1), region = 84 }

</bundles_post_ra>
